<compile_context>
chip_gen: v5e
topology: v5e:2x2
jax: 0.10.0
libtpu: 0.0.40
codegen_flags: <defaults>
</compile_context>

<pallas_src>
import jax
import jax.numpy as jnp
from jax import lax
from jax.experimental import pallas as pl
from jax.experimental.pallas import tpu as pltpu

B = 2                        # batch
H_IN, W_IN = 49, 10          # DSCNN-S MFCC input
C = 64                       # channels per sample
C2 = 2 * C                   # lane-packed channels (both samples)
N_CLASSES = 12
EPS = 1e-5
OH, OW = 25, 5               # spatial size after conv1 (and all DS blocks)
NPIX = OH * OW               # 125 flat pixels
K1H, K1W = 10, 4             # conv1 kernel
KIN = K1H * K1W              # 40 im2col features / sample
KIN2 = 2 * KIN               # 80 lane-packed im2col features
N_BLOCKS = 4
HALO = OW                    # 1-row vertical halo == OW flat rows
HPAD = 136                   # 5 top halo + 125 pixels + 6 bottom zeros (mult. of 8)
MXU_DTYPE = jnp.bfloat16     # matmul operand dtype (accumulation stays f32)


# ---------------------------------------------------------------------------
# Fused kernel: conv1 + 4 DS blocks + avgpool/fc/softmax head, one invocation.
# ---------------------------------------------------------------------------
def dscnn_fused_kernel(patches_ref, w1_ref, b1_ref,
                       dww_ref, dwb_ref, pww_ref, pwb_ref,
                       wfc_ref, bfc_ref, out_ref):
    # patches: (136, 80) bf16  rows 5..129 = im2col rows (cols 0..39 sample0,
    #          40..79 sample1), all other rows zero.
    # w1:  (80, 128)  bf16 block-diagonal (BN folded)   b1:  (1, 128) f32
    # dww: (4, 9, 128) f32 channel-tiled taps           dwb: (4, 1, 128) f32
    # pww: (4, 128, 128) bf16 block-diagonal            pwb: (4, 1, 128) f32
    # wfc: (64, 12) f32                                 bfc: (1, 12) f32
    # out: (2, 12)  f32 softmax probabilities

    rows = lax.broadcasted_iota(jnp.int32, (HPAD, 1), 0)
    xcol = rows % OW                                    # flat row -> x coordinate
    interior = (rows >= HALO) & (rows < HALO + NPIX)    # real pixels
    src_ok_p = xcol != 0          # valid sources for dx=+1 taps (x_src==0 would wrap)
    src_ok_m = xcol != OW - 1     # valid sources for dx=-1 taps (x_src==4 would wrap)

    # --- conv1 as im2col matmul (+ folded bias/BN) + ReLU; halo rows -> 0 -----
    h = jnp.dot(patches_ref[...], w1_ref[...], preferred_element_type=jnp.float32)
    h = jnp.where(interior, jnp.maximum(h + b1_ref[...], 0.0), 0.0)   # (136,128) f32

    # --- 4 depthwise-separable blocks ----------------------------------------
    def block(blk, h):
        dw = dww_ref[blk]                                # (9, 128) f32
        # source-masked copies for the horizontal (dx = +/-1) taps
        h_p = jnp.where(src_ok_p, h, 0.0)
        h_m = jnp.where(src_ok_m, h, 0.0)
        # 3x3 depthwise: register-resident roll + accumulate (no VMEM halo
        # scratch, no reshapes).  Vertical OOB reads land in the zero halo rows.
        acc = h * dw[4:5, :]                             # centre tap (dy=dx=0)
        for k in range(9):
            if k == 4:
                continue
            dy, dx = k // 3 - 1, k % 3 - 1
            off = dy * OW + dx
            src = h_p if dx == 1 else (h_m if dx == -1 else h)
            shifted = pltpu.roll(src, (-off) % HPAD, axis=0)
            acc = acc + shifted * dw[k:k + 1, :]
        # depthwise math stays f32 (v5e VPU has no bf16 path).
        acc = jnp.maximum(acc + dwb_ref[blk], 0.0)
        # pointwise 1x1 conv == lane-packed block-diagonal matmul (K=N=128)
        y = jnp.dot(acc.astype(MXU_DTYPE), pww_ref[blk],
                    preferred_element_type=jnp.float32)
        return jnp.where(interior, jnp.maximum(y + pwb_ref[blk], 0.0), 0.0)

    h = lax.fori_loop(0, N_BLOCKS, block, h)

    # --- head: AvgPool2d((25,5)) == mean over interior rows, Linear, softmax --
    pooled = jnp.sum(h, axis=0, keepdims=True) * (1.0 / NPIX)         # (1, 128)
    p2 = jnp.concatenate([pooled[:, :C], pooled[:, C:]], axis=0)      # (2, 64)
    logits = jnp.dot(p2, wfc_ref[...], preferred_element_type=jnp.float32) + bfc_ref[...]
    m = jnp.max(logits, axis=1, keepdims=True)
    e = jnp.exp(logits - m)
    out_ref[...] = e / jnp.sum(e, axis=1, keepdims=True)              # (2, 12)


def dscnn_pallas(patches, params):
    # Single grid step (grid=()): whole model in one kernel invocation, every
    # operand resident in VMEM (total working set < 300 KiB on any generation).
    return pl.pallas_call(
        dscnn_fused_kernel,
        out_shape=jax.ShapeDtypeStruct((B, N_CLASSES), jnp.float32),
    )(patches, params["w1"], params["b1"],
      params["dww"], params["dwb"], params["pww"], params["pwb"],
      params["wfc"], params["bfc"])


# ---------------------------------------------------------------------------
# Glue: im2col via one static gather + lane packing; parameter construction.
# ---------------------------------------------------------------------------
def conv1_patches(x):
    # x: (B, 49, 10) f32; pad (left,right,top,bottom)=(1,1,5,5) -> (B, 59, 12);
    # im2col of the (10,4)/stride-(2,2) conv1 with a single static gather.
    xp = jnp.pad(x, ((0, 0), (5, 5), (1, 1)))                         # (B, 59, 12)
    oy = jnp.arange(OH)[:, None, None, None]
    ox = jnp.arange(OW)[None, :, None, None]
    ky = jnp.arange(K1H)[None, None, :, None]
    kx = jnp.arange(K1W)[None, None, None, :]
    flat_idx = ((2 * oy + ky) * (W_IN + 2) + (2 * ox + kx)).reshape(NPIX * KIN)
    return xp.reshape(B, -1)[:, flat_idx].reshape(B, NPIX, KIN)       # (B, 125, 40)


def pack_inputs(x_nchw):
    # -> (136, 80) bf16: lane-pack the two samples' im2col features and place
    # the 125 rows at flat offset HALO (rows 0..4 / 130..135 are the zero halo).
    p = conv1_patches(x_nchw[:, 0])                                   # (2,125,40) f32
    packed = jnp.concatenate([p[0], p[1]], axis=1)                    # (125, 80)
    packed = jnp.pad(packed, ((HALO, HPAD - HALO - NPIX), (0, 0)))    # (136, 80)
    return packed.astype(MXU_DTYPE)


def dscnn_forward(x_nchw, params):
    # x_nchw: (B, 1, 49, 10) f32 -> (B, 12) softmax probabilities
    return dscnn_pallas(pack_inputs(x_nchw), params)


def bn_fold(key, c):
    k1, k2, k3, k4 = jax.random.split(key, 4)
    gamma = 1.0 + 0.1 * jax.random.normal(k1, (c,), jnp.float32)
    beta = 0.1 * jax.random.normal(k2, (c,), jnp.float32)
    mean = 0.1 * jax.random.normal(k3, (c,), jnp.float32)
    var = 1.0 + 0.1 * jax.random.uniform(k4, (c,), jnp.float32)
    scale = gamma / jnp.sqrt(var + EPS)
    shift = beta - mean * scale
    return scale.reshape(1, c), shift.reshape(1, c)


def block_diag2(w):
    n, m = w.shape
    out = jnp.zeros((2 * n, 2 * m), w.dtype)
    return out.at[:n, :m].set(w).at[n:, m:].set(w)


def make_params(key):
    keys = jax.random.split(key, 32)
    ki = iter(keys)
    p = {}
    # conv1 (logical (40,64), row = ky*4+kx); fold bias+BN1 then block-diag.
    w1 = 0.1 * jax.random.normal(next(ki), (KIN, C), jnp.float32)
    b1 = 0.05 * jax.random.normal(next(ki), (1, C), jnp.float32)
    sc1, sh1 = bn_fold(next(ki), C)
    w1f, b1f = w1 * sc1, b1 * sc1 + sh1
    p["ref_w1"], p["ref_b1"] = w1f, b1f
    p["w1"] = block_diag2(w1f).astype(MXU_DTYPE)                      # (80, 128)
    p["b1"] = jnp.tile(b1f, (1, 2))                                   # (1, 128)
    dww, dwb, pww, pwb = [], [], [], []
    rdww, rdwb, rpww, rpwb = [], [], [], []
    for _ in range(N_BLOCKS):
        w_dw = 0.1 * jax.random.normal(next(ki), (9, C), jnp.float32)  # row = ky*3+kx
        b_dw = 0.05 * jax.random.normal(next(ki), (1, C), jnp.float32)
        sc_dw, sh_dw = bn_fold(next(ki), C)
        w_pw = 0.1 * jax.random.normal(next(ki), (C, C), jnp.float32)  # (C_in, C_out)
        b_pw = 0.05 * jax.random.normal(next(ki), (1, C), jnp.float32)
        sc_pw, sh_pw = bn_fold(next(ki), C)
        w_dwf, b_dwf = w_dw * sc_dw, b_dw * sc_dw + sh_dw
        w_pwf, b_pwf = w_pw * sc_pw, b_pw * sc_pw + sh_pw
        rdww.append(w_dwf); rdwb.append(b_dwf); rpww.append(w_pwf); rpwb.append(b_pwf)
        dww.append(jnp.tile(w_dwf, (1, 2)))                           # (9, 128)
        dwb.append(jnp.tile(b_dwf, (1, 2)))                           # (1, 128)
        pww.append(block_diag2(w_pwf).astype(MXU_DTYPE))              # (128, 128)
        pwb.append(jnp.tile(b_pwf, (1, 2)))                           # (1, 128)
    p["dww"], p["dwb"] = jnp.stack(dww), jnp.stack(dwb)
    p["pww"], p["pwb"] = jnp.stack(pww), jnp.stack(pwb)
    p["ref_dww"], p["ref_dwb"] = jnp.stack(rdww), jnp.stack(rdwb)
    p["ref_pww"], p["ref_pwb"] = jnp.stack(rpww), jnp.stack(rpwb)
    # fc1 (torch (12,64) -> (64,12))
    p["wfc"] = 0.1 * jax.random.normal(next(ki), (C, N_CLASSES), jnp.float32)
    p["bfc"] = 0.05 * jax.random.normal(next(ki), (1, N_CLASSES), jnp.float32)
    p["ref_wfc"], p["ref_bfc"] = p["wfc"], p["bfc"]
    return p


def dscnn_reference(x_nchw, params):
    # Plain-JAX forward with the same folded parameters (bf16 round-trips where
    # the kernel feeds the MXU) for correctness checking.
    pt = conv1_patches(x_nchw[:, 0]).astype(MXU_DTYPE).astype(jnp.float32)
    w1 = params["ref_w1"].astype(MXU_DTYPE).astype(jnp.float32)
    h = jnp.maximum(pt @ w1 + params["ref_b1"], 0.0).reshape(B, OH, OW, C)
    for blk in range(N_BLOCKS):
        hp = jnp.pad(h, ((0, 0), (1, 1), (1, 1), (0, 0)))
        acc = jnp.zeros_like(h)
        for k in range(9):
            ky, kx = divmod(k, 3)
            acc = acc + hp[:, ky:ky + OH, kx:kx + OW, :] * params["ref_dww"][blk, k]
        acc = jnp.maximum(acc + params["ref_dwb"][blk], 0.0)
        pw = params["ref_pww"][blk].astype(MXU_DTYPE).astype(jnp.float32)
        a = acc.reshape(B, NPIX, C).astype(MXU_DTYPE).astype(jnp.float32)
        h = jnp.maximum(a @ pw + params["ref_pwb"][blk], 0.0).reshape(B, OH, OW, C)
    pooled = jnp.mean(h.reshape(B, NPIX, C), axis=1)
    logits = pooled @ params["ref_wfc"] + params["ref_bfc"]
    return jax.nn.softmax(logits, axis=1)


if __name__ == "__main__":
    key = jax.random.PRNGKey(0)
    kx, kp = jax.random.split(key)
    x = jax.random.normal(kx, (B, 1, H_IN, W_IN), jnp.float32)
    params = make_params(kp)

    out = jax.jit(dscnn_forward)(x, params)
    out = jax.block_until_ready(out)

    assert out.shape == (B, N_CLASSES)
    assert bool(jnp.all(jnp.isfinite(out)))
    # softmax rows sum to 1
    assert bool(jnp.allclose(jnp.sum(out, axis=1), 1.0, atol=1e-5))
    # matches the plain-JAX reference (bf16 MXU operands -> loose tolerance)
    ref = dscnn_reference(x, params)
    assert bool(jnp.allclose(out, ref, atol=2e-2)), float(jnp.max(jnp.abs(out - ref)))
    print("KERNEL_OK")
</pallas_src>

<mosaic_0001>
module attributes {stable_mosaic.version = 11 : i64} {
  func.func @dscnn_fused_kernel(%arg0: memref<136x80xbf16, #tpu.memory_space<vmem>>, %arg1: memref<80x128xbf16, #tpu.memory_space<vmem>>, %arg2: memref<1x128xf32, #tpu.memory_space<vmem>>, %arg3: memref<4x9x128xf32, #tpu.memory_space<vmem>>, %arg4: memref<4x1x128xf32, #tpu.memory_space<vmem>>, %arg5: memref<4x128x128xbf16, #tpu.memory_space<vmem>>, %arg6: memref<4x1x128xf32, #tpu.memory_space<vmem>>, %arg7: memref<64x12xf32, #tpu.memory_space<vmem>>, %arg8: memref<1x12xf32, #tpu.memory_space<vmem>>, %arg9: memref<2x12xf32, #tpu.memory_space<vmem>>) attributes {dimension_semantics = [], scalar_prefetch = 0 : i64, scratch_operands = 0 : i64, tpu.core_type = #tpu.core_type<tc>} {
    %0 = tpu.iota {dimensions = array<i32: 0>} : vector<136x1xi32>
    %c5_i32 = arith.constant 5 : i32
    %c0_i32 = arith.constant 0 : i32
    %1 = arith.cmpi eq, %c5_i32, %c0_i32 : i32
    %c1_i32 = arith.constant 1 : i32
    %2 = arith.select %1, %c1_i32, %c5_i32 : i32
    %3 = vector.broadcast %2 : i32 to vector<136x1xi32>
    %4 = arith.remsi %0, %3 : vector<136x1xi32>
    %c0_i32_0 = arith.constant 0 : i32
    %5 = vector.broadcast %c0_i32_0 : i32 to vector<136x1xi32>
    %6 = arith.cmpi ne, %4, %5 : vector<136x1xi32>
    %c0_i32_1 = arith.constant 0 : i32
    %7 = vector.broadcast %c0_i32_1 : i32 to vector<136x1xi32>
    %8 = arith.cmpi slt, %4, %7 : vector<136x1xi32>
    %c0_i32_2 = arith.constant 0 : i32
    %9 = arith.cmpi slt, %2, %c0_i32_2 : i32
    %10 = vector.broadcast %9 : i1 to vector<136x1xi1>
    %11 = vector.broadcast %10 : vector<136x1xi1> to vector<136x1xi1>
    %12 = arith.xori %8, %11 : vector<136x1xi1>
    %13 = arith.andi %12, %6 : vector<136x1xi1>
    %14 = vector.broadcast %2 : i32 to vector<136x1xi32>
    %15 = arith.addi %4, %14 : vector<136x1xi32>
    %16 = arith.select %13, %15, %4 : vector<136x1xi1>, vector<136x1xi32>
    %c5_i32_3 = arith.constant 5 : i32
    %17 = vector.broadcast %c5_i32_3 : i32 to vector<136x1xi32>
    %18 = arith.cmpi sge, %0, %17 : vector<136x1xi32>
    %c130_i32 = arith.constant 130 : i32
    %19 = vector.broadcast %c130_i32 : i32 to vector<136x1xi32>
    %20 = arith.cmpi slt, %0, %19 : vector<136x1xi32>
    %21 = arith.andi %18, %20 : vector<136x1xi1>
    %c0_i32_4 = arith.constant 0 : i32
    %22 = vector.broadcast %c0_i32_4 : i32 to vector<136x1xi32>
    %23 = arith.cmpi ne, %16, %22 : vector<136x1xi32>
    %c4_i32 = arith.constant 4 : i32
    %24 = vector.broadcast %c4_i32 : i32 to vector<136x1xi32>
    %25 = arith.cmpi ne, %16, %24 : vector<136x1xi32>
    %c0 = arith.constant 0 : index
    %c0_5 = arith.constant 0 : index
    %26 = vector.load %arg0[%c0, %c0_5] : memref<136x80xbf16, #tpu.memory_space<vmem>>, vector<136x80xbf16>
    %c0_6 = arith.constant 0 : index
    %c0_7 = arith.constant 0 : index
    %27 = vector.load %arg1[%c0_6, %c0_7] : memref<80x128xbf16, #tpu.memory_space<vmem>>, vector<80x128xbf16>
    %cst = arith.constant dense<0.000000e+00> : vector<136x128xf32>
    %28 = tpu.matmul %26, %27, %cst {dimension_numbers = #tpu.dot_dimension_numbers<[1], [0], [0], [1], [0, 0, 1, 1], [], []>} : vector<136x80xbf16>, vector<80x128xbf16>, vector<136x128xf32> -> vector<136x128xf32>
    %c0_8 = arith.constant 0 : index
    %c0_9 = arith.constant 0 : index
    %29 = vector.load %arg2[%c0_8, %c0_9] : memref<1x128xf32, #tpu.memory_space<vmem>>, vector<1x128xf32>
    %30 = vector.broadcast %29 : vector<1x128xf32> to vector<136x128xf32>
    %31 = arith.addf %28, %30 : vector<136x128xf32>
    %cst_10 = arith.constant 0.000000e+00 : f32
    %32 = vector.broadcast %cst_10 : f32 to vector<136x128xf32>
    %33 = arith.maximumf %31, %32 : vector<136x128xf32>
    %cst_11 = arith.constant 0.000000e+00 : f32
    %34 = vector.shape_cast %21 : vector<136x1xi1> to vector<136x1xi1>
    %35 = vector.broadcast %34 : vector<136x1xi1> to vector<136x128xi1>
    %36 = vector.broadcast %cst_11 : f32 to vector<136x128xf32>
    %37 = arith.select %35, %33, %36 : vector<136x128xi1>, vector<136x128xf32>
    %c0_i32_12 = arith.constant 0 : i32
    %c4_i32_13 = arith.constant 4 : i32
    %38 = arith.addi %c0_i32_12, %c4_i32_13 : i32
    %c1_i32_14 = arith.constant 1 : i32
    %39 = scf.for %arg10 = %c0_i32_12 to %38 step %c1_i32_14 iter_args(%arg11 = %37) -> (vector<136x128xf32>)  : i32 {
      %62 = arith.index_cast %arg10 : i32 to index
      %c0_27 = arith.constant 0 : index
      %c0_28 = arith.constant 0 : index
      %63 = vector.load %arg3[%62, %c0_27, %c0_28] : memref<4x9x128xf32, #tpu.memory_space<vmem>>, vector<1x9x128xf32>
      %64 = vector.shape_cast %63 : vector<1x9x128xf32> to vector<9x128xf32>
      %cst_29 = arith.constant 0.000000e+00 : f32
      %65 = vector.shape_cast %23 : vector<136x1xi1> to vector<136x1xi1>
      %66 = vector.broadcast %65 : vector<136x1xi1> to vector<136x128xi1>
      %67 = vector.broadcast %cst_29 : f32 to vector<136x128xf32>
      %68 = arith.select %66, %arg11, %67 : vector<136x128xi1>, vector<136x128xf32>
      %cst_30 = arith.constant 0.000000e+00 : f32
      %69 = vector.shape_cast %25 : vector<136x1xi1> to vector<136x1xi1>
      %70 = vector.broadcast %69 : vector<136x1xi1> to vector<136x128xi1>
      %71 = vector.broadcast %cst_30 : f32 to vector<136x128xf32>
      %72 = arith.select %70, %arg11, %71 : vector<136x128xi1>, vector<136x128xf32>
      %73 = vector.extract_strided_slice %64 {offsets = [4, 0], sizes = [1, 128], strides = [1, 1]} : vector<9x128xf32> to vector<1x128xf32>
      %74 = vector.broadcast %73 : vector<1x128xf32> to vector<136x128xf32>
      %75 = arith.mulf %arg11, %74 : vector<136x128xf32>
      %c6_i32 = arith.constant 6 : i32
      %76 = tpu.dynamic_rotate %72 by %c6_i32 dim 0 : vector<136x128xf32>, i32 -> vector<136x128xf32>
      %77 = vector.extract_strided_slice %64 {offsets = [0, 0], sizes = [1, 128], strides = [1, 1]} : vector<9x128xf32> to vector<1x128xf32>
      %78 = vector.broadcast %77 : vector<1x128xf32> to vector<136x128xf32>
      %79 = arith.mulf %76, %78 : vector<136x128xf32>
      %80 = arith.addf %75, %79 : vector<136x128xf32>
      %c5_i32_31 = arith.constant 5 : i32
      %81 = tpu.dynamic_rotate %arg11 by %c5_i32_31 dim 0 : vector<136x128xf32>, i32 -> vector<136x128xf32>
      %82 = vector.extract_strided_slice %64 {offsets = [1, 0], sizes = [1, 128], strides = [1, 1]} : vector<9x128xf32> to vector<1x128xf32>
      %83 = vector.broadcast %82 : vector<1x128xf32> to vector<136x128xf32>
      %84 = arith.mulf %81, %83 : vector<136x128xf32>
      %85 = arith.addf %80, %84 : vector<136x128xf32>
      %c4_i32_32 = arith.constant 4 : i32
      %86 = tpu.dynamic_rotate %68 by %c4_i32_32 dim 0 : vector<136x128xf32>, i32 -> vector<136x128xf32>
      %87 = vector.extract_strided_slice %64 {offsets = [2, 0], sizes = [1, 128], strides = [1, 1]} : vector<9x128xf32> to vector<1x128xf32>
      %88 = vector.broadcast %87 : vector<1x128xf32> to vector<136x128xf32>
      %89 = arith.mulf %86, %88 : vector<136x128xf32>
      %90 = arith.addf %85, %89 : vector<136x128xf32>
      %c1_i32_33 = arith.constant 1 : i32
      %91 = tpu.dynamic_rotate %72 by %c1_i32_33 dim 0 : vector<136x128xf32>, i32 -> vector<136x128xf32>
      %92 = vector.extract_strided_slice %64 {offsets = [3, 0], sizes = [1, 128], strides = [1, 1]} : vector<9x128xf32> to vector<1x128xf32>
      %93 = vector.broadcast %92 : vector<1x128xf32> to vector<136x128xf32>
      %94 = arith.mulf %91, %93 : vector<136x128xf32>
      %95 = arith.addf %90, %94 : vector<136x128xf32>
      %c135_i32 = arith.constant 135 : i32
      %96 = tpu.dynamic_rotate %68 by %c135_i32 dim 0 : vector<136x128xf32>, i32 -> vector<136x128xf32>
      %97 = vector.extract_strided_slice %64 {offsets = [5, 0], sizes = [1, 128], strides = [1, 1]} : vector<9x128xf32> to vector<1x128xf32>
      %98 = vector.broadcast %97 : vector<1x128xf32> to vector<136x128xf32>
      %99 = arith.mulf %96, %98 : vector<136x128xf32>
      %100 = arith.addf %95, %99 : vector<136x128xf32>
      %c132_i32 = arith.constant 132 : i32
      %101 = tpu.dynamic_rotate %72 by %c132_i32 dim 0 : vector<136x128xf32>, i32 -> vector<136x128xf32>
      %102 = vector.extract_strided_slice %64 {offsets = [6, 0], sizes = [1, 128], strides = [1, 1]} : vector<9x128xf32> to vector<1x128xf32>
      %103 = vector.broadcast %102 : vector<1x128xf32> to vector<136x128xf32>
      %104 = arith.mulf %101, %103 : vector<136x128xf32>
      %105 = arith.addf %100, %104 : vector<136x128xf32>
      %c131_i32 = arith.constant 131 : i32
      %106 = tpu.dynamic_rotate %arg11 by %c131_i32 dim 0 : vector<136x128xf32>, i32 -> vector<136x128xf32>
      %107 = vector.extract_strided_slice %64 {offsets = [7, 0], sizes = [1, 128], strides = [1, 1]} : vector<9x128xf32> to vector<1x128xf32>
      %108 = vector.broadcast %107 : vector<1x128xf32> to vector<136x128xf32>
      %109 = arith.mulf %106, %108 : vector<136x128xf32>
      %110 = arith.addf %105, %109 : vector<136x128xf32>
      %c130_i32_34 = arith.constant 130 : i32
      %111 = tpu.dynamic_rotate %68 by %c130_i32_34 dim 0 : vector<136x128xf32>, i32 -> vector<136x128xf32>
      %112 = vector.extract_strided_slice %64 {offsets = [8, 0], sizes = [1, 128], strides = [1, 1]} : vector<9x128xf32> to vector<1x128xf32>
      %113 = vector.broadcast %112 : vector<1x128xf32> to vector<136x128xf32>
      %114 = arith.mulf %111, %113 : vector<136x128xf32>
      %115 = arith.addf %110, %114 : vector<136x128xf32>
      %116 = arith.index_cast %arg10 : i32 to index
      %c0_35 = arith.constant 0 : index
      %c0_36 = arith.constant 0 : index
      %117 = vector.load %arg4[%116, %c0_35, %c0_36] : memref<4x1x128xf32, #tpu.memory_space<vmem>>, vector<1x1x128xf32>
      %118 = vector.shape_cast %117 : vector<1x1x128xf32> to vector<1x128xf32>
      %119 = vector.broadcast %118 : vector<1x128xf32> to vector<136x128xf32>
      %120 = arith.addf %115, %119 : vector<136x128xf32>
      %cst_37 = arith.constant 0.000000e+00 : f32
      %121 = vector.broadcast %cst_37 : f32 to vector<136x128xf32>
      %122 = arith.maximumf %120, %121 : vector<136x128xf32>
      %123 = arith.truncf %122 : vector<136x128xf32> to vector<136x128xbf16>
      %124 = arith.index_cast %arg10 : i32 to index
      %c0_38 = arith.constant 0 : index
      %c0_39 = arith.constant 0 : index
      %125 = vector.load %arg5[%124, %c0_38, %c0_39] : memref<4x128x128xbf16, #tpu.memory_space<vmem>>, vector<1x128x128xbf16>
      %126 = vector.shape_cast %125 : vector<1x128x128xbf16> to vector<128x128xbf16>
      %cst_40 = arith.constant dense<0.000000e+00> : vector<136x128xf32>
      %127 = tpu.matmul %123, %126, %cst_40 {dimension_numbers = #tpu.dot_dimension_numbers<[1], [0], [0], [1], [0, 0, 1, 1], [], []>} : vector<136x128xbf16>, vector<128x128xbf16>, vector<136x128xf32> -> vector<136x128xf32>
      %128 = arith.index_cast %arg10 : i32 to index
      %c0_41 = arith.constant 0 : index
      %c0_42 = arith.constant 0 : index
      %129 = vector.load %arg6[%128, %c0_41, %c0_42] : memref<4x1x128xf32, #tpu.memory_space<vmem>>, vector<1x1x128xf32>
      %130 = vector.shape_cast %129 : vector<1x1x128xf32> to vector<1x128xf32>
      %131 = vector.broadcast %130 : vector<1x128xf32> to vector<136x128xf32>
      %132 = arith.addf %127, %131 : vector<136x128xf32>
      %cst_43 = arith.constant 0.000000e+00 : f32
      %133 = vector.broadcast %cst_43 : f32 to vector<136x128xf32>
      %134 = arith.maximumf %132, %133 : vector<136x128xf32>
      %cst_44 = arith.constant 0.000000e+00 : f32
      %135 = vector.shape_cast %21 : vector<136x1xi1> to vector<136x1xi1>
      %136 = vector.broadcast %135 : vector<136x1xi1> to vector<136x128xi1>
      %137 = vector.broadcast %cst_44 : f32 to vector<136x128xf32>
      %138 = arith.select %136, %134, %137 : vector<136x128xi1>, vector<136x128xf32>
      scf.yield %138 : vector<136x128xf32>
    }
    %c4_i32_15 = arith.constant 4 : i32
    %cst_16 = arith.constant dense<0.000000e+00> : vector<128xf32>
    %40 = vector.multi_reduction <add>, %39, %cst_16 [0] : vector<136x128xf32> to vector<128xf32>
    %41 = vector.shape_cast %40 : vector<128xf32> to vector<1x128xf32>
    %cst_17 = arith.constant 8.000000e-03 : f32
    %42 = vector.broadcast %cst_17 : f32 to vector<1x128xf32>
    %43 = arith.mulf %41, %42 : vector<1x128xf32>
    %44 = vector.extract_strided_slice %43 {offsets = [0, 0], sizes = [1, 64], strides = [1, 1]} : vector<1x128xf32> to vector<1x64xf32>
    %45 = vector.extract_strided_slice %43 {offsets = [0, 64], sizes = [1, 64], strides = [1, 1]} : vector<1x128xf32> to vector<1x64xf32>
    %46 = tpu.concatenate %44, %45 in 0 : vector<1x64xf32>, vector<1x64xf32> -> vector<2x64xf32>
    %c0_18 = arith.constant 0 : index
    %c0_19 = arith.constant 0 : index
    %47 = vector.load %arg7[%c0_18, %c0_19] : memref<64x12xf32, #tpu.memory_space<vmem>>, vector<64x12xf32>
    %cst_20 = arith.constant dense<0.000000e+00> : vector<2x12xf32>
    %48 = tpu.matmul %46, %47, %cst_20 {dimension_numbers = #tpu.dot_dimension_numbers<[1], [0], [0], [1], [0, 0, 1, 1], [], []>} : vector<2x64xf32>, vector<64x12xf32>, vector<2x12xf32> -> vector<2x12xf32>
    %c0_21 = arith.constant 0 : index
    %c0_22 = arith.constant 0 : index
    %49 = vector.load %arg8[%c0_21, %c0_22] : memref<1x12xf32, #tpu.memory_space<vmem>>, vector<1x12xf32>
    %50 = vector.broadcast %49 : vector<1x12xf32> to vector<2x12xf32>
    %51 = arith.addf %48, %50 : vector<2x12xf32>
    %cst_23 = arith.constant dense<0xFF800000> : vector<2xf32>
    %52 = vector.multi_reduction <maximumf>, %51, %cst_23 [1] : vector<2x12xf32> to vector<2xf32>
    %53 = vector.shape_cast %52 : vector<2xf32> to vector<2x1xf32>
    %54 = vector.broadcast %53 : vector<2x1xf32> to vector<2x12xf32>
    %55 = arith.subf %51, %54 : vector<2x12xf32>
    %56 = math.exp %55 : vector<2x12xf32>
    %cst_24 = arith.constant dense<0.000000e+00> : vector<2xf32>
    %57 = vector.multi_reduction <add>, %56, %cst_24 [1] : vector<2x12xf32> to vector<2xf32>
    %58 = vector.shape_cast %57 : vector<2xf32> to vector<2x1xf32>
    %59 = vector.broadcast %58 : vector<2x1xf32> to vector<2x12xf32>
    %60 = arith.divf %56, %59 : vector<2x12xf32>
    %c0_25 = arith.constant 0 : index
    %c0_26 = arith.constant 0 : index
    %61 = vector.load %arg9[%c0_25, %c0_26] : memref<2x12xf32, #tpu.memory_space<vmem>>, vector<2x12xf32>
    tpu.vector_store %arg9[%c0_25, %c0_26], %60 {strides = array<i32>} : memref<2x12xf32, #tpu.memory_space<vmem>>, vector<2x12xf32>,
    return
  }
}

</mosaic_0001>

<bundles_post_ra>
// kernel: squeeze.1
= control target key start
LH: loop header
LB: loop body
LE: loop exit
PB: predicated region body
PF: predicated region fallthrough
CT: control target
= control target key end

     0   :  { %vm280_vm0 = vcmask 916480   ;;  %vm228_vm1 = vcmask 785408   ;;  %s530_s12 = smov 32   ;;  %vm305_vm2 = vcmask 982016   ;;  %s531_s13 = smov 120   ;;  %vm254_vm3 = vcmask 850944   ;;  %s635_s0 = inlined_call_operand.vmem [shape: bf16[5000], index: 0, kind: input, shape index: {}]   ;;  %s636_s1 = inlined_call_operand.vmem [shape: bf16[125,40], index: 1, kind: output, shape index: {}]  }
   0x1   :  { %v439_v0 = vld [vmem:[%s635_s0 + $0x10] sm:$0xf]  ;;  %v506_v1 = vld [vmem:[%s635_s0 + $0x8] sm:$0xff]   ;;  %v463_v2 = vld [vmem:[%s635_s0] sm:$0xff]   ;;  %s529_s0 = smov 16   ;;  %s532_s14 = smov 8  }
   0x2   :  { %v15_v3 = vunpack.c.l.bf16 %v439_v0  ;;  %v460_v4 = vunpack.c.l.bf16 %v506_v1  ;;  %v461_v5 = vunpack.c.h.bf16 %v506_v1  ;;  %v465_v6 = vunpack.c.h.bf16 %v463_v2  ;;  %s533_s15 = smov 24   ;;  %s534_s16 = smov 112  }
   0x3   :  { %v464_v7 = vunpack.c.l.bf16 %v463_v2  ;;  %s535_s17 = smov 96   ;;  %s536_s18 = smov 104   ;;  %vm78_vm4 = vcmask 326656   ;;  %vm284_vm5 = vcmask 130048   ;;  %vm293_vm6 = vcmask 326784  }
   0x4   :  { %18 = vst [vmem:[#allocation1 + $0x20] sm:$0xff] %v15_v3  ;;  %s537_s19 = smov 88   ;;  %s538_s20 = smov 72   ;;  %vm232_vm7 = vcmask 261120   ;;  %vm241_vm8 = vcmask 326912   ;;  %vm309_vm9 = vcmask 64512  }
   0x5   :  { %33 = vst [vmem:[#allocation1 + $0x18] sm:$0xff] %v461_v5  ;;  %s539_s21 = smov 80   ;;  %s540_s22 = smov 64   ;;  %vm318_vm10 = vcmask 326720   ;;  %vm258_vm11 = vcmask 195584   ;;  %vm267_vm12 = vcmask 326848  }
   0x6   :  { %48 = vst [vmem:[#allocation1 + $0x10] sm:$0xff] %v460_v4  ;;  %s541_s23 = smov 48   ;;  %s542_s24 = smov 56  }
   0x7   :  { %63 = vst [vmem:[#allocation1 + $0x8] sm:$0xff] %v465_v6  ;;  %s543_s25 = smov 40  }
   0x8   :  { %76 = vst [vmem:[#allocation1] sm:$0xff] %v464_v7 }
   0xf   :  { %v277_v8 = vld [vmem:[#allocation1 + $0x1] ss:$5 sm:$0xff]   ;;  %v279_v9 = vld [vmem:[#allocation1 + $0x2] ss:$5 sm:$0xff]  }
  0x10   :  { %v225_v10 = vld [vmem:[#allocation1 + $0x3] ss:$5 sm:$0xff]   ;;  %v281_v11 = vsel %vm280_vm0, %v279_v9, %v277_v8  ;;  %v227_v12 = vld [vmem:[#allocation1 + $0x4] ss:$5 sm:$0xff]  }
  0x11   :  { %282 = vrot.lane.b32.xlu1 %v281_v11, %s529_s0  ;;  %v229_v13 = vsel %vm228_vm1, %v227_v12, %v225_v10  ;;  %v84_v14 = vld [vmem:[#allocation1 + $0x4] ss:$5 sm:$0x7f]   ;;  %v302_v15 = vld [vmem:[#allocation1] ss:$5 sm:$0xff]  }
  0x12   :  { %230 = vrot.lane.b32.xlu0 %v229_v13, %s530_s12  ;;  %v304_v16 = vld [vmem:[#allocation1 + $0x1] ss:$5 sm:$0xff]   ;;  %85 = vrot.lane.b32.xlu2 %v84_v14, %s531_s13  ;;  %v251_v17 = vld [vmem:[#allocation1 + $0x2] ss:$5 sm:$0xff]  }
  0x13   :  { %v253_v18 = vld [vmem:[#allocation1 + $0x3] ss:$5 sm:$0xff]   ;;  %v306_v19 = vsel %vm305_vm2, %v304_v16, %v302_v15  ;;  %v110_v23 = vld [vmem:[#allocation1 + $0x2] ss:$5 sm:$0xff]  }
  0x14   :  { %v255_v20 = vsel %vm254_vm3, %v253_v18, %v251_v17  ;;  %v97_v21 = vld [vmem:[#allocation1 + $0x3] ss:$5 sm:$0xff]   ;;  %v148_v26 = vld [vmem:[#allocation1 + $0x4] ss:$5 sm:$0x7f]  }
  0x15   :  { %v123_v22 = vld [vmem:[#allocation1 + $0x1] ss:$5 sm:$0xff]   ;;  %v135_v24 = vld [vmem:[#allocation1] ss:$5 sm:$0xff]  }
  0x16   :  { %v161_v25 = vld [vmem:[#allocation1 + $0x3] ss:$5 sm:$0xff]   ;;  %v174_v27 = vld [vmem:[#allocation1 + $0x2] ss:$5 sm:$0xff]  }
  0x17   :  { %v199_v28 = vld [vmem:[#allocation1] ss:$5 sm:$0xff]   ;;  %v187_v29 = vld [vmem:[#allocation1 + $0x1] ss:$5 sm:$0xff]  }
  0x18   :  { %v212_v30 = vld [vmem:[#allocation1 + $0x4] ss:$5 sm:$0x7f]   ;;  %v77_v32 = vld [vmem:[#allocation1] ss:$5 sm:$0xff]  }
  0x19   :  { %307 = vrot.lane.b32.xlu1 %v306_v19, %s532_s14  ;;  %79 = vst.msk [vmem:[#allocation0] ss:$16 sm:$0x3] %vm78_vm4, %v77_v32  }
  0x1a   :  { %256 = vrot.lane.b32.xlu0 %v255_v20, %s533_s15  ;;  %98 = vrot.lane.b32.xlu2 %v97_v21, %s534_s16  ;;  %80 = vst.msk [vmem:[#allocation0] ss:$16 sm:$0xc] %vm78_vm4, %v77_v32  }
  0x1b   :  { %81 = vst.msk [vmem:[#allocation0] ss:$16 sm:$0x30] %vm78_vm4, %v77_v32  }
  0x1c   :  { %82 = vst.msk [vmem:[#allocation0] ss:$16 sm:$0xc0] %vm78_vm4, %v77_v32  }
  0x21   :  { %124 = vrot.lane.b32.xlu1 %v123_v22, %s535_s17 }
  0x22   :  { %111 = vrot.lane.b32.xlu0 %v110_v23, %s536_s18  ;;  %136 = vrot.lane.b32.xlu2 %v135_v24, %s537_s19 }
  0x29   :  { %162 = vrot.lane.b32.xlu1 %v161_v25, %s538_s20 }
  0x2a   :  { %149 = vrot.lane.b32.xlu0 %v148_v26, %s539_s21  ;;  %175 = vrot.lane.b32.xlu2 %v174_v27, %s540_s22 }
  0x31   :  { %200 = vrot.lane.b32.xlu1 %v199_v28, %s541_s23 }
  0x32   :  { %188 = vrot.lane.b32.xlu0 %v187_v29, %s542_s24  ;;  %213 = vrot.lane.b32.xlu2 %v212_v30, %s543_s25 }
  0x6c   :  { %v86_v31 = vpop.permute.xlu2 %85  }
  0x6d   :  { %89 = vst.msk [vmem:[#allocation0 + $0xd] ss:$16 sm:$0x3] %vm78_vm4, %v86_v31  }
  0x6e   :  { %91 = vst.msk [vmem:[#allocation0 + $0xd] ss:$16 sm:$0xc] %vm78_vm4, %v86_v31  }
  0x6f   :  { %93 = vst.msk [vmem:[#allocation0 + $0xd] ss:$16 sm:$0x30] %vm78_vm4, %v86_v31  }
  0x70   :  { %95 = vst.msk [vmem:[#allocation0 + $0x67] sm:$0x40] %vm78_vm4, %v86_v31  }
  0x74   :  { %v99_v33 = vpop.permute.xlu2 %98  }
  0x75   :  { %102 = vst.msk [vmem:[#allocation0 + $0xa] ss:$16 sm:$0x3] %vm78_vm4, %v99_v33  }
  0x76   :  { %104 = vst.msk [vmem:[#allocation0 + $0xa] ss:$16 sm:$0xc] %vm78_vm4, %v99_v33  }
  0x77   :  { %106 = vst.msk [vmem:[#allocation0 + $0xa] ss:$16 sm:$0x30] %vm78_vm4, %v99_v33  }
  0x78   :  { %108 = vst.msk [vmem:[#allocation0 + $0xa] ss:$16 sm:$0xc0] %vm78_vm4, %v99_v33  }
  0x7c   :  { %v137_v34 = vpop.permute.xlu2 %136  }
  0x7d   :  { %140 = vst.msk [vmem:[#allocation0 + $0x1] ss:$16 sm:$0x3] %vm78_vm4, %v137_v34  }
  0x7e   :  { %142 = vst.msk [vmem:[#allocation0 + $0x1] ss:$16 sm:$0xc] %vm78_vm4, %v137_v34  }
  0x7f   :  { %144 = vst.msk [vmem:[#allocation0 + $0x1] ss:$16 sm:$0x30] %vm78_vm4, %v137_v34  }
  0x80   :  { %146 = vst.msk [vmem:[#allocation0 + $0x1] ss:$16 sm:$0xc0] %vm78_vm4, %v137_v34  }
  0x83   :  { %v283_v35 = vpop.permute.xlu1 %282  }
  0x84   :  { %286 = vst.msk [vmem:[#allocation0 + $0x6] ss:$16 sm:$0x3] %vm284_vm5, %v283_v35   ;;  %v231_v36 = vpop.permute.xlu0 %230   ;;  %v176_v39 = vpop.permute.xlu2 %175  }
  0x85   :  { %288 = vst.msk [vmem:[#allocation0 + $0x6] ss:$16 sm:$0xc] %vm284_vm5, %v283_v35  }
  0x86   :  { %290 = vst.msk [vmem:[#allocation0 + $0x6] ss:$16 sm:$0x30] %vm284_vm5, %v283_v35  }
  0x87   :  { %292 = vst.msk [vmem:[#allocation0 + $0x6] ss:$16 sm:$0xc0] %vm284_vm5, %v283_v35  }
  0x88   :  { %295 = vst.msk [vmem:[#allocation0 + $0x6] ss:$16 sm:$0x3] %vm293_vm6, %v283_v35  }
  0x89   :  { %297 = vst.msk [vmem:[#allocation0 + $0x6] ss:$16 sm:$0xc] %vm293_vm6, %v283_v35  }
  0x8a   :  { %299 = vst.msk [vmem:[#allocation0 + $0x6] ss:$16 sm:$0x30] %vm293_vm6, %v283_v35  }
  0x8b   :  { %301 = vst.msk [vmem:[#allocation0 + $0x6] ss:$16 sm:$0xc0] %vm293_vm6, %v283_v35   ;;  %v308_v37 = vpop.permute.xlu1 %307  }
  0x8c   :  { %234 = vst.msk [vmem:[#allocation0 + $0xc] ss:$16 sm:$0x3] %vm232_vm7, %v231_v36   ;;  %v257_v38 = vpop.permute.xlu0 %256   ;;  %v214_v42 = vpop.permute.xlu2 %213  }
  0x8d   :  { %236 = vst.msk [vmem:[#allocation0 + $0xc] ss:$16 sm:$0xc] %vm232_vm7, %v231_v36  }
  0x8e   :  { %238 = vst.msk [vmem:[#allocation0 + $0xc] ss:$16 sm:$0x30] %vm232_vm7, %v231_v36  }
  0x8f   :  { %240 = vst.msk [vmem:[#allocation0 + $0xc] ss:$16 sm:$0xc0] %vm232_vm7, %v231_v36  }
  0x90   :  { %243 = vst.msk [vmem:[#allocation0 + $0xc] ss:$16 sm:$0x3] %vm241_vm8, %v231_v36  }
  0x91   :  { %245 = vst.msk [vmem:[#allocation0 + $0xc] ss:$16 sm:$0xc] %vm241_vm8, %v231_v36  }
  0x92   :  { %247 = vst.msk [vmem:[#allocation0 + $0xc] ss:$16 sm:$0x30] %vm241_vm8, %v231_v36  }
  0x93   :  { %249 = vst.msk [vmem:[#allocation0 + $0xc] ss:$16 sm:$0xc0] %vm241_vm8, %v231_v36   ;;  %v125_v40 = vpop.permute.xlu1 %124  }
  0x94   :  { %311 = vst.msk [vmem:[#allocation0 + $0x3] ss:$16 sm:$0x3] %vm309_vm9, %v308_v37   ;;  %v112_v41 = vpop.permute.xlu0 %111  }
  0x95   :  { %313 = vst.msk [vmem:[#allocation0 + $0x3] ss:$16 sm:$0xc] %vm309_vm9, %v308_v37  }
  0x96   :  { %315 = vst.msk [vmem:[#allocation0 + $0x3] ss:$16 sm:$0x30] %vm309_vm9, %v308_v37  }
  0x97   :  { %317 = vst.msk [vmem:[#allocation0 + $0x3] ss:$16 sm:$0xc0] %vm309_vm9, %v308_v37  }
  0x98   :  { %320 = vst.msk [vmem:[#allocation0 + $0x3] ss:$16 sm:$0x3] %vm318_vm10, %v308_v37  }
  0x99   :  { %322 = vst.msk [vmem:[#allocation0 + $0x3] ss:$16 sm:$0xc] %vm318_vm10, %v308_v37  }
  0x9a   :  { %324 = vst.msk [vmem:[#allocation0 + $0x3] ss:$16 sm:$0x30] %vm318_vm10, %v308_v37  }
  0x9b   :  { %326 = vst.msk [vmem:[#allocation0 + $0x3] ss:$16 sm:$0xc0] %vm318_vm10, %v308_v37   ;;  %v163_v43 = vpop.permute.xlu1 %162  }
  0x9c   :  { %260 = vst.msk [vmem:[#allocation0 + $0x9] ss:$16 sm:$0x3] %vm258_vm11, %v257_v38   ;;  %v150_v44 = vpop.permute.xlu0 %149  }
  0x9d   :  { %262 = vst.msk [vmem:[#allocation0 + $0x9] ss:$16 sm:$0xc] %vm258_vm11, %v257_v38  }
  0x9e   :  { %264 = vst.msk [vmem:[#allocation0 + $0x9] ss:$16 sm:$0x30] %vm258_vm11, %v257_v38  }
  0x9f   :  { %266 = vst.msk [vmem:[#allocation0 + $0x9] ss:$16 sm:$0xc0] %vm258_vm11, %v257_v38  }
  0xa0   :  { %269 = vst.msk [vmem:[#allocation0 + $0x9] ss:$16 sm:$0x3] %vm267_vm12, %v257_v38  }
  0xa1   :  { %271 = vst.msk [vmem:[#allocation0 + $0x9] ss:$16 sm:$0xc] %vm267_vm12, %v257_v38  }
  0xa2   :  { %273 = vst.msk [vmem:[#allocation0 + $0x9] ss:$16 sm:$0x30] %vm267_vm12, %v257_v38  }
  0xa3   :  { %275 = vst.msk [vmem:[#allocation0 + $0x9] ss:$16 sm:$0xc0] %vm267_vm12, %v257_v38   ;;  %v201_v45 = vpop.permute.xlu1 %200  }
  0xa4   :  { %v189_v46 = vpop.permute.xlu0 %188   ;;  %128 = vst.msk [vmem:[#allocation0 + $0x4] ss:$16 sm:$0x3] %vm78_vm4, %v125_v40  }
  0xa5   :  { %130 = vst.msk [vmem:[#allocation0 + $0x4] ss:$16 sm:$0xc] %vm78_vm4, %v125_v40  }
  0xa6   :  { %132 = vst.msk [vmem:[#allocation0 + $0x4] ss:$16 sm:$0x30] %vm78_vm4, %v125_v40  }
  0xa7   :  { %134 = vst.msk [vmem:[#allocation0 + $0x4] ss:$16 sm:$0xc0] %vm78_vm4, %v125_v40  }
  0xa8   :  { %115 = vst.msk [vmem:[#allocation0 + $0x7] ss:$16 sm:$0x3] %vm78_vm4, %v112_v41  }
  0xa9   :  { %117 = vst.msk [vmem:[#allocation0 + $0x7] ss:$16 sm:$0xc] %vm78_vm4, %v112_v41  }
  0xaa   :  { %119 = vst.msk [vmem:[#allocation0 + $0x7] ss:$16 sm:$0x30] %vm78_vm4, %v112_v41  }
  0xab   :  { %121 = vst.msk [vmem:[#allocation0 + $0x7] ss:$16 sm:$0xc0] %vm78_vm4, %v112_v41  }
  0xac   :  { %179 = vst.msk [vmem:[#allocation0 + $0x8] ss:$16 sm:$0x3] %vm78_vm4, %v176_v39  }
  0xad   :  { %181 = vst.msk [vmem:[#allocation0 + $0x8] ss:$16 sm:$0xc] %vm78_vm4, %v176_v39  }
  0xae   :  { %183 = vst.msk [vmem:[#allocation0 + $0x8] ss:$16 sm:$0x30] %vm78_vm4, %v176_v39  }
  0xaf   :  { %185 = vst.msk [vmem:[#allocation0 + $0x8] ss:$16 sm:$0xc0] %vm78_vm4, %v176_v39  }
  0xb0   :  { %166 = vst.msk [vmem:[#allocation0 + $0xb] ss:$16 sm:$0x3] %vm78_vm4, %v163_v43  }
  0xb1   :  { %168 = vst.msk [vmem:[#allocation0 + $0xb] ss:$16 sm:$0xc] %vm78_vm4, %v163_v43  }
  0xb2   :  { %170 = vst.msk [vmem:[#allocation0 + $0xb] ss:$16 sm:$0x30] %vm78_vm4, %v163_v43  }
  0xb3   :  { %172 = vst.msk [vmem:[#allocation0 + $0xb] ss:$16 sm:$0xc0] %vm78_vm4, %v163_v43  }
  0xb4   :  { %153 = vst.msk [vmem:[#allocation0 + $0xe] ss:$16 sm:$0x3] %vm78_vm4, %v150_v44  }
  0xb5   :  { %155 = vst.msk [vmem:[#allocation0 + $0xe] ss:$16 sm:$0xc] %vm78_vm4, %v150_v44  }
  0xb6   :  { %157 = vst.msk [vmem:[#allocation0 + $0xe] ss:$16 sm:$0x30] %vm78_vm4, %v150_v44  }
  0xb7   :  { %159 = vst.msk [vmem:[#allocation0 + $0x68] sm:$0x40] %vm78_vm4, %v150_v44  }
  0xb8   :  { %217 = vst.msk [vmem:[#allocation0 + $0xf] ss:$16 sm:$0x3] %vm78_vm4, %v214_v42  }
  0xb9   :  { %219 = vst.msk [vmem:[#allocation0 + $0xf] ss:$16 sm:$0xc] %vm78_vm4, %v214_v42  }
  0xba   :  { %221 = vst.msk [vmem:[#allocation0 + $0xf] ss:$16 sm:$0x30] %vm78_vm4, %v214_v42   ;;  %v433_v4 = vld [vmem:[#allocation0 + $0x78] sm:$0xff] }
  0xbb   :  { %223 = vst.msk [vmem:[#allocation0 + $0x69] sm:$0x40] %vm78_vm4, %v214_v42  }
  0xbc   :  { %204 = vst.msk [vmem:[#allocation0 + $0x2] ss:$16 sm:$0x3] %vm78_vm4, %v201_v45  }
  0xbd   :  { %206 = vst.msk [vmem:[#allocation0 + $0x2] ss:$16 sm:$0xc] %vm78_vm4, %v201_v45  }
  0xbe   :  { %208 = vst.msk [vmem:[#allocation0 + $0x2] ss:$16 sm:$0x30] %vm78_vm4, %v201_v45  }
  0xbf   :  { %210 = vst.msk [vmem:[#allocation0 + $0x2] ss:$16 sm:$0xc0] %vm78_vm4, %v201_v45   ;;  %v335_v47 = vld [vmem:[#allocation0 + $0x8] sm:$0xff]  ;;  %v349_v48 = vld [vmem:[#allocation0 + $0x18] sm:$0xff] }
  0xc0   :  { %192 = vst.msk [vmem:[#allocation0 + $0x5] ss:$16 sm:$0x3] %vm78_vm4, %v189_v46   ;;  %v363_v49 = vld [vmem:[#allocation0 + $0x28] sm:$0xff]  ;;  %v377_v52 = vld [vmem:[#allocation0 + $0x38] sm:$0xff] }
  0xc1   :  { %194 = vst.msk [vmem:[#allocation0 + $0x5] ss:$16 sm:$0xc] %vm78_vm4, %v189_v46   ;;  %v391_v56 = vld [vmem:[#allocation0 + $0x48] sm:$0xff]  ;;  %v405_v1 = vld [vmem:[#allocation0 + $0x58] sm:$0xff] }
  0xc2   :  { %196 = vst.msk [vmem:[#allocation0 + $0x5] ss:$16 sm:$0x30] %vm78_vm4, %v189_v46   ;;  %v419_v61 = vld [vmem:[#allocation0 + $0x68] sm:$0xff] }
  0xc3   :  { %198 = vst.msk [vmem:[#allocation0 + $0x5] ss:$16 sm:$0xc0] %vm78_vm4, %v189_v46  }
  0xc7   :  { %v329_v50 = vld [vmem:[#allocation0] sm:$0xff]  ;;  %v342_v51 = vld [vmem:[#allocation0 + $0x10] sm:$0xff] }
  0xc8   :  { %v356_v53 = vld [vmem:[#allocation0 + $0x20] sm:$0xff]  ;;  %v370_v54 = vld [vmem:[#allocation0 + $0x30] sm:$0xff]  ;;  %v469_v55 = vpack.c.bf16 %v335_v47, %v329_v50  ;;  %v474_v63 = vpack.c.bf16 %v349_v48, %v342_v51 }
  0xc9   :  { %v479_v57 = vpack.c.bf16 %v363_v49, %v356_v53  ;;  %v484_v58 = vpack.c.bf16 %v377_v52, %v370_v54  ;;  %v384_v59 = vld [vmem:[#allocation0 + $0x40] sm:$0xff]  ;;  %v398_v60 = vld [vmem:[#allocation0 + $0x50] sm:$0xff] }
  0xca   :  { %v412_v62 = vld [vmem:[#allocation0 + $0x60] sm:$0xff]  ;;  %470 = vst [vmem:[%s636_s1] sm:$0xff] %v469_v55   ;;  %v426_v0 = vld [vmem:[#allocation0 + $0x70] sm:$0xff]  ;;  %v489_v3 = vpack.c.bf16 %v391_v56, %v384_v59  ;;  %v494_v5 = vpack.c.bf16 %v405_v1, %v398_v60 }
  0xcb   :  { %508 = vst [vmem:[%s636_s1 + $0x10] sm:$0xff] %v479_v57   ;;  %v499_v2 = vpack.c.bf16 %v419_v61, %v412_v62  ;;  %v504_v6 = vpack.c.bf16 %v433_v4, %v426_v0 }
  0xcc   :  { %509 = vst [vmem:[%s636_s1 + $0x18] sm:$0xff] %v484_v58  }
  0xcd   :  { %512 = vst [vmem:[%s636_s1 + $0x30] sm:$0xff] %v499_v2  }
  0xce   :  { %507 = vst [vmem:[%s636_s1 + $0x8] sm:$0xff] %v474_v63  }
  0xcf   :  { %510 = vst [vmem:[%s636_s1 + $0x20] sm:$0xff] %v489_v3  }
  0xd0   :  { %511 = vst [vmem:[%s636_s1 + $0x28] sm:$0xff] %v494_v5  }
  0xd1   :  { %513 = vst [vmem:[%s636_s1 + $0x38] sm:$0xff] %v504_v6  }

// kernel: dscnn_forward.1
= control target key start
LH: loop header
LB: loop body
LE: loop exit
PB: predicated region body
PF: predicated region fallthrough
CT: control target
= control target key end

     0   :  { %s5171_s0 = inlined_call_operand.vmem [shape: bf16[136,80], index: 0, kind: input, shape index: {}]   ;;  %s5172_s1 = inlined_call_operand.vmem [shape: bf16[80,128], index: 1, kind: input, shape index: {}]   ;;  %s5173_s2 = inlined_call_operand.vmem [shape: f32[1,128], index: 2, kind: input, shape index: {}]   ;;  %s5174_s3 = inlined_call_operand.vmem [shape: f32[4,9,128], index: 3, kind: input, shape index: {}]   ;;  %s5175_s4 = inlined_call_operand.vmem [shape: f32[4,1,128], index: 4, kind: input, shape index: {}]   ;;  %s5176_s5 = inlined_call_operand.vmem [shape: bf16[4,128,128], index: 5, kind: input, shape index: {}]   ;;  %s5177_s6 = inlined_call_operand.vmem [shape: f32[4,1,128], index: 6, kind: input, shape index: {}]   ;;  %s5178_s7 = inlined_call_operand.vmem [shape: f32[64,12], index: 7, kind: input, shape index: {}]   ;;  %s5179_s8 = inlined_call_operand.vmem [shape: f32[1,12], index: 8, kind: input, shape index: {}]   ;;  %s5180_s9 = inlined_call_operand.hbm [shape: f32[2,12], index: 9, kind: output, shape index: {}]  }
   0x1   :  { %v2157_v0 = vld [vmem:[%s5172_s1 + $0x20] sm:$0xff] }
   0x2   :  { %14 = vsyncpa [#allocation3], 0  ;;  %2168 = vmatpush.bf16.msra.mxu2 %v2157_v0  ;;  %v2156_v1 = vld [vmem:[%s5172_s1 + $0x18] sm:$0xff]  ;;  %2169 = vmatpush.bf16.msra.mxu3 %v2157_v0  ;;  %v2155_v2 = vld [vmem:[%s5172_s1 + $0x10] sm:$0xff]  ;;  %vm819_vm0 = vcmask 654336   ;;  %v34_v16 = vlaneseq }
   0x3   :  { %850 = vmatpush.bf16.msra.mxu0 %v2157_v0  ;;  %2167 = vmatpush.bf16.msra.mxu1 %v2157_v0  ;;  %v2154_v3 = vld [vmem:[%s5172_s1 + $0x8] sm:$0xff]  ;;  %v2153_v4 = vld [vmem:[%s5172_s1] sm:$0xff]  ;;  %v2152_v6 = vld [vmem:[%s5171_s0 + $0x38] sm:$0xff] }
   0x4   :  { %v2149_v5 = vld [vmem:[%s5171_s0 + $0x20] sm:$0xff]  ;;  %v2147_v8 = vld [vmem:[%s5171_s0 + $0x10] sm:$0xff]  ;;  %v2150_v11 = vld [vmem:[%s5171_s0 + $0x28] sm:$0xff]  ;;  %v2638_v17 = vshrl.u32 %v34_v16, 7 }
   0x5   :  { %v2145_v7 = vld [vmem:[%s5171_s0] sm:$0xff]  ;;  %v2146_v13 = vld [vmem:[%s5171_s0 + $0x8] sm:$0xff]  ;;  %v2148_v14 = vld [vmem:[%s5171_s0 + $0x18] sm:$0xff] }
   0x6   :  { %2171 = vmatpush.bf16.msra.mxu2 %v2156_v1  ;;  %2172 = vmatpush.bf16.msra.mxu3 %v2156_v1  ;;  %v731_v9 = vld [vmem:[%s5171_s0 + $0x40] sm:$0xf]  ;;  %v2151_v15 = vld [vmem:[%s5171_s0 + $0x30] sm:$0xff]  ;;  %v2641_v18 = vadd.s32 8, %v2638_v17  ;;  %v2644_v19 = vadd.s32 16, %v2638_v17  ;;  %v55_v20 = vand.u32 65535, %v2638_v17 }
   0x7   :  { %851 = vmatpush.bf16.msra.mxu0 %v2156_v1  ;;  %2170 = vmatpush.bf16.msra.mxu1 %v2156_v1  ;;  %v779_v10 = vunpack.c.l.b16 %v731_v9  ;;  %v56_v21 = vshrl.u32 %v2638_v17, 16  ;;  %v2650_v23 = vadd.s32 24, %v2638_v17  ;;  %v2653_v24 = vadd.s32 32, %v2638_v17 }
   0x8   :  { %5366 = vst [vmem:[#allocation5_spill] sm:$0xff] %v2641_v18  ;;  %v84_v22 = vand.u32 65535, %v2641_v18  ;;  %v2656_v25 = vadd.s32 40, %v2638_v17  ;;  %v2659_v26 = vadd.s32 48, %v2638_v17  ;;  %v2662_v27 = vadd.s32 56, %v2638_v17 }
   0x9   :  { %v788_v12 = vpack.c.b16 %v779_v10, %v779_v10  ;;  %5367 = vst [vmem:[#allocation6_spill] sm:$0xff] %v2644_v19  ;;  %v2664_v28 = vmul.u32 52428, %v55_v20  ;;  %v85_v29 = vshrl.u32 %v2641_v18, 16  ;;  %v113_v30 = vand.u32 65535, %v2644_v19 }
   0xa   :  { %2174 = vmatpush.bf16.msra.mxu2 %v2155_v2  ;;  %2175 = vmatpush.bf16.msra.mxu3 %v2155_v2  ;;  %5368 = vst [vmem:[#allocation7_spill] sm:$0xff] %v2650_v23  ;;  %v2669_v31 = vadd.s32 64, %v2638_v17  ;;  %v2672_v32 = vadd.s32 72, %v2638_v17  ;;  %v2675_v33 = vadd.s32 80, %v2638_v17  ;;  %v2678_v34 = vadd.s32 88, %v2638_v17 }
   0xb   :  { %852 = vmatpush.bf16.msra.mxu0 %v2155_v2  ;;  %2173 = vmatpush.bf16.msra.mxu1 %v2155_v2  ;;  %5369 = vst [vmem:[#allocation8_spill] sm:$0xff] %v2653_v24  ;;  %v2681_v35 = vadd.s32 96, %v2638_v17  ;;  %v2684_v36 = vadd.s32 104, %v2638_v17  ;;  %v2686_v37 = vmul.u32 52429, %v56_v21  ;;  %v2688_v38 = vmul.u32 52428, %v84_v22 }
   0xc   :  { %5370 = vst [vmem:[#allocation9_spill] sm:$0xff] %v2656_v25  ;;  %v2691_v39 = vadd.s32 112, %v2638_v17  ;;  %v2694_v40 = vadd.s32 120, %v2638_v17  ;;  %v114_v41 = vshrl.u32 %v2644_v19, 16  ;;  %v142_v42 = vand.u32 65535, %v2650_v23 }
   0xd   :  { %5371 = vst [vmem:[#allocation10_spill] sm:$0xff] %v2659_v26  ;;  %v2698_v43 = vmul.u32 52429, %v55_v20  ;;  %v5185_v44 = vshll.u32 %v2664_v28, 16  ;;  %v2701_v45 = vmul.u32 52429, %v85_v29  ;;  %v2703_v46 = vmul.u32 52428, %v113_v30 }
   0xe   :  { %2177 = vmatpush.bf16.msra.mxu2 %v2154_v3  ;;  %2178 = vmatpush.bf16.msra.mxu3 %v2154_v3  ;;  %5372 = vst [vmem:[#allocation11_spill] sm:$0xff] %v2662_v27  ;;  %v2705_v47 = vmul.u32 52428, %v56_v21  ;;  %v2708_v49 = vmul.u32 52429, %v84_v22  ;;  %v143_v50 = vshrl.u32 %v2650_v23, 16  ;;  %v2712_v52 = vmul.u32 52428, %v85_v29 }
   0xf   :  { %853 = vmatpush.bf16.msra.mxu0 %v2154_v3  ;;  %2176 = vmatpush.bf16.msra.mxu1 %v2154_v3  ;;  %5373 = vst [vmem:[#allocation12_spill] sm:$0xff] %v2669_v31  ;;  %v5183_v53 = vshll.u32 %v2688_v38, 16  ;;  %v171_v54 = vand.u32 65535, %v2653_v24  ;;  %v2718_v57 = vmul.u32 52429, %v114_v41  ;;  %v2720_v58 = vmul.u32 52428, %v142_v42 }
  0x10   :  { %5374 = vst [vmem:[#allocation13_spill] sm:$0xff] %v2672_v32  ;;  %v2725_v59 = vadd.s32 %v5185_v44, %v2698_v43  ;;  %v2728_v61 = vmul.u32 52429, %v113_v30  ;;  %v5182_v62 = vshll.u32 %v2703_v46, 16  ;;  %v2732_v0 = vmul.u32 52429, %v143_v50  ;;  %v2739_v3 = vld [vmem:[%s5173_s2] ss:$0 sm:$0xff] }
  0x11   :  { %5375 = vst [vmem:[#allocation14_spill] sm:$0xff] %v2675_v33  ;;  %v172_v1 = vshrl.u32 %v2653_v24, 16  ;;  %v200_v2 = vand.u32 65535, %v2656_v25  ;;  %v2753_v10 = vmul.u32 52429, %v142_v42  ;;  %v2775_v42 = vmul.u32 52429, %v171_v54  ;;  %s3824_s2 = smov 0  }
  0x12   :  { %2180 = vmatpush.bf16.msra.mxu2 %v2153_v4  ;;  %2181 = vmatpush.bf16.msra.mxu3 %v2153_v4  ;;  %5376 = vst [vmem:[#allocation15_spill] sm:$0xff] %v2678_v34  ;;  %v230_v63 = vshrl.u32 %v2659_v26, 16  ;;  %v258_v55 = vand.u32 65535, %v2662_v27  ;;  %v316_v60 = vand.u32 65535, %v2672_v32  ;;  %v345_v24 = vand.u32 65535, %v2675_v33 }
  0x13   :  { %854 = vmatpush.bf16.msra.mxu0 %v2153_v4  ;;  %2179 = vmatpush.bf16.msra.mxu1 %v2153_v4  ;;  %5377 = vst [vmem:[#allocation16_spill] sm:$0xff] %v2681_v35  ;;  %v2744_v4 = vadd.s32 %v5183_v53, %v2708_v49  ;;  %v2767_v22 = vmul.u32 52429, %v172_v1  ;;  %v2769_v29 = vmul.u32 52428, %v200_v2  ;;  %v2783_v20 = vmul.u32 52428, %v172_v1 }
  0x14   :  { %5378 = vst [vmem:[#allocation17_spill] sm:$0xff] %v2684_v36  ;;  %v2794_v48 = vmul.u32 52429, %v200_v2  ;;  %v259_v1 = vshrl.u32 %v2662_v27, 16  ;;  %v2808_v56 = vmul.u32 52429, %v230_v63  ;;  %v2810_v2 = vmul.u32 52428, %v258_v55 }
  0x15   :  { %2105 = vmatmul.msk.bf16.vlgmr.msra.gmra.mxu2 %vm819_vm0, %v2149_v5  ;;  %2108 = vmatmul.msk.bf16.vlgmr.msra.gmra.mxu3 %vm819_vm0, %v2152_v6  ;;  %5379 = vst [vmem:[#allocation18_spill] sm:$0xff] %v2691_v39  ;;  %v2746_v5 = vmul.u32 52428, %v114_v41  ;;  %v5189_v21 = vshll.u32 %v2769_v29, 16  ;;  %v2829_v53 = vmul.u32 52429, %v258_v55  ;;  %v403_v23 = vand.u32 65535, %v2681_v35 }
  0x16   :  { %2101 = vmatmul.msk.bf16.vlgmr.msra.gmra.mxu0 %vm819_vm0, %v2145_v7  ;;  %2103 = vmatmul.msk.bf16.vlgmr.msra.gmra.mxu1 %vm819_vm0, %v2147_v8  ;;  %5380 = vst [vmem:[#allocation19_spill] sm:$0xff] %v2694_v40  ;;  %v2749_v7 = vmul.u32 52428, %v171_v54  ;;  %v287_v8 = vand.u32 65535, %v2669_v31  ;;  %v2825_v44 = vmul.u32 52429, %v259_v1  ;;  %v2844_v27 = vmul.u32 52428, %v259_v1 }
  0x17   :  { %5381 = vst [vmem:[#allocation20_spill] sm:$0xff] %v2705_v47  ;;  %v374_v1 = vand.u32 65535, %v2678_v34  ;;  %vm5237_vm10 = vcmp.ge.s32.totalorder %v2638_v17, 5 }
  0x18   :  { %5382 = vst [vmem:[#allocation21_spill] sm:$0xff] %v2712_v52 }
  0x19   :  { %5383 = vst [vmem:[#allocation22_spill] sm:$0xff] %v2739_v3 }
  0x1a   :  { %5384 = vst [vmem:[#allocation23_spill] sm:$0xff] %v2746_v5 }
  0x1b   :  { %5387 = vst [vmem:[#allocation26_spill] sm:$0xff] %v2783_v20 }
  0x1c   :  { %5389 = vst [vmem:[#allocation28_spill] sm:$0xff] %v2808_v56 }
  0x1d   :  { %5391 = vst [vmem:[#allocation30_spill] sm:$0xff] %v2825_v44 }
  0x1e   :  { %5395 = vst [vmem:[#allocation33_spill] sm:$0xff] %v2844_v27  ;;  %v375_v27 = vshrl.u32 %v2678_v34, 16  ;;  %v2902_v34 = vmul.u32 52428, %v403_v23 }
  0x25   :  { %2106 = vmatmul.msk.bf16.gmra.mxu2 %vm819_vm0, %v2150_v11  ;;  %2109 = vmatmul.msk.bf16.gmra.mxu3 %vm819_vm0, %v788_v12  ;;  %v5181_v11 = vshll.u32 %v2720_v58, 16  ;;  %v2759_v12 = vadd.s32 %v5182_v62, %v2728_v61  ;;  %v2823_v62 = vmul.u32 52428, %v230_v63  ;;  %v2837_v63 = vmul.u32 52428, %v316_v60 }
  0x26   :  { %2102 = vmatmul.msk.bf16.gmra.mxu0 %vm819_vm0, %v2146_v13  ;;  %2104 = vmatmul.msk.bf16.gmra.mxu1 %vm819_vm0, %v2148_v14  ;;  %v2761_v13 = vmul.u32 52428, %v143_v50  ;;  %v201_v14 = vshrl.u32 %v2656_v25, 16  ;;  %v5184_v50 = vshll.u32 %v2749_v7, 16 }
  0x27   :  { %v2781_v9 = vadd.s32 %v5181_v11, %v2753_v10  ;;  %5390 = vst [vmem:[#allocation29_spill] sm:$0xff] %v2823_v62  ;;  %v2831_v11 = vmul.u32 52428, %v287_v8 }
  0x28   :  { %5385 = vst [vmem:[#allocation24_spill] sm:$0xff] %v2761_v13  ;;  %v2789_v41 = vmul.u32 52429, %v201_v14  ;;  %v2804_v6 = vmul.u32 52428, %v201_v14  ;;  %v2821_v14 = vadd.s32 %v5189_v21, %v2794_v48  ;;  %v2879_v13 = vmul.u32 52428, %v345_v24 }
  0x29   :  { %5392 = vst [vmem:[#allocation31_spill] sm:$0xff] %v2831_v11 }
  0x2a   :  { %5388 = vst [vmem:[#allocation27_spill] sm:$0xff] %v2804_v6 }
  0x2b   :  { %5393 = vst [vmem:[#allocation32_spill] sm:$0xff] %v2837_v63 }
  0x35   :  { %2107 = vmatmul.msk.bf16.gmra.mxu2 %vm819_vm0, %v2151_v15  ;;  %v229_v15 = vand.u32 65535, %v2659_v26  ;;  %v2850_v26 = vmul.u32 52429, %v287_v8  ;;  %v2868_v8 = vmul.u32 52429, %v316_v60  ;;  %v404_v60 = vshrl.u32 %v2681_v35, 16 }
  0x37   :  { %v2791_v54 = vmul.u32 52428, %v229_v15  ;;  %v2815_v51 = vmul.u32 52429, %v229_v15  ;;  %v317_v15 = vshrl.u32 %v2672_v32, 16  ;;  %5396 = vst [vmem:[#allocation34_spill] sm:$0xff] %v2850_v26  ;;  %v5399_v32 = vshll.u32 %v2810_v2, 16 }
  0x38   :  { %5401 = vst [vmem:[#allocation38_spill] sm:$0xff] %v2868_v8 }
  0x39   :  { %v5394_v25 = vshll.u32 %v2791_v54, 16  ;;  %v2855_v19 = vmul.u32 52429, %v317_v15  ;;  %v2877_v20 = vmul.u32 52428, %v317_v15  ;;  %v2893_v15 = vmul.u32 52428, %v374_v1 }
  0x3b   :  { %5398 = vst [vmem:[#allocation36_spill] sm:$0xff] %v2855_v19  ;;  %v433_v19 = vshrl.u32 %v2684_v36, 16 }
  0x3c   :  { %5403 = vst [vmem:[#allocation40_spill] sm:$0xff] %v2877_v20  ;;  %v2911_v20 = vmul.u32 52429, %v375_v27 }
  0x3e   :  { %5411 = vst [vmem:[#allocation46_spill] sm:$0xff] %v2911_v20  ;;  %v5425_v20 = vshll.u32 %v2688_v38, 16 }
  0x40   :  { %vm2977_vm3 = vc.u32 %v2708_v49, %v5425_v20  ;;  %v5432_v49 = vshll.u32 %v2703_v46, 16 }
  0x42   :  { %vm2998_vm5 = vc.u32 %v2728_v61, %v5432_v49  ;;  %v5438_v61 = vshll.u32 %v2720_v58, 16 }
  0x44   :  { %vm3016_vm7 = vc.u32 %v2753_v10, %v5438_v61 }
  0x93   :  { %v2859_v18 = vpop.f32.mrf.mxu0  ;;  %v2872_v62 = vpop.f32.mrf.mxu1 }
  0x94   :  { %v857_v10 = vadd.f32 %v2739_v3, %v2859_v18  ;;  %v3038_v61 = vadd.f32 %v2739_v3, %v2872_v62  ;;  %v5452_v62 = vshll.u32 %v2767_v22, 16 }
  0x96   :  { %5447 = vst [vmem:[#allocation54_spill] sm:$0xff] %v3038_v61 }
  0x98   :  { %v876_v16 = vpop.f32.mrf.mxu2 }
  0x99   :  { %v2772_v30 = vadd.f32 %v2739_v3, %v876_v16  ;;  %v2802_v16 = vadd.s32 %v5184_v50, %v2775_v42  ;;  %v2866_v50 = vadd.s32 %v5399_v32, %v2829_v53  ;;  %v5407_v32 = vshll.u32 %v2837_v63, 16 }
  0x9b   :  { %5386 = vst [vmem:[#allocation25_spill] sm:$0xff] %v2772_v30  ;;  %v288_v30 = vshrl.u32 %v2669_v31, 16  ;;  %v2842_v31 = vadd.s32 %v5394_v25, %v2815_v51  ;;  %v346_v25 = vshrl.u32 %v2675_v33, 16  ;;  %v2899_v44 = vadd.s32 %v5407_v32, %v2868_v8  ;;  %v868_v47 = vpop.f32.mrf.mxu1 }
  0x9c   :  { %5400 = vst [vmem:[#allocation37_spill] sm:$0xff] %v2866_v50  ;;  %v5404_v50 = vshll.u32 %v2831_v11, 16  ;;  %v461_v32 = vand.u32 65535, %v2691_v39  ;;  %v2922_v8 = vmul.u32 52429, %v403_v23  ;;  %v858_v11 = vpop.f32.mrf.mxu0  ;;  %vm3057_vm11 = vc.u32 %v2802_v16, %v5452_v62 }
  0x9d   :  { %v2852_v21 = vmul.u32 52429, %v288_v30  ;;  %v2874_v33 = vmul.u32 52428, %v288_v30  ;;  %v2891_v6 = vmul.u32 52429, %v346_v25  ;;  %5408 = vst [vmem:[#allocation43_spill] sm:$0xff] %v2899_v44  ;;  %v2916_v44 = vmul.u32 52429, %v374_v1 }
  0x9e   :  { %v2888_v5 = vadd.s32 %v5404_v50, %v2850_v26  ;;  %v2906_v50 = vmul.u32 52428, %v346_v25  ;;  %v2932_v1 = vmul.u32 52428, %v375_v27  ;;  %v2940_v63 = vmul.u32 52428, %v461_v32 }
  0x9f   :  { %5397 = vst [vmem:[#allocation35_spill] sm:$0xff] %v2852_v21  ;;  %v2924_v21 = vmul.u32 52429, %v404_v60  ;;  %v2981_v30 = vmul.u32 52428, %v433_v19 }
  0xa0   :  { %v2861_v55 = vpop.f32.mrf.mxu2  ;;  %5402 = vst [vmem:[#allocation39_spill] sm:$0xff] %v2874_v33  ;;  %v2904_v33 = vmul.u32 52429, %v345_v24  ;;  %v462_v24 = vshrl.u32 %v2691_v39, 16  ;;  %v5458_v16 = vshll.u32 %v2940_v63, 16 }
  0xa1   :  { %5405 = vst [vmem:[#allocation41_spill] sm:$0xff] %v2888_v5  ;;  %v432_v5 = vand.u32 65535, %v2684_v36  ;;  %v5412_v36 = vshll.u32 %v2879_v13, 16  ;;  %v3052_v18 = vadd.f32 %v2739_v3, %v2861_v55  ;;  %v900_v55 = vmax.f32 %v857_v10, 0.0 }
  0xa2   :  { %5406 = vst [vmem:[#allocation42_spill] sm:$0xff] %v2891_v6  ;;  %v2938_v6 = vmul.u32 52429, %v433_v19  ;;  %v2986_v39 = vmul.u32 52429, %v462_v24  ;;  %v5522_v10 = vshrl.u32 %v2720_v58, 16  ;;  %v5532_v58 = vshrl.u32 %v2749_v7, 16 }
  0xa3   :  { %5409 = vst [vmem:[#allocation44_spill] sm:$0xff] %v2904_v33  ;;  %v2919_v25 = vmul.u32 52428, %v432_v5  ;;  %v2930_v26 = vadd.s32 %v5412_v36, %v2904_v33  ;;  %v5416_v36 = vshll.u32 %v2893_v15, 16  ;;  %v2949_v35 = vmul.u32 52429, %v432_v5 }
  0xa4   :  { %5410 = vst [vmem:[#allocation45_spill] sm:$0xff] %v2906_v50  ;;  %v891_v50 = vpop.f32.mrf.mxu3  ;;  %v5422_v5 = vshll.u32 %v2686_v37, 16  ;;  %v5566_v19 = vshll.u32 %v2986_v39, 16 }
  0xa5   :  { %5413 = vst [vmem:[#allocation47_spill] sm:$0xff] %v2930_v26  ;;  %v2945_v27 = vadd.s32 %v5416_v36, %v2916_v44  ;;  %v5418_v26 = vshll.u32 %v2902_v34, 16  ;;  %v5419_v36 = vshll.u32 %v2664_v28, 16 }
  0xa6   :  { %5414 = vst [vmem:[#allocation48_spill] sm:$0xff] %v2932_v1  ;;  %v2947_v1 = vmul.u32 52428, %v404_v60  ;;  %vm2970_vm2 = vc.u32 %v2725_v59, %v5422_v5  ;;  %v5429_v59 = vshll.u32 %v2701_v45, 16  ;;  %v5484_v5 = vld [vmem:[#allocation30_spill] sm:$0xff] }
  0xa7   :  { %5415 = vst [vmem:[#allocation49_spill] sm:$0xff] %v2938_v6  ;;  %v2958_v33 = vadd.s32 %v5418_v26, %v2922_v8  ;;  %vm2963_vm1 = vc.u32 %v2698_v43, %v5419_v36  ;;  %v2984_v36 = vmul.u32 52429, %v461_v32  ;;  %v5441_v32 = vshll.u32 %v2732_v0, 16 }
  0xa8   :  { %v881_v52 = vpop.f32.mrf.mxu2  ;;  %5417 = vst [vmem:[#allocation50_spill] sm:$0xff] %v2947_v1  ;;  %vm2991_vm4 = vc.u32 %v2744_v4, %v5429_v59  ;;  %v5435_v4 = vshll.u32 %v2718_v57, 16  ;;  %v3032_v43 = vmul.u32 52428, %v462_v24  ;;  %v5448_v1 = vshll.u32 %v2749_v7, 16  ;;  %v5503_v24 = vld [vmem:[#allocation27_spill] sm:$0xff] }
  0xa9   :  { %5428 = vst [vmem:[#allocation51_spill] sm:$0xff] %v2981_v30  ;;  %v490_v30 = vand.u32 65535, %v2694_v40  ;;  %vm3023_vm8 = vc.u32 %v2781_v9, %v5441_v32  ;;  %v3074_v62 = vadd.s32 %v5458_v16, %v2984_v36  ;;  %v5460_v32 = vshll.u32 %v2789_v41, 16  ;;  %v5496_v9 = vld [vmem:[#allocation35_spill] sm:$0xff] }
  0xaa   :  { %vm3009_vm6 = vc.u32 %v2759_v12, %v5435_v4  ;;  %v5444_v12 = vshll.u32 %v2919_v25, 16  ;;  %5446 = vst [vmem:[#allocation53_spill] sm:$0xff] %v3032_v43  ;;  %vm3043_vm9 = vc.u32 %v2775_v42, %v5448_v1  ;;  %v5455_v42 = vshll.u32 %v2769_v29, 16  ;;  %v5506_v1 = vld [vmem:[#allocation38_spill] sm:$0xff] }
  0xab   :  { %5451 = vst [vmem:[#allocation55_spill] sm:$0xff] %v3052_v18  ;;  %v3076_v6 = vmul.u32 52428, %v490_v30  ;;  %vm3085_vm13 = vc.u32 %v2821_v14, %v5460_v32  ;;  %v5463_v43 = vshll.u32 %v2791_v54, 16  ;;  %v3107_v14 = vadd.f32 %v2739_v3, %v881_v52  ;;  %v861_v32 = vpop.f32.mrf.mxu0 }
  0xac   :  { %v3030_v4 = vadd.s32 %v5444_v12, %v2949_v35  ;;  %v491_v12 = vshrl.u32 %v2694_v40, 16  ;;  %vm3064_vm12 = vc.u32 %v2794_v48, %v5455_v42  ;;  %v3080_v42 = vadd.f32 %v2739_v3, %v891_v50 }
  0xad   :  { %vm3092_vm14 = vc.u32 %v2815_v51, %v5463_v43  ;;  %v3098_v48 = vsel %vm5237_vm10, %v900_v55, 0.0   ;;  %v3101_v50 = vadd.f32 %v2739_v3, %v858_v11  ;;  %v3104_v40 = vadd.f32 %v2739_v3, %v868_v47  ;;  %5469 = vst [vmem:[#allocation60_spill] sm:$0xff] %v3107_v14  ;;  %v871_v11 = vpop.f32.mrf.mxu1 }
  0xae   :  { %5445 = vst [vmem:[#allocation52_spill] sm:$0xff] %v3030_v4  ;;  %v893_v4 = vpop.f32.mrf.mxu3  ;;  %v3109_v18 = vmul.u32 52429, %v490_v30  ;;  %v3116_v55 = vadd.f32 %v2739_v3, %v861_v32  ;;  %v3145_v30 = vmul.u32 52428, %v491_v12  ;;  %v5483_v32 = vld [vmem:[#allocation23_spill] sm:$0xff]  ;;  %v498_v52 = vshrl.u32 %v3076_v6, 16 }
  0xaf   :  { %5459 = vst [vmem:[#allocation56_spill] sm:$0xff] %v3080_v42  ;;  %v3113_v43 = vadd.f32 %v2739_v3, %v893_v4  ;;  %v3129_v4 = vadd.f32 %v2739_v3, %v871_v11  ;;  %v3131_v42 = vmul.u32 52429, %v491_v12  ;;  %v5482_v11 = vld [vmem:[#allocation21_spill] sm:$0xff] }
  0xb0   :  { %5466 = vst [vmem:[#allocation57_spill] sm:$0xff] %v3098_v48  ;;  %v883_v61 = vpop.f32.mrf.mxu2  ;;  %v5472_v48 = vshll.u32 %v2808_v56, 16 }
  0xb1   :  { %5467 = vst [vmem:[#allocation58_spill] sm:$0xff] %v3101_v50  ;;  %v5235_v50 = vmov 0  }
  0xb2   :  { %5468 = vst [vmem:[#allocation59_spill] sm:$0xff] %v3104_v40  ;;  %vm3121_vm15 = vc.u32 %v2842_v31, %v5472_v48  ;;  %v3136_v31 = vadd.f32 %v2739_v3, %v883_v61  ;;  %v5477_v48 = vshll.u32 %v2810_v2, 16  ;;  %v67_v61 = vsel %vm2963_vm1, 1, %v5235_v50 }
  0xb3   :  { %5470 = vst [vmem:[#allocation61_spill] sm:$0xff] %v3113_v43  ;;  %v96_v12 = vsel %vm2977_vm3, 1, %v5235_v50  ;;  %v100_v51 = vsel %vm2991_vm4, 1, %v5235_v50  ;;  %v125_v60 = vsel %vm2998_vm5, 1, %v5235_v50  ;;  %v129_v23 = vsel %vm3009_vm6, 1, %v5235_v50 }
  0xb4   :  { %5471 = vst [vmem:[#allocation62_spill] sm:$0xff] %v3116_v55  ;;  %vm3141_vm0 = vc.u32 %v2829_v53, %v5477_v48  ;;  %v71_v53 = vsel %vm2970_vm2, 1, %v5235_v50  ;;  %v5481_v48 = vld [vmem:[#allocation20_spill] sm:$0xff]  ;;  %v98_v55 = vadd.s32 %v96_v12, %v5482_v11  ;;  %v127_v40 = vadd.s32 %v125_v60, %v5483_v32  ;;  %v5486_v12 = vld [vmem:[#allocation37_spill] sm:$0xff] }
  0xb5   :  { %5475 = vst [vmem:[#allocation63_spill] sm:$0xff] %v3129_v4  ;;  %v69_v56 = vadd.s32 %v67_v61, %v5481_v48  ;;  %v154_v26 = vsel %vm3016_vm7, 1, %v5235_v50  ;;  %v158_v11 = vsel %vm3023_vm8, 1, %v5235_v50  ;;  %v5485_v61 = vshll.u32 %v5484_v5, 16  ;;  %v5489_v60 = vld [vmem:[#allocation24_spill] sm:$0xff]  ;;  %v5490_v4 = vld [vmem:[#allocation31_spill] sm:$0xff] }
  0xb6   :  { %5476 = vst [vmem:[#allocation64_spill] sm:$0xff] %v3136_v31  ;;  %v102_v48 = vadd.s32 %v100_v51, %v98_v55  ;;  %v156_v59 = vadd.s32 %v154_v26, %v5489_v60  ;;  %v183_v49 = vsel %vm3043_vm9, 1, %v5235_v50  ;;  %v5491_v14 = vshll.u32 %v5490_v4, 16  ;;  %v5492_v31 = vld [vmem:[#allocation34_spill] sm:$0xff] }
  0xb7   :  { %5480 = vst [vmem:[#allocation65_spill] sm:$0xff] %v3145_v30  ;;  %vm3180_vm1 = vc.u32 %v5486_v12, %v5485_v61  ;;  %v73_v32 = vadd.s32 %v71_v53, %v69_v56  ;;  %v131_v43 = vadd.s32 %v129_v23, %v127_v40  ;;  %v5495_v61 = vld [vmem:[#allocation26_spill] sm:$0xff]  ;;  %v187_v56 = vsel %vm3057_vm11, 1, %v5235_v50  ;;  %v5498_v53 = vld [vmem:[#allocation41_spill] sm:$0xff]  ;;  %v5511_v30 = vld [vmem:[#allocation43_spill] sm:$0xff] }
  0xb8   :  { %vm3191_vm2 = vc.u32 %v5492_v31, %v5491_v14  ;;  %v185_v12 = vadd.s32 %v183_v49, %v5495_v61  ;;  %v212_v51 = vsel %vm3064_vm12, 1, %v5235_v50  ;;  %v5497_v55 = vshll.u32 %v5496_v9, 16  ;;  %v5504_v61 = vld [vmem:[#allocation32_spill] sm:$0xff] }
  0xb9   :  { %v5501_v14 = vshrl.u32 %v2664_v28, 16  ;;  %v5502_v31 = vshrl.u32 %v2688_v38, 16  ;;  %v160_v60 = vadd.s32 %v158_v11, %v156_v59  ;;  %v214_v49 = vadd.s32 %v212_v51, %v5503_v24  ;;  %v5517_v51 = vld [vmem:[#allocation44_spill] sm:$0xff]  ;;  %v5523_v24 = vld [vmem:[#allocation42_spill] sm:$0xff] }
  0xba   :  { %vm3205_vm3 = vc.u32 %v5498_v53, %v5497_v55  ;;  %v5505_v3 = vshll.u32 %v5504_v61, 16  ;;  %v5509_v55 = vld [vmem:[#allocation36_spill] sm:$0xff]  ;;  %v5514_v28 = vshrl.u32 %v2703_v46, 16  ;;  %v189_v11 = vadd.s32 %v187_v56, %v185_v12 }
  0xbb   :  { %v74_v40 = vadd.s32 %v73_v32, %v5501_v14  ;;  %v103_v23 = vadd.s32 %v102_v48, %v5502_v31  ;;  %v5510_v53 = vshll.u32 %v5509_v55, 16  ;;  %v5515_v32 = vmov 0  }
  0xbc   :  { %vm3217_vm4 = vc.u32 %v5506_v1, %v5505_v3  ;;  %v132_v38 = vadd.s32 %v131_v43, %v5514_v28  ;;  %v216_v48 = vsel %vm3085_vm13, 1, %v5515_v32  ;;  %v241_v3 = vsel %vm3092_vm14, 1, %v5515_v32  ;;  %v5525_v1 = vld [vmem:[#allocation47_spill] sm:$0xff] }
  0xbd   :  { %vm3224_vm5 = vc.u32 %v5511_v30, %v5510_v53  ;;  %v5516_v59 = vshll.u32 %v2879_v13, 16  ;;  %v5520_v14 = vshrl.u32 %v2686_v37, 16  ;;  %v5521_v43 = vshrl.u32 %v2701_v45, 16 }
  0xbe   :  { %v161_v56 = vadd.s32 %v160_v60, %v5522_v10  ;;  %v218_v31 = vadd.s32 %v216_v48, %v214_v49  ;;  %v5524_v16 = vshll.u32 %v5523_v24, 16  ;;  %v5528_v28 = vshll.u32 %v2893_v15, 16  ;;  %v5533_v60 = vld [vmem:[#allocation29_spill] sm:$0xff] }
  0xbf   :  { %vm3239_vm6 = vc.u32 %v5517_v51, %v5516_v59  ;;  %v75_v46 = vadd.s32 %v74_v40, %v5520_v14  ;;  %v104_v12 = vadd.s32 %v103_v23, %v5521_v43  ;;  %v5531_v45 = vshrl.u32 %v2718_v57, 16 }
  0xc0   :  { %vm3252_vm7 = vc.u32 %v5525_v1, %v5524_v16  ;;  %vm3259_vm8 = vc.u32 %v2916_v44, %v5528_v28  ;;  %v190_v23 = vadd.s32 %v189_v11, %v5532_v58  ;;  %v243_v49 = vadd.s32 %v241_v3, %v5533_v60  ;;  %v5536_v16 = vld [vmem:[#allocation46_spill] sm:$0xff]  ;;  %v5592_v28 = vld [vmem:[#allocation51_spill] sm:$0xff] }
  0xc1   :  { %v133_v40 = vadd.s32 %v132_v38, %v5531_v45  ;;  %v245_v48 = vsel %vm3121_vm15, 1, %v5515_v32  ;;  %v76_v59 = vshrl.u32 %v75_v46, 2  ;;  %v105_v51 = vshrl.u32 %v104_v12, 2 }
  0xc2   :  { %v5534_v14 = vshrl.u32 %v2732_v0, 16  ;;  %v5535_v43 = vshrl.u32 %v2769_v29, 16  ;;  %v5537_v57 = vshll.u32 %v5536_v16, 16  ;;  %v5540_v38 = vshll.u32 %v2902_v34, 16 }
  0xc3   :  { %v134_v11 = vshrl.u32 %v133_v40, 2  ;;  %v5543_v0 = vshrl.u32 %v2767_v22, 16  ;;  %v247_v29 = vadd.s32 %v245_v48, %v243_v49  ;;  %v270_v46 = vsel %vm3141_vm0, 1, %v5515_v32 }
  0xc4   :  { %v162_v44 = vadd.s32 %v161_v56, %v5534_v14  ;;  %v219_v10 = vadd.s32 %v218_v31, %v5535_v43  ;;  %vm3278_vm9 = vc.u32 %v2945_v27, %v5537_v57  ;;  %vm3285_vm11 = vc.u32 %v2922_v8, %v5540_v38 }
  0xc5   :  { %v191_v3 = vadd.s32 %v190_v23, %v5543_v0  ;;  %v77_v27 = vmul.u32 5, %v76_v59  ;;  %v106_v12 = vmul.u32 5, %v105_v51  ;;  %v5544_v31 = vshrl.u32 %v2789_v41, 16  ;;  %v5551_v41 = vld [vmem:[#allocation33_spill] sm:$0xff] }
  0xc6   :  { %v163_v56 = vshrl.u32 %v162_v44, 2  ;;  %v5545_v8 = vshll.u32 %v2924_v21, 16  ;;  %v5548_v22 = vshll.u32 %v2919_v25, 16  ;;  %v135_v40 = vmul.u32 5, %v134_v11  ;;  %v5554_v51 = vld [vmem:[#allocation49_spill] sm:$0xff]  ;;  %v5556_v44 = vld [vmem:[#allocation52_spill] sm:$0xff] }
  0xc7   :  { %v220_v1 = vadd.s32 %v219_v10, %v5544_v31  ;;  %v192_v58 = vshrl.u32 %v191_v3, 2  ;;  %v272_v23 = vadd.s32 %v270_v46, %v5551_v41  ;;  %v499_v60 = vshll.u32 %v3131_v42, 16 }
  0xc8   :  { %vm3299_vm12 = vc.u32 %v2958_v33, %v5545_v8  ;;  %vm3306_vm13 = vc.u32 %v2949_v35, %v5548_v22  ;;  %v500_v33 = vshrl.u32 %v3131_v42, 16  ;;  %v5552_v49 = vshll.u32 %v3076_v6, 16  ;;  %v5565_v22 = vld [vmem:[#allocation39_spill] sm:$0xff] }
  0xc9   :  { %v5553_v59 = vshrl.u32 %v2791_v54, 16  ;;  %v5555_v14 = vshll.u32 %v5554_v51, 16  ;;  %v3327_v10 = vadd.s32 128, %v2638_v17  ;;  %v3330_v57 = vsub.s32 %v2638_v17, %v77_v27  ;;  %v5560_v54 = vld [vmem:[#allocation5_spill] sm:$0xff] }
  0xca   :  { %v503_v48 = vadd.s32 %v5552_v49, %v3109_v18  ;;  %v164_v38 = vmul.u32 5, %v163_v56  ;;  %v274_v11 = vsel %vm3180_vm1, 1, %v5515_v32  ;;  %v3336_v0 = vsub.s32 %v5560_v54, %v106_v12  ;;  %v5564_v56 = vld [vmem:[#allocation6_spill] sm:$0xff] }
  0xcb   :  { %v248_v35 = vadd.s32 %v247_v29, %v5553_v59  ;;  %vm3322_vm14 = vc.u32 %v5556_v44, %v5555_v14  ;;  %5559 = vst [vmem:[#allocation20_spill] sm:$0xff] %v3327_v10  ;;  %v221_v3 = vshrl.u32 %v220_v1, 2  ;;  %v276_v29 = vadd.s32 %v274_v11, %v272_v23  ;;  %v5575_v44 = vld [vmem:[#allocation7_spill] sm:$0xff]  ;;  %v5576_v11 = vld [vmem:[#allocation40_spill] sm:$0xff] }
  0xcc   :  { %v299_v46 = vsel %vm3191_vm2, 1, %v5515_v32  ;;  %v5561_v31 = vshll.u32 %v2940_v63, 16  ;;  %v3349_v8 = vsub.s32 %v5564_v56, %v135_v40  ;;  %v193_v20 = vmul.u32 5, %v192_v58  ;;  %v3395_v56 = vpop.f32.mrf.mxu3 }
  0xcd   :  { %v301_v12 = vadd.s32 %v299_v46, %v5565_v22  ;;  %v303_v1 = vsel %vm3205_vm3, 1, %v5515_v32  ;;  %vm3358_vm0 = vc.u32 %v3074_v62, %v5566_v19  ;;  %v5571_v40 = vshrl.u32 %v2810_v2, 16  ;;  %v5578_v46 = vld [vmem:[#allocation45_spill] sm:$0xff]  ;;  %v5582_v19 = vld [vmem:[#allocation48_spill] sm:$0xff] }
  0xce   :  { %vm3344_vm15 = vc.u32 %v2984_v36, %v5561_v31  ;;  %v5569_v36 = vld [vmem:[#allocation28_spill] sm:$0xff]  ;;  %v328_v58 = vsel %vm3217_vm4, 1, %v5515_v32  ;;  %v332_v26 = vsel %vm3224_vm5, 1, %v5515_v32  ;;  %v5572_v14 = vshll.u32 %v3076_v6, 16  ;;  %v5608_v6 = vld [vmem:[#allocation15_spill] sm:$0xff] }
  0xcf   :  { %v5570_v23 = vshrl.u32 %v5569_v36, 16  ;;  %v277_v59 = vadd.s32 %v276_v29, %v5571_v40  ;;  %v305_v2 = vadd.s32 %v303_v1, %v301_v12  ;;  %v330_v54 = vadd.s32 %v328_v58, %v5576_v11  ;;  %v5603_v62 = vld [vmem:[#allocation12_spill] sm:$0xff] }
  0xd0   :  { %vm3375_vm1 = vc.u32 %v3109_v18, %v5572_v14  ;;  %v357_v50 = vsel %vm3239_vm6, 1, %v5515_v32  ;;  %v5577_v9 = vshrl.u32 %v5484_v5, 16  ;;  %v361_v18 = vsel %vm3252_vm7, 1, %v5515_v32 }
  0xd1   :  { %v249_v49 = vadd.s32 %v248_v35, %v5570_v23  ;;  %v3380_v35 = vsub.s32 %v5575_v44, %v164_v38  ;;  %v359_v31 = vadd.s32 %v357_v50, %v5578_v46  ;;  %v386_v38 = vsel %vm3259_vm8, 1, %v5515_v32 }
  0xd2   :  { %v278_v29 = vadd.s32 %v277_v59, %v5577_v9  ;;  %vm3397_vm2 = vc.u32 %v503_v48, %v499_v60  ;;  %v222_v30 = vmul.u32 5, %v221_v3  ;;  %v5581_v5 = vshrl.u32 %v5490_v4, 16  ;;  %v5583_v48 = vld [vmem:[#allocation35_spill] sm:$0xff] }
  0xd3   :  { %v334_v1 = vadd.s32 %v332_v26, %v330_v54  ;;  %v388_v36 = vadd.s32 %v386_v38, %v5582_v19  ;;  %v250_v23 = vshrl.u32 %v249_v49, 2  ;;  %v363_v53 = vadd.s32 %v361_v18, %v359_v31  ;;  %v5586_v26 = vld [vmem:[#allocation50_spill] sm:$0xff] }
  0xd4   :  { %v306_v12 = vadd.s32 %v305_v2, %v5581_v5  ;;  %v390_v37 = vsel %vm3278_vm9, 1, %v5515_v32  ;;  %v415_v60 = vsel %vm3285_vm11, 1, %v5515_v32  ;;  %v5584_v40 = vshrl.u32 %v5583_v48, 16 }
  0xd5   :  { %v5585_v3 = vshrl.u32 %v5504_v61, 16  ;;  %v392_v58 = vadd.s32 %v390_v37, %v388_v36  ;;  %v417_v14 = vadd.s32 %v415_v60, %v5586_v26  ;;  %v279_v44 = vshrl.u32 %v278_v29, 2  ;;  %v5590_v29 = vld [vmem:[#allocation8_spill] sm:$0xff]  ;;  %v5595_v36 = vld [vmem:[#allocation9_spill] sm:$0xff]  ;;  %v898_v60 = vpop.f32.mrf.mxu3 }
  0xd6   :  { %v307_v59 = vadd.s32 %v306_v12, %v5584_v40  ;;  %v5587_v49 = vshrl.u32 %v2879_v13, 16  ;;  %v419_v7 = vsel %vm3299_vm12, 1, %v5515_v32  ;;  %v444_v47 = vsel %vm3306_vm13, 1, %v5515_v32 }
  0xd7   :  { %v335_v4 = vadd.s32 %v334_v1, %v5585_v3  ;;  %v5588_v54 = vshrl.u32 %v5509_v55, 16  ;;  %v5589_v50 = vshrl.u32 %v2893_v15, 16  ;;  %v421_v46 = vadd.s32 %v419_v7, %v417_v14  ;;  %v5598_v3 = vld [vmem:[#allocation53_spill] sm:$0xff] }
  0xd8   :  { %v364_v2 = vadd.s32 %v363_v53, %v5587_v49  ;;  %v308_v11 = vshrl.u32 %v307_v59, 2  ;;  %v3428_v31 = vsub.s32 %v5590_v29, %v193_v20  ;;  %v5591_v13 = vshrl.u32 %v5523_v24, 16 }
  0xd9   :  { %v336_v61 = vadd.s32 %v335_v4, %v5588_v54  ;;  %v393_v9 = vadd.s32 %v392_v58, %v5589_v50  ;;  %v446_v38 = vadd.s32 %v444_v47, %v5592_v28  ;;  %v448_v45 = vsel %vm3322_vm14, 1, %v5515_v32  ;;  %v5599_v58 = vld [vmem:[#allocation10_spill] sm:$0xff] }
  0xda   :  { %v365_v18 = vadd.s32 %v364_v2, %v5591_v13  ;;  %v251_v5 = vmul.u32 5, %v250_v23  ;;  %v5593_v55 = vshrl.u32 %v5536_v16, 16  ;;  %v5594_v15 = vshrl.u32 %v2902_v34, 16 }
  0xdb   :  { %v337_v12 = vshrl.u32 %v336_v61, 2  ;;  %v3441_v20 = vsub.s32 %v5595_v36, %v222_v30  ;;  %v450_v24 = vadd.s32 %v448_v45, %v446_v38  ;;  %v473_v37 = vsel %vm3344_vm15, 1, %v5515_v32 }
  0xdc   :  { %v394_v1 = vadd.s32 %v393_v9, %v5593_v55  ;;  %v422_v19 = vadd.s32 %v421_v46, %v5594_v15  ;;  %v366_v53 = vshrl.u32 %v365_v18, 2  ;;  %v280_v43 = vmul.u32 5, %v279_v44  ;;  %v5600_v44 = vld [vmem:[#allocation65_spill] sm:$0xff]  ;;  %v5606_v55 = vld [vmem:[#allocation14_spill] sm:$0xff] }
  0xdd   :  { %v309_v48 = vmul.u32 5, %v308_v11  ;;  %v5596_v23 = vshrl.u32 %v2924_v21, 16  ;;  %v477_v34 = vsel %vm3358_vm0, 1, %v5515_v32  ;;  %v5597_v30 = vshrl.u32 %v2919_v25, 16  ;;  %v5602_v11 = vld [vmem:[#allocation11_spill] sm:$0xff] }
  0xde   :  { %v395_v16 = vshrl.u32 %v394_v1, 2  ;;  %v475_v4 = vadd.s32 %v473_v37, %v5598_v3  ;;  %v502_v27 = vsel %vm3375_vm1, 1, %v5515_v32  ;;  %v3458_v26 = vsub.s32 %v5599_v58, %v251_v5  ;;  %v5605_v5 = vld [vmem:[#allocation13_spill] sm:$0xff]  ;;  %v5611_v58 = vld [vmem:[#allocation18_spill] sm:$0xff] }
  0xdf   :  { %v423_v40 = vadd.s32 %v422_v19, %v5596_v23  ;;  %v451_v59 = vadd.s32 %v450_v24, %v5597_v30  ;;  %v338_v14 = vmul.u32 5, %v337_v12  ;;  %v504_v49 = vadd.s32 %v502_v27, %v5600_v44  ;;  %v5612_v44 = vld [vmem:[#allocation19_spill] sm:$0xff] }
  0xe0   :  { %v367_v2 = vmul.u32 5, %v366_v53  ;;  %v5601_v41 = vshrl.u32 %v5554_v51, 16  ;;  %v479_v47 = vadd.s32 %v477_v34, %v475_v4  ;;  %v506_v25 = vsel %vm3397_vm2, 1, %v5515_v32 }
  0xe1   :  { %v424_v21 = vshrl.u32 %v423_v40, 2  ;;  %v3467_v54 = vsub.s32 %v5602_v11, %v280_v43  ;;  %v3470_v61 = vsub.s32 %v5603_v62, %v309_v48  ;;  %v508_v50 = vadd.s32 %v506_v25, %v504_v49  ;;  %v5609_v48 = vld [vmem:[#allocation16_spill] sm:$0xff] }
  0xe2   :  { %v452_v7 = vadd.s32 %v451_v59, %v5601_v41  ;;  %v519_v9 = vand.u32 65535, %v3327_v10  ;;  %v396_v46 = vmul.u32 5, %v395_v16  ;;  %v5604_v13 = vshrl.u32 %v2940_v63, 16  ;;  %v5676_v62 = vld [vmem:[#allocation64_spill] sm:$0xff] }
  0xe3   :  { %v520_v18 = vshrl.u32 %v3327_v10, 16  ;;  %v425_v28 = vmul.u32 5, %v424_v21  ;;  %v509_v22 = vadd.s32 %v508_v50, %v498_v52  ;;  %v3479_v12 = vsub.s32 %v5605_v5, %v338_v14 }
  0xe4   :  { %v453_v29 = vshrl.u32 %v452_v7, 2  ;;  %v480_v51 = vadd.s32 %v479_v47, %v5604_v13  ;;  %v522_v38 = vmul.u32 52429, %v519_v9  ;;  %v523_v45 = vmul.u32 52428, %v519_v9 }
  0xe5   :  { %v3482_v1 = vsub.s32 %v5606_v55, %v367_v2  ;;  %v5607_v15 = vshrl.u32 %v2986_v39, 16  ;;  %v524_v36 = vmul.u32 52429, %v520_v18  ;;  %v510_v53 = vadd.s32 %v509_v22, %v500_v33  ;;  %v5610_v33 = vld [vmem:[#allocation17_spill] sm:$0xff] }
  0xe6   :  { %v454_v63 = vmul.u32 5, %v453_v29  ;;  %v525_v24 = vmul.u32 52428, %v520_v18  ;;  %v526_v37 = vshll.u32 %v523_v45, 16  ;;  %v3489_v52 = vsub.s32 %v5608_v6, %v396_v46  ;;  %v5680_v29 = vld [vmem:[#allocation55_spill] sm:$0xff] }
  0xe7   :  { %v481_v19 = vadd.s32 %v480_v51, %v5607_v15  ;;  %v528_v43 = vshll.u32 %v524_v36, 16  ;;  %vm545_vm3 = vcmp.ne.s32.totalorder %v3330_v57, 0  ;;  %v3493_v23 = vsub.s32 %v5609_v48, %v425_v28  ;;  %v5684_v28 = vld [vmem:[#allocation63_spill] sm:$0xff]  ;;  %v5690_v15 = vld [vmem:[#allocation62_spill] sm:$0xff] }
  0xe8   :  { %v511_v40 = vshrl.u32 %v510_v53, 2  ;;  %vm530_vm4 = vc.u32 %v522_v38, %v526_v37  ;;  %v532_v39 = vadd.s32 %v526_v37, %v522_v38  ;;  %v527_v16 = vshrl.u32 %v523_v45, 16  ;;  %v5694_v53 = vld [vmem:[#allocation57_spill] sm:$0xff] }
  0xe9   :  { %v482_v60 = vshrl.u32 %v481_v19, 2  ;;  %v531_v42 = vsel %vm530_vm4, 1, %v5515_v32  ;;  %vm546_vm5 = vcmp.ne.s32.totalorder %v3336_v0, 0  ;;  %v3498_v30 = vsub.s32 %v5610_v33, %v454_v63  ;;  %v863_v33 = vpop.f32.mrf.mxu0 }
  0xea   :  { %v512_v59 = vmul.u32 5, %v511_v40  ;;  %v533_v3 = vadd.s32 %v531_v42, %v525_v24  ;;  %vm534_vm6 = vc.u32 %v532_v39, %v528_v43  ;;  %v529_v4 = vshrl.u32 %v524_v36, 16  ;;  %v886_v42 = vpop.f32.mrf.mxu2 }
  0xeb   :  { %v483_v34 = vmul.u32 5, %v482_v60  ;;  %v535_v27 = vsel %vm534_vm6, 1, %v5515_v32  ;;  %vm547_vm7 = vcmp.ne.s32.totalorder %v3349_v8, 0  ;;  %vm548_vm8 = vcmp.ne.s32.totalorder %v3380_v35, 0 }
  0xec   :  { %v537_v21 = vadd.s32 %v535_v27, %v533_v3  ;;  %vm549_vm9 = vcmp.ne.s32.totalorder %v3428_v31, 0  ;;  %v3509_v49 = vsub.s32 %v5612_v44, %v512_v59  ;;  %vm562_vm1 = vcmp.lt.s32.totalorder %v3330_v57, 0  ;;  %v5671_v3 = vld [vmem:[#allocation22_spill] sm:$0xff] }
  0xed   :  { %v3504_v14 = vsub.s32 %v5611_v58, %v483_v34  ;;  %vm563_vm4 = vcmp.lt.s32.totalorder %v3336_v0, 0  ;;  %vm564_vm6 = vcmp.lt.s32.totalorder %v3349_v8, 0  ;;  %vm565_vm10 = vcmp.lt.s32.totalorder %v3380_v35, 0  ;;  %vm3523_vm13 = vmand %vm562_vm1, %vm545_vm3 }
  0xee   :  { %v538_v32 = vadd.s32 %v537_v21, %v527_v16  ;;  %vm568_vm2 = vcmp.lt.s32.totalorder %v3458_v26, 0  ;;  %vm3533_vm12 = vmand %vm563_vm4, %vm546_vm5  ;;  %vm570_vm11 = vcmp.lt.s32.totalorder %v3470_v61, 0  ;;  %vm571_vm15 = vcmp.lt.s32.totalorder %v3479_v12, 0 }
  0xef   :  { %vm3544_vm14 = vmand %vm564_vm6, %vm547_vm7  ;;  %vm5621_vm3 = vcmp.lt.s32.totalorder %v3428_v31, 0  ;;  %v596_v50 = vadd.s32 5, %v3330_v57  ;;  %v597_v9 = vadd.s32 5, %v3336_v0  ;;  %v598_v13 = vadd.s32 5, %v3349_v8 }
  0xf0   :  { %v539_v41 = vadd.s32 %v538_v32, %v529_v4  ;;  %vm3556_vm0 = vmand %vm565_vm10, %vm548_vm8  ;;  %vm5624_vm10 = vcmp.ne.s32.totalorder %v3441_v20, 0  ;;  %vm5625_vm8 = vcmp.lt.s32.totalorder %v3441_v20, 0  ;;  %v599_v51 = vadd.s32 5, %v3380_v35 }
  0xf1   :  { %vm3567_vm4 = vmand %vm5621_vm3, %vm549_vm9  ;;  %v600_v18 = vadd.s32 5, %v3428_v31  ;;  %vm5628_vm9 = vcmp.ne.s32.totalorder %v3458_v26, 0  ;;  %v601_v22 = vadd.s32 5, %v3441_v20  ;;  %v602_v38 = vadd.s32 5, %v3458_v26 }
  0xf2   :  { %v540_v25 = vshrl.u32 %v539_v41, 2  ;;  %vm3577_vm7 = vmand %vm5625_vm8, %vm5624_vm10  ;;  %v603_v45 = vadd.s32 5, %v3467_v54  ;;  %v604_v5 = vadd.s32 5, %v3470_v61  ;;  %vm5631_vm10 = vcmp.ne.s32.totalorder %v3467_v54, 0  ;;  %v888_v59 = vpop.f32.mrf.mxu2 }
  0xf3   :  { %vm3588_vm3 = vmand %vm568_vm2, %vm5628_vm9  ;;  %vm5632_vm8 = vcmp.lt.s32.totalorder %v3467_v54, 0  ;;  %v605_v19 = vadd.s32 5, %v3479_v12  ;;  %v606_v36 = vadd.s32 5, %v3482_v1  ;;  %v607_v63 = vadd.s32 5, %v3489_v52 }
  0xf4   :  { %v541_v46 = vmul.u32 5, %v540_v25  ;;  %vm3601_vm5 = vmand %vm5632_vm8, %vm5631_vm10  ;;  %vm5635_vm2 = vcmp.ne.s32.totalorder %v3470_v61, 0  ;;  %v608_v24 = vadd.s32 5, %v3493_v23  ;;  %v609_v37 = vadd.s32 5, %v3498_v30  ;;  %v5674_v25 = vld [vmem:[#allocation56_spill] sm:$0xff] }
  0xf5   :  { %vm3612_vm9 = vmand %vm570_vm11, %vm5635_vm2  ;;  %v610_v6 = vadd.s32 5, %v3504_v14  ;;  %v611_v60 = vadd.s32 5, %v3509_v49  ;;  %vm5638_vm6 = vcmp.ne.s32.totalorder %v3479_v12, 0  ;;  %v3631_v40 = vsel %vm3523_vm13, %v596_v50, %v3330_v57 }
  0xf6   :  { %v542_v55 = vsub.s32 %v3327_v10, %v541_v46  ;;  %vm3624_vm1 = vmand %vm571_vm15, %vm5638_vm6  ;;  %5641 = vst [vmem:[#allocation21_spill] sm:$0xff] %v3631_v40  ;;  %vm5642_vm11 = vcmp.ne.s32.totalorder %v3482_v1, 0  ;;  %vm5643_vm2 = vcmp.lt.s32.totalorder %v3482_v1, 0  ;;  %v3640_v39 = vsel %vm3533_vm12, %v597_v9, %v3336_v0  ;;  %v5678_v9 = vld [vmem:[#allocation60_spill] sm:$0xff] }
  0xf7   :  { %vm589_vm10 = vmand %vm5643_vm2, %vm5642_vm11  ;;  %5644 = vst [vmem:[#allocation23_spill] sm:$0xff] %v3640_v39  ;;  %v3645_v34 = vsel %vm3544_vm14, %v598_v13, %v3349_v8  ;;  %v3650_v57 = vsel %vm3556_vm0, %v599_v51, %v3380_v35  ;;  %v3655_v16 = vsel %vm3567_vm4, %v600_v18, %v3428_v31  ;;  %vm5648_vm13 = vcmp.ne.s32.totalorder %v3489_v52, 0  ;;  %v5682_v51 = vld [vmem:[#allocation25_spill] sm:$0xff] }
  0xf8   :  { %vm578_vm8 = vcmp.lt.s32.totalorder %v542_v55, 0  ;;  %v612_v48 = vadd.s32 5, %v542_v55  ;;  %5645 = vst [vmem:[#allocation30_spill] sm:$0xff] %v3645_v34  ;;  %vm5649_vm12 = vcmp.lt.s32.totalorder %v3489_v52, 0  ;;  %v3664_v0 = vsel %vm3577_vm7, %v601_v22, %v3441_v20 }
  0xf9   :  { %5646 = vst [vmem:[#allocation37_spill] sm:$0xff] %v3650_v57  ;;  %vm590_vm15 = vmand %vm5649_vm12, %vm5648_vm13  ;;  %v3669_v8 = vsel %vm3588_vm3, %v602_v38, %v3458_v26  ;;  %v3674_v35 = vsel %vm3601_vm5, %v603_v45, %v3467_v54  ;;  %v3679_v31 = vsel %vm3612_vm9, %v604_v5, %v3470_v61  ;;  %vm5654_vm14 = vcmp.ne.s32.totalorder %v3493_v23, 0  ;;  %v5686_v38 = vld [vmem:[#allocation59_spill] sm:$0xff]  ;;  %v5688_v5 = vld [vmem:[#allocation54_spill] sm:$0xff] }
  0xfa   :  { %5647 = vst [vmem:[#allocation24_spill] sm:$0xff] %v3655_v16  ;;  %vm5655_vm0 = vcmp.lt.s32.totalorder %v3493_v23, 0  ;;  %v3688_v20 = vsel %vm3624_vm1, %v605_v19, %v3479_v12  ;;  %v3691_v26 = vsel %vm589_vm10, %v606_v36, %v3482_v1  ;;  %v3694_v54 = vsel %vm590_vm15, %v607_v63, %v3489_v52  ;;  %v5692_v36 = vld [vmem:[#allocation58_spill] sm:$0xff] }
  0xfb   :  { %5650 = vst [vmem:[#allocation31_spill] sm:$0xff] %v3664_v0  ;;  %vm591_vm4 = vmand %vm5655_vm0, %vm5654_vm14  ;;  %vm5659_vm7 = vcmp.ne.s32.totalorder %v3498_v30, 0  ;;  %vm5660_vm6 = vcmp.lt.s32.totalorder %v3498_v30, 0  ;;  %vm5662_vm11 = vcmp.ne.s32.totalorder %v3504_v14, 0  ;;  %vm5663_vm2 = vcmp.lt.s32.totalorder %v3504_v14, 0 }
  0xfc   :  { %5651 = vst [vmem:[#allocation34_spill] sm:$0xff] %v3669_v8  ;;  %vm592_vm3 = vmand %vm5660_vm6, %vm5659_vm7  ;;  %v3702_v61 = vsel %vm591_vm4, %v608_v24, %v3493_v23  ;;  %vm5665_vm0 = vcmp.ne.s32.totalorder %v3509_v49, 0  ;;  %vm5666_vm4 = vcmp.lt.s32.totalorder %v3509_v49, 0  ;;  %v897_v4 = vadd.f32 %v5671_v3, %v3395_v56  ;;  %v5672_v56 = vld [vmem:[#allocation61_spill] sm:$0xff] }
  0xfd   :  { %5652 = vst [vmem:[#allocation26_spill] sm:$0xff] %v3674_v35  ;;  %vm593_vm13 = vmand %vm5663_vm2, %vm5662_vm11  ;;  %v3712_v12 = vsel %vm592_vm3, %v609_v37, %v3498_v30  ;;  %vm5668_vm2 = vcmp.ne.s32.totalorder %v542_v55, 0  ;;  %v873_v30 = vpop.f32.mrf.mxu1  ;;  %vm710_vm15 = vcmp.ne.s32.totalorder %v3702_v61, 4  ;;  %v864_v27 = vadd.f32 %v5671_v3, %v863_v33 }
  0xfe   :  { %5653 = vst [vmem:[#allocation41_spill] sm:$0xff] %v3679_v31  ;;  %vm594_vm7 = vmand %vm5666_vm4, %vm5665_vm0  ;;  %v3722_v1 = vsel %vm593_vm13, %v610_v6, %v3504_v14  ;;  %vm663_vm4 = vcmp.lt.s32.totalorder %v3327_v10, 130  ;;  %v874_v58 = vadd.f32 %v5671_v3, %v873_v30  ;;  %v887_v14 = vadd.f32 %v5671_v3, %v886_v42 }
  0xff   :  { %5656 = vst [vmem:[#allocation27_spill] sm:$0xff] %v3688_v20  ;;  %vm595_vm10 = vmand %vm578_vm8, %vm5668_vm2  ;;  %v3730_v52 = vsel %vm594_vm7, %v611_v60, %v3509_v49  ;;  %vm709_vm2 = vcmp.ne.s32.totalorder %v3694_v54, 4  ;;  %v889_v21 = vadd.f32 %v5671_v3, %v888_v59  ;;  %v916_v44 = vmax.f32 %v897_v4, 0.0 }
 0x100   :  { %5657 = vst [vmem:[#allocation32_spill] sm:$0xff] %v3691_v26  ;;  %v3735_v23 = vsel %vm595_vm10, %v612_v48, %v542_v55  ;;  %vm712_vm10 = vcmp.ne.s32.totalorder %v3722_v1, 4  ;;  %v903_v49 = vmax.f32 %v864_v27, 0.0   ;;  %v907_v32 = vmax.f32 %v874_v58, 0.0  }
 0x101   :  { %5658 = vst [vmem:[#allocation38_spill] sm:$0xff] %v3694_v54  ;;  %v912_v2 = vmax.f32 %v887_v14, 0.0   ;;  %v913_v41 = vmax.f32 %v889_v21, 0.0   ;;  %v967_v7 = vsel %vm663_vm4, %v916_v44, 0.0   ;;  %v5673_v47 = vmax.f32 %v5672_v56, 0.0  }
 0x102   :  { %5661 = vst [vmem:[#allocation36_spill] sm:$0xff] %v3702_v61  ;;  %v5675_v11 = vmax.f32 %v5674_v25, 0.0   ;;  %v5677_v50 = vmax.f32 %v5676_v62, 0.0   ;;  %v5679_v46 = vmax.f32 %v5678_v9, 0.0   ;;  %v5681_v13 = vmax.f32 %v5680_v29, 0.0  }
 0x103   :  { %5664 = vst [vmem:[#allocation43_spill] sm:$0xff] %v3712_v12  ;;  %v5683_v18 = vmax.f32 %v5682_v51, 0.0   ;;  %v5685_v22 = vmax.f32 %v5684_v28, 0.0   ;;  %v5687_v45 = vmax.f32 %v5686_v38, 0.0   ;;  %v5689_v55 = vmax.f32 %v5688_v5, 0.0  }
 0x104   :  { %5667 = vst [vmem:[#allocation44_spill] sm:$0xff] %v3722_v1  ;;  %v5691_v19 = vmax.f32 %v5690_v15, 0.0   ;;  %v5693_v63 = vmax.f32 %v5692_v36, 0.0  }
 0x105   :  { %5669 = vst [vmem:[#allocation42_spill] sm:$0xff] %v3730_v52 }
 0x106   :  { %5670 = vst [vmem:[#allocation47_spill] sm:$0xff] %v3735_v23 }
 0x107 LB: > { %v5696_v57 = vld [vmem:[#allocation37_spill] sm:$0xff]  ;;  %v5697_v16 = vld [vmem:[#allocation24_spill] sm:$0xff]  ;;  %v5698_v8 = vld [vmem:[#allocation34_spill] sm:$0xff]  ;;  %5711 = vst [vmem:[#allocation66_spill] sm:$0xff] %v2472_v11  ;;  %s2110_s16 = sshll.u32 %s2532_s2, 4  ;;  %s3885_s19 = scalar_lea.vmem %s5175_s4, %s2532_s2  ;;  %v1193_v15 = vrot.slane %v2496_v18, 3  ;;  %v2524_v63 = vphi %v5693_v63, %v5898_v63   ;;  %v2520_v19 = vphi %v5691_v19, %v5897_v19   ;;  %v2516_v49 = vphi %v903_v49, %v5896_v49   ;;  %v2512_v55 = vphi %v5689_v55, %v5895_v55   ;;  %v2508_v45 = vphi %v5687_v45, %v5894_v45   ;;  %v2504_v22 = vphi %v5685_v22, %v5893_v22   ;;  %v2500_v32 = vphi %v907_v32, %v5892_v32   ;;  %v2496_v18 = vphi %v5683_v18, %v5891_v18   ;;  %v2492_v13 = vphi %v5681_v13, %v5890_v13   ;;  %v2488_v46 = vphi %v5679_v46, %v5889_v46   ;;  %v2484_v50 = vphi %v5677_v50, %v5888_v50   ;;  %v2480_v2 = vphi %v912_v2, %v5887_v2   ;;  %v2476_v41 = vphi %v913_v41, %v5886_v41   ;;  %v2472_v11 = vphi %v5675_v11, %v5885_v11   ;;  %v2468_v47 = vphi %v5673_v47, %v5884_v47   ;;  %v2464_v7 = vphi %v967_v7, %v5883_v7   ;;  %s2532_s2 = sphi %s3824_s2, %s973_s2   ;;  %v2528_v53 = vphi %v5694_v53, %v5899_v53  }
 0x108   : > { %v5695_v54 = vld [vmem:[#allocation38_spill] sm:$0xff]  ;;  %v5699_v0 = vld [vmem:[#allocation31_spill] sm:$0xff]  ;;  %v5700_v40 = vld [vmem:[#allocation21_spill] sm:$0xff]  ;;  %5712 = vst [vmem:[#allocation67_spill] sm:$0xff] %v2476_v41  ;;  %s3910_s22 = scalar_lea.vmem %s5174_s3, %s2110_s16  ;;  %s2158_s23 = sshll.u32 %s2532_s2, 6 }
 0x109   : > { %v5701_v39 = vld [vmem:[#allocation23_spill] sm:$0xff]  ;;  %v5702_v34 = vld [vmem:[#allocation30_spill] sm:$0xff]  ;;  %v5708_v31 = vld [vmem:[#allocation41_spill] sm:$0xff]  ;;  %5713 = vst [vmem:[#allocation68_spill] sm:$0xff] %v2496_v18  ;;  %s3922_s1 = scalar_lea.vmem %s5176_s5, %s2158_s23  ;;  %s1740_s28 = scalar_lea.vmem %s5177_s6, %s2532_s2 }
 0x10a   : > { %v5705_v12 = vld [vmem:[#allocation43_spill] sm:$0xff]  ;;  %v5707_v35 = vld [vmem:[#allocation26_spill] sm:$0xff]  ;;  %v5709_v26 = vld [vmem:[#allocation32_spill] sm:$0xff]  ;;  %5714 = vst [vmem:[#allocation69_spill] sm:$0xff] %v2500_v32  ;;  %vm5718_vm11 = vcmp.ne.s32.totalorder %v5708_v31, 0  ;;  %vm5726_vm12 = vcmp.ne.s32.totalorder %v5708_v31, 4 }
 0x10b   : > { %v5706_v1 = vld [vmem:[#allocation44_spill] sm:$0xff]  ;;  %v5710_v20 = vld [vmem:[#allocation27_spill] sm:$0xff]  ;;  %5715 = vst [vmem:[#allocation70_spill] sm:$0xff] %v2508_v45  ;;  %vm5716_vm6 = vcmp.ne.s32.totalorder %v5707_v35, 0  ;;  %v3895_v37 = vsel %vm5718_vm11, %v2496_v18, 0.0  ;;  %vm5722_vm14 = vcmp.ne.s32.totalorder %v5709_v26, 0 }
 0x10c   : > { %v5704_v52 = vld [vmem:[#allocation42_spill] sm:$0xff]  ;;  %v3890_v24 = vsel %vm5716_vm6, %v2500_v32, 0.0  ;;  %5719 = vst [vmem:[#allocation72_spill] sm:$0xff] %v3895_v37  ;;  %vm5720_vm3 = vcmp.ne.s32.totalorder %v5710_v20, 0  ;;  %v3905_v60 = vsel %vm5722_vm14, %v2488_v46, 0.0  ;;  %vm5724_vm5 = vcmp.ne.s32.totalorder %v5707_v35, 4 }
 0x10d   : > { %v5703_v23 = vld [vmem:[#allocation47_spill] sm:$0xff]  ;;  %5717 = vst [vmem:[#allocation71_spill] sm:$0xff] %v3890_v24  ;;  %v3900_v6 = vsel %vm5720_vm3, %v2492_v13, 0.0  ;;  %v3916_v43 = vsel %vm5724_vm5, %v2500_v32, 0.0  ;;  %v993_v48 = vld [vmem:[%s3910_s22] sm:$0xff]  ;;  %v3927_v42 = vsel %vm5726_vm12, %v2496_v18, 0.0 }
 0x10e   : > { %5721 = vst [vmem:[#allocation73_spill] sm:$0xff] %v3900_v6  ;;  %v3929_v33 = vperm.slane %v993_v48, 4  ;;  %v3931_v30 = vperm.slane %v993_v48, 0  ;;  %v3933_v59 = vperm.slane %v993_v48, 1  ;;  %v3935_v3 = vperm.slane %v993_v48, 2  ;;  %v2166_v4 = vld [vmem:[%s3922_s1 + $0x38] sm:$0xff] }
 0x10f   : > { %5723 = vst [vmem:[#allocation74_spill] sm:$0xff] %v3905_v60  ;;  %v3942_v27 = vperm.slane %v993_v48, 3  ;;  %v3944_v58 = vperm.slane %v993_v48, 5  ;;  %v3946_v14 = vperm.slane %v993_v48, 6  ;;  %v3948_v21 = vperm.slane %v993_v48, 7  ;;  %2183 = vmatpush.bf16.msra.mxu2 %v2166_v4  ;;  %v2165_v44 = vld [vmem:[%s3922_s1 + $0x30] sm:$0xff]  ;;  %2184 = vmatpush.bf16.msra.mxu3 %v2166_v4 }
 0x110   : > { %5725 = vst [vmem:[#allocation75_spill] sm:$0xff] %v3916_v43  ;;  %vm5728_vm1 = vcmp.ne.s32.totalorder %v5710_v20, 4  ;;  %vm5729_vm8 = vcmp.ne.s32.totalorder %v5709_v26, 4  ;;  %v1106_v62 = vmul.f32 %v2496_v18, %v3929_v33  ;;  %v1107_v9 = vmul.f32 %v2492_v13, %v3929_v33  ;;  %1793 = vmatpush.bf16.msra.mxu0 %v2166_v4  ;;  %2182 = vmatpush.bf16.msra.mxu1 %v2166_v4  ;;  %v2164_v38 = vld [vmem:[%s3922_s1 + $0x28] sm:$0xff]  ;;  %s973_s2 = sadd.s32 1, %s2532_s2  }
 0x111   : > { %5727 = vst [vmem:[#allocation76_spill] sm:$0xff] %v3927_v42  ;;  %v3954_v56 = vsel %vm5728_vm1, %v2492_v13, 0.0  ;;  %v3959_v25 = vsel %vm5729_vm8, %v2488_v46, 0.0  ;;  %v5245_v29 = vrot.slane %v3916_v43, 2  ;;  %v1123_v51 = vrot.slane %v3927_v42, 2  ;;  %p5076_p0 = scmp.ge.s32.totalorder %s973_s2, 4  }
 0x112   : > { %v5242_v28 = vrot.slane %v3954_v56, 2  ;;  %vm1132_vm1 = vcmp.lt.s32.totalorder %v2638_v17, 6  ;;  %v5251_v4 = vrot.slane %v2492_v13, 3  ;;  %vm1202_vm3 = vcmp.lt.s32.totalorder %v2638_v17, 5 }
 0x113   : > { %v1141_v48 = vsel %vm1132_vm1, %v5245_v29, %v1123_v51  ;;  %2186 = vmatpush.bf16.msra.mxu2 %v2165_v44  ;;  %2187 = vmatpush.bf16.msra.mxu3 %v2165_v44  ;;  %v5730_v26 = vrot.slane %v2500_v32, 3  ;;  %vm1272_vm5 = vcmp.lt.s32.totalorder %v2638_v17, 4  ;;  %v1333_v32 = vrot.slane %v3927_v42, 7 }
 0x114   : > { %v1140_v36 = vsel %vm1132_vm1, %v1123_v51, %v5242_v28  ;;  %v1159_v5 = vmul.f32 %v3931_v30, %v1141_v48  ;;  %1794 = vmatpush.bf16.msra.mxu0 %v2165_v44  ;;  %2185 = vmatpush.bf16.msra.mxu1 %v2165_v44  ;;  %v1210_v51 = vsel %vm1202_vm3, %v1193_v15, %v5251_v4  ;;  %v1263_v48 = vrot.slane %v3895_v37, 4 }
 0x115   : > { %v1160_v20 = vmul.f32 %v3931_v30, %v1140_v36  ;;  %v1211_v28 = vsel %vm1202_vm3, %v5730_v26, %v1193_v15  ;;  %v5257_v36 = vrot.slane %v3900_v6, 4  ;;  %v1230_v26 = vmul.f32 %v3933_v59, %v1210_v51 }
 0x116   : > { %v1229_v29 = vmul.f32 %v3933_v59, %v1211_v28  ;;  %v1176_v35 = vadd.f32 %v1159_v5, %v1106_v62  ;;  %v5255_v44 = vrot.slane %v3916_v43, 7  ;;  %v5254_v15 = vrot.slane %v3954_v56, 7  ;;  %v2163_v28 = vld [vmem:[%s3922_s1 + $0x20] sm:$0xff] }
 0x117   : > { %v1177_v10 = vadd.f32 %v1160_v20, %v1107_v9  ;;  %2189 = vmatpush.bf16.msra.mxu2 %v2164_v38  ;;  %2190 = vmatpush.bf16.msra.mxu3 %v2164_v38  ;;  %v1280_v20 = vsel %vm1272_vm5, %v1263_v48, %v5257_v36  ;;  %vm1342_vm6 = vcmp.lt.s32.totalorder %v2638_v17, 1  ;;  %v5731_v62 = vrot.slane %v3890_v24, 4 }
 0x118   : > { %v1246_v4 = vadd.f32 %v1229_v29, %v1176_v35  ;;  %1795 = vmatpush.bf16.msra.mxu0 %v2164_v38  ;;  %2188 = vmatpush.bf16.msra.mxu1 %v2164_v38  ;;  %v1300_v5 = vmul.f32 %v3935_v3, %v1280_v20  ;;  %v5256_v35 = vrot.slane %v3895_v37, 1  ;;  %v1351_v38 = vsel %vm1342_vm6, %v5255_v44, %v1333_v32 }
 0x119   : > { %v1247_v61 = vadd.f32 %v1230_v26, %v1177_v10  ;;  %v1281_v9 = vsel %vm1272_vm5, %v5731_v62, %v1263_v48  ;;  %v1350_v10 = vsel %vm1342_vm6, %v1333_v32, %v5254_v15  ;;  %v1404_v48 = vrot.slane %v3900_v6, 1  ;;  %v2162_v15 = vld [vmem:[%s3922_s1 + $0x18] sm:$0xff] }
 0x11a   : > { %v1299_v29 = vmul.f32 %v3935_v3, %v1281_v9  ;;  %v1370_v51 = vmul.f32 %v3942_v27, %v1350_v10  ;;  %v1369_v20 = vmul.f32 %v3942_v27, %v1351_v38  ;;  %v5259_v62 = vrot.slane %v3905_v60, 1 }
 0x11b   : > { %v1317_v26 = vadd.f32 %v1300_v5, %v1247_v61  ;;  %vm1412_vm8 = vcmp.lt.s32.totalorder %v2638_v17, 7  ;;  %2192 = vmatpush.bf16.msra.mxu2 %v2163_v28  ;;  %2193 = vmatpush.bf16.msra.mxu3 %v2163_v28  ;;  %v5258_v10 = vrot.slane %v3927_v42, 4  ;;  %v1474_v44 = vrot.slane %v3954_v56, 4 }
 0x11c   : > { %v1316_v9 = vadd.f32 %v1299_v29, %v1246_v4  ;;  %v1420_v32 = vsel %vm1412_vm8, %v5256_v35, %v1404_v48  ;;  %1796 = vmatpush.bf16.msra.mxu0 %v2163_v28  ;;  %2191 = vmatpush.bf16.msra.mxu1 %v2163_v28  ;;  %v1419_v5 = vsel %vm1412_vm8, %v1404_v48, %v5259_v62  ;;  %v5260_v29 = vrot.slane %v3959_v25, 4  ;;  %v4059_v62 = vld [vmem:[%s3910_s22 + $0x8] ss:$0 sm:$0xff] }
 0x11d   : > { %v1387_v61 = vadd.f32 %v1370_v51, %v1317_v26  ;;  %v1439_v4 = vmul.f32 %v3944_v58, %v1420_v32  ;;  %v1440_v35 = vmul.f32 %v3944_v58, %v1419_v5  ;;  %v1489_v36 = vsel %vm1272_vm5, %v5258_v10, %v1474_v44 }
 0x11e   : > { %v1386_v38 = vadd.f32 %v1369_v20, %v1316_v9  ;;  %v5262_v28 = vrot.slane %v2496_v18, 5  ;;  %v1488_v51 = vsel %vm1272_vm5, %v1474_v44, %v5260_v29  ;;  %v1508_v48 = vmul.f32 %v3946_v14, %v1489_v36  ;;  %v2161_v9 = vld [vmem:[%s3922_s1 + $0x10] sm:$0xff] }
 0x11f   : > { %v1543_v26 = vrot.slane %v2492_v13, 5  ;;  %v5261_v20 = vrot.slane %v2488_v46, 5  ;;  %2195 = vmatpush.bf16.msra.mxu2 %v2162_v15  ;;  %2196 = vmatpush.bf16.msra.mxu3 %v2162_v15  ;;  %v1457_v5 = vadd.f32 %v1440_v35, %v1387_v61  ;;  %v1509_v10 = vmul.f32 %v3946_v14, %v1488_v51 }
 0x120   : > { %v1456_v32 = vadd.f32 %v1439_v4, %v1386_v38  ;;  %vm1551_vm11 = vcmp.lt.s32.totalorder %v2638_v17, 3  ;;  %1797 = vmatpush.bf16.msra.mxu0 %v2162_v15  ;;  %2194 = vmatpush.bf16.msra.mxu1 %v2162_v15  ;;  %v5263_v35 = vrot.slane %v3895_v37, 6  ;;  %v1613_v61 = vrot.slane %v3900_v6, 6 }
 0x121   : > { %v1558_v36 = vsel %vm1551_vm11, %v1543_v26, %v5261_v20  ;;  %v1559_v44 = vsel %vm1551_vm11, %v5262_v28, %v1543_v26  ;;  %v1526_v38 = vadd.f32 %v1509_v10, %v1457_v5  ;;  %v5264_v29 = vrot.slane %v3905_v60, 6  ;;  %v2160_v26 = vld [vmem:[%s3922_s1 + $0x8] sm:$0xff] }
 0x122   : > { %v1525_v4 = vadd.f32 %v1508_v48, %v1456_v32  ;;  %v1578_v51 = vmul.f32 %v3948_v21, %v1559_v44  ;;  %v1579_v15 = vmul.f32 %v3948_v21, %v1558_v36  ;;  %vm1621_vm12 = vcmp.lt.s32.totalorder %v2638_v17, 2  ;;  %v4091_v32 = vld [vmem:[%s3885_s19] ss:$0 sm:$0xff] }
 0x123   : > { %vm5732_vm13 = vcmp.ne.s32.totalorder %v5705_v12, 0  ;;  %2198 = vmatpush.bf16.msra.mxu2 %v2161_v9  ;;  %2199 = vmatpush.bf16.msra.mxu3 %v2161_v9  ;;  %v1629_v10 = vsel %vm1621_vm12, %v5263_v35, %v1613_v61  ;;  %vm5734_vm14 = vcmp.ne.s32.totalorder %v5706_v1, 0  ;;  %v1628_v5 = vsel %vm1621_vm12, %v1613_v61, %v5264_v29  ;;  %v2159_v29 = vld [vmem:[%s3922_s1] sm:$0xff]  ;;  %s1978_s1 = sshll.u32 (%p5076_p0), %s5180_s9, 4  ;;  %s1979_s1 = int_to_ptr.hbm [resolvable:$true] %s1978_s1 }
 0x124   : > { %v4078_v20 = vsel %vm5732_vm13, %v2476_v41, 0.0  ;;  %v1595_v28 = vadd.f32 %v1578_v51, %v1525_v4  ;;  %v1596_v31 = vadd.f32 %v1579_v15, %v1526_v38  ;;  %v4088_v48 = vsel %vm5734_vm14, %v2472_v11, 0.0  ;;  %1798 = vmatpush.bf16.msra.mxu0 %v2161_v9  ;;  %2197 = vmatpush.bf16.msra.mxu1 %v2161_v9 }
 0x125   : > { %5733 = vst [vmem:[#allocation77_spill] sm:$0xff] %v4078_v20  ;;  %v1648_v36 = vmul.f32 %v4059_v62, %v1629_v10  ;;  %vm5736_vm13 = vcmp.ne.s32.totalorder %v5704_v52, 0  ;;  %vm5737_vm14 = vcmp.ne.s32.totalorder %v5703_v23, 0  ;;  %v1649_v38 = vmul.f32 %v4059_v62, %v1628_v5 }
 0x126   : > { %5735 = vst [vmem:[#allocation78_spill] sm:$0xff] %v4088_v48  ;;  %v4101_v44 = vsel %vm5736_vm13, %v2468_v47, 0.0  ;;  %v4106_v4 = vsel %vm5737_vm14, %v2464_v7, 0.0  ;;  %vm5738_vm0 = vcmp.ne.s32.totalorder %v5705_v12, 4  ;;  %v4117_v9 = vsel %vm712_vm10, %v2472_v11, 0.0 }
 0x127   : > { %v4112_v61 = vsel %vm5738_vm0, %v2476_v41, 0.0  ;;  %5740 = vst [vmem:[#allocation80_spill] sm:$0xff] %v4117_v9  ;;  %vm5741_vm9 = vcmp.ne.s32.totalorder %v5704_v52, 4  ;;  %v1665_v15 = vadd.f32 %v1648_v36, %v1595_v28  ;;  %vm5742_vm7 = vcmp.ne.s32.totalorder %v5703_v23, 4  ;;  %2201 = vmatpush.bf16.msra.mxu2 %v2160_v26  ;;  %2202 = vmatpush.bf16.msra.mxu3 %v2160_v26 }
 0x128   : > { %5739 = vst [vmem:[#allocation79_spill] sm:$0xff] %v4112_v61  ;;  %v4122_v51 = vsel %vm5741_vm9, %v2468_v47, 0.0  ;;  %v4127_v10 = vsel %vm5742_vm7, %v2464_v7, 0.0  ;;  %v1112_v5 = vmul.f32 %v2472_v11, %v3929_v33  ;;  %v1113_v35 = vmul.f32 %v2468_v47, %v3929_v33  ;;  %1799 = vmatpush.bf16.msra.mxu0 %v2160_v26  ;;  %2200 = vmatpush.bf16.msra.mxu1 %v2160_v26 }
 0x129   : > { %v1666_v1 = vadd.f32 %v1649_v38, %v1596_v31  ;;  %v5281_v12 = vrot.slane %v4112_v61, 2  ;;  %v1129_v52 = vrot.slane %v4117_v9, 2  ;;  %v5282_v28 = vrot.slane %v4122_v51, 2 }
 0x12a   : > { %v1687_v36 = vadd.f32 %v4091_v32, %v1665_v15  ;;  %v1199_v42 = vrot.slane %v2472_v11, 3  ;;  %v5288_v26 = vrot.slane %v2468_v47, 3  ;;  %v5743_v24 = vrot.slane %v2476_v41, 3 }
 0x12b   : > { %v1688_v37 = vadd.f32 %v4091_v32, %v1666_v1  ;;  %v1134_v31 = vsel %vm1132_vm1, %v1129_v52, %v5282_v28  ;;  %v1135_v38 = vsel %vm1132_vm1, %v5281_v12, %v1129_v52  ;;  %2204 = vmatpush.bf16.msra.mxu2 %v2159_v29  ;;  %2205 = vmatpush.bf16.msra.mxu3 %v2159_v29  ;;  %v5289_v60 = vrot.slane %v4112_v61, 7 }
 0x12c   : > { %v1704_v15 = vmax.f32 %v1687_v36, 0.0  ;;  %v1165_v23 = vmul.f32 %v3931_v30, %v1135_v38  ;;  %v1166_v18 = vmul.f32 %v3931_v30, %v1134_v31  ;;  %v1205_v1 = vsel %vm1202_vm3, %v5743_v24, %v1199_v42  ;;  %1800 = vmatpush.bf16.msra.mxu0 %v2159_v29  ;;  %2203 = vmatpush.bf16.msra.mxu1 %v2159_v29 }
 0x12d   : > { %v1705_v43 = vmax.f32 %v1688_v37, 0.0  ;;  %v1204_v52 = vsel %vm1202_vm3, %v1199_v42, %v5288_v26  ;;  %v1235_v12 = vmul.f32 %v3933_v59, %v1205_v1  ;;  %v5290_v36 = vrot.slane %v4078_v20, 4 }
 0x12e   : > { %v1182_v31 = vadd.f32 %v1165_v23, %v1112_v5  ;;  %v1183_v38 = vadd.f32 %v1166_v18, %v1113_v35  ;;  %v1236_v28 = vmul.f32 %v3933_v59, %v1204_v52  ;;  %v1269_v24 = vrot.slane %v4088_v48, 4 }
 0x12f   : > { %v1717_v41 = vpack.c.bf16 %v1705_v43, %v1704_v15  ;;  %v5300_v37 = vrot.slane %v4101_v44, 4  ;;  %v1339_v23 = vrot.slane %v4117_v9, 7  ;;  %v5299_v35 = vrot.slane %v4122_v51, 7 }
 0x130   : > { %v1252_v42 = vadd.f32 %v1235_v12, %v1182_v31  ;;  %v1253_v26 = vadd.f32 %v1236_v28, %v1183_v38  ;;  %v1275_v29 = vsel %vm1272_vm5, %v5290_v36, %v1269_v24  ;;  %v5293_v12 = vrot.slane %v4088_v48, 1 }
 0x131   : > { %1821 = vmatmul.bf16.vlgmr.msra.gmra.mxu2 %v1717_v41  ;;  %v1274_v18 = vsel %vm1272_vm5, %v1269_v24, %v5300_v37  ;;  %v1305_v43 = vmul.f32 %v3935_v3, %v1275_v29  ;;  %v1345_v28 = vsel %vm1342_vm6, %v5289_v60, %v1339_v23  ;;  %v1410_v41 = vrot.slane %v4101_v44, 1 }
 0x132   : > { %v1306_v5 = vmul.f32 %v3935_v3, %v1274_v18  ;;  %v5291_v15 = vrot.slane %v4106_v4, 1  ;;  %v1344_v52 = vsel %vm1342_vm6, %v1339_v23, %v5299_v35  ;;  %v1375_v31 = vmul.f32 %v3942_v27, %v1345_v28 }
 0x133   : > { %v1322_v1 = vadd.f32 %v1305_v43, %v1252_v42  ;;  %v5292_v38 = vrot.slane %v4117_v9, 4  ;;  %v1376_v29 = vmul.f32 %v3942_v27, %v1344_v52  ;;  %v1414_v42 = vsel %vm1412_vm8, %v5293_v12, %v1410_v41 }
 0x134   : > { %v1323_v24 = vadd.f32 %v1306_v5, %v1253_v26  ;;  %v1413_v18 = vsel %vm1412_vm8, %v1410_v41, %v5291_v15  ;;  %v1445_v23 = vmul.f32 %v3944_v58, %v1414_v42  ;;  %v1480_v60 = vrot.slane %v4122_v51, 4 }
 0x135   : > { %v1392_v43 = vadd.f32 %v1375_v31, %v1322_v1  ;;  %v1446_v28 = vmul.f32 %v3944_v58, %v1413_v18  ;;  %v5298_v5 = vrot.slane %v4127_v10, 4  ;;  %v5294_v52 = vrot.slane %v2472_v11, 5 }
 0x136   : > { %v1393_v26 = vadd.f32 %v1376_v29, %v1323_v24  ;;  %v1549_v36 = vrot.slane %v2468_v47, 5  ;;  %v1483_v41 = vsel %vm1272_vm5, %v5292_v38, %v1480_v60  ;;  %v5295_v1 = vrot.slane %v2464_v7, 5 }
 0x137   : > { %v1462_v15 = vadd.f32 %v1445_v23, %v1392_v43  ;;  %v5296_v31 = vrot.slane %v4088_v48, 6  ;;  %v1482_v24 = vsel %vm1272_vm5, %v1480_v60, %v5298_v5  ;;  %v1514_v29 = vmul.f32 %v3946_v14, %v1483_v41 }
 0x138   : > { %v1463_v18 = vadd.f32 %v1446_v28, %v1393_v26  ;;  %v1553_v42 = vsel %vm1551_vm11, %v5294_v52, %v1549_v36  ;;  %v1515_v43 = vmul.f32 %v3946_v14, %v1482_v24  ;;  %v1552_v23 = vsel %vm1551_vm11, %v1549_v36, %v5295_v1 }
 0x139   : > { %v1584_v28 = vmul.f32 %v3948_v21, %v1553_v42  ;;  %v1619_v26 = vrot.slane %v4101_v44, 6  ;;  %v1531_v38 = vadd.f32 %v1514_v29, %v1462_v15  ;;  %v1585_v60 = vmul.f32 %v3948_v21, %v1552_v23 }
 0x13a   : > { %v5297_v41 = vrot.slane %v4106_v4, 6  ;;  %v1532_v12 = vadd.f32 %v1515_v43, %v1463_v18  ;;  %vm5744_vm13 = vcmp.ne.s32.totalorder %v5700_v40, 0  ;;  %vm5745_vm14 = vcmp.ne.s32.totalorder %v5701_v39, 0 }
 0x13b   : > { %v1623_v24 = vsel %vm1621_vm12, %v5296_v31, %v1619_v26  ;;  %v1601_v52 = vadd.f32 %v1584_v28, %v1531_v38  ;;  %v4245_v18 = vsel %vm5744_vm13, %v2528_v53, 0.0  ;;  %v4250_v38 = vsel %vm5745_vm14, %v2524_v63, 0.0 }
 0x13c   : > { %v1622_v36 = vsel %vm1621_vm12, %v1619_v26, %v5297_v41  ;;  %v1654_v42 = vmul.f32 %v4059_v62, %v1623_v24  ;;  %v1602_v1 = vadd.f32 %v1585_v60, %v1532_v12  ;;  %vm5746_vm0 = vcmp.ne.s32.totalorder %v5702_v34, 0 }
 0x13d   : > { %v1655_v15 = vmul.f32 %v4059_v62, %v1622_v36  ;;  %v4255_v43 = vsel %vm5746_vm0, %v2520_v19, 0.0  ;;  %vm5747_vm7 = vcmp.ne.s32.totalorder %v5700_v40, 4  ;;  %vm5748_vm13 = vcmp.ne.s32.totalorder %v5701_v39, 4 }
 0x13e   : > { %v1671_v29 = vadd.f32 %v1654_v42, %v1601_v52  ;;  %v4260_v12 = vsel %vm5747_vm7, %v2528_v53, 0.0  ;;  %v4265_v52 = vsel %vm5748_vm13, %v2524_v63, 0.0  ;;  %vm5749_vm14 = vcmp.ne.s32.totalorder %v5702_v34, 4 }
 0x13f   : > { %v1672_v23 = vadd.f32 %v1655_v15, %v1602_v1  ;;  %v4270_v28 = vsel %vm5749_vm14, %v2520_v19, 0.0  ;;  %v1098_v1 = vmul.f32 %v2528_v53, %v3929_v33  ;;  %v1099_v60 = vmul.f32 %v2524_v63, %v3929_v33 }
 0x140   : > { %v1693_v26 = vadd.f32 %v4091_v32, %v1671_v29  ;;  %v1115_v24 = vrot.slane %v4260_v12, 2  ;;  %v5307_v42 = vrot.slane %v4265_v52, 2  ;;  %v1185_v31 = vrot.slane %v2528_v53, 3 }
 0x141   : > { %v1694_v36 = vadd.f32 %v4091_v32, %v1672_v23  ;;  %v5750_v5 = vrot.slane %v4127_v10, 2  ;;  %v5309_v35 = vrot.slane %v2524_v63, 3  ;;  %v5316_v37 = vrot.slane %v2464_v7, 3 }
 0x142   : > { %v1710_v41 = vmax.f32 %v1693_v26, 0.0  ;;  %v1148_v23 = vsel %vm1132_vm1, %v1115_v24, %v5307_v42  ;;  %v1255_v34 = vrot.slane %v4245_v18, 4  ;;  %v5311_v39 = vrot.slane %v4250_v38, 4 }
 0x143   : > { %v1149_v29 = vsel %vm1132_vm1, %v5750_v5, %v1115_v24  ;;  %v1711_v6 = vmax.f32 %v1694_v36, 0.0  ;;  %v1152_v26 = vmul.f32 %v3931_v30, %v1148_v23  ;;  %v1218_v5 = vsel %vm1202_vm3, %v1185_v31, %v5309_v35 }
 0x144   : > { %v1151_v15 = vmul.f32 %v3931_v30, %v1149_v29  ;;  %v1219_v36 = vsel %vm1202_vm3, %v5316_v37, %v1185_v31  ;;  %v1222_v42 = vmul.f32 %v3933_v59, %v1218_v5  ;;  %v1288_v35 = vsel %vm1272_vm5, %v1255_v34, %v5311_v39 }
 0x145   : > { %v1720_v40 = vpack.c.bf16 %v1711_v6, %v1710_v41  ;;  %v1221_v29 = vmul.f32 %v3933_v59, %v1219_v36  ;;  %v1169_v11 = vadd.f32 %v1152_v26, %v1099_v60  ;;  %v5751_v9 = vrot.slane %v4106_v4, 4 }
 0x146   : > { %v1168_v24 = vadd.f32 %v1151_v15, %v1098_v1  ;;  %v1292_v1 = vmul.f32 %v3935_v3, %v1288_v35  ;;  %v1325_v60 = vrot.slane %v4260_v12, 7  ;;  %v5313_v26 = vrot.slane %v4265_v52, 7 }
 0x147   : > { %v1289_v31 = vsel %vm1272_vm5, %v5751_v9, %v1255_v34  ;;  %1836 = vmatmul.bf16.vlgmr.msra.gmra.mxu3 %v1720_v40  ;;  %v1239_v15 = vadd.f32 %v1222_v42, %v1169_v11  ;;  %v5315_v5 = vrot.slane %v4127_v10, 7  ;;  %v5314_v36 = vrot.slane %v4245_v18, 1 }
 0x148   : > { %v1238_v6 = vadd.f32 %v1221_v29, %v1168_v24  ;;  %v1291_v41 = vmul.f32 %v3935_v3, %v1289_v31  ;;  %v1396_v23 = vrot.slane %v4250_v38, 1  ;;  %v5312_v34 = vrot.slane %v4255_v43, 1 }
 0x149   : > { %v5322_v40 = vrot.slane %v4260_v12, 4  ;;  %v1309_v9 = vadd.f32 %v1292_v1, %v1239_v15  ;;  %v1358_v35 = vsel %vm1342_vm6, %v1325_v60, %v5313_v26  ;;  %v1359_v11 = vsel %vm1342_vm6, %v5315_v5, %v1325_v60 }
 0x14a   : > { %v1308_v39 = vadd.f32 %v1291_v41, %v1238_v6  ;;  %v1466_v42 = vrot.slane %v4265_v52, 4  ;;  %v1361_v24 = vmul.f32 %v3942_v27, %v1359_v11  ;;  %v1362_v29 = vmul.f32 %v3942_v27, %v1358_v35 }
 0x14b   : > { %v1427_v31 = vsel %vm1412_vm8, %v1396_v23, %v5312_v34  ;;  %v1428_v6 = vsel %vm1412_vm8, %v5314_v36, %v1396_v23  ;;  %v5317_v60 = vrot.slane %v4270_v28, 4  ;;  %v5321_v26 = vrot.slane %v2528_v53, 5 }
 0x14c   : > { %v1431_v41 = vmul.f32 %v3944_v58, %v1428_v6  ;;  %v1432_v1 = vmul.f32 %v3944_v58, %v1427_v31  ;;  %v1497_v15 = vsel %vm1272_vm5, %v5322_v40, %v1466_v42  ;;  %v1378_v35 = vadd.f32 %v1361_v24, %v1308_v39 }
 0x14d   : > { %v1379_v11 = vadd.f32 %v1362_v29, %v1309_v9  ;;  %v1500_v34 = vmul.f32 %v3946_v14, %v1497_v15  ;;  %v1496_v23 = vsel %vm1272_vm5, %v1466_v42, %v5317_v60  ;;  %v1535_v31 = vrot.slane %v2524_v63, 5 }
 0x14e   : > { %v5318_v6 = vrot.slane %v2520_v19, 5  ;;  %v5320_v36 = vrot.slane %v4245_v18, 6  ;;  %v1448_v5 = vadd.f32 %v1431_v41, %v1378_v35  ;;  %v1501_v39 = vmul.f32 %v3946_v14, %v1496_v23 }
 0x14f   : > { %v1449_v37 = vadd.f32 %v1432_v1, %v1379_v11  ;;  %v1605_v9 = vrot.slane %v4250_v38, 6  ;;  %v1567_v42 = vsel %vm1551_vm11, %v5321_v26, %v1535_v31  ;;  %v5319_v29 = vrot.slane %v4255_v43, 6 }
 0x150   : > { %v1566_v24 = vsel %vm1551_vm11, %v1535_v31, %v5318_v6  ;;  %v1517_v15 = vadd.f32 %v1500_v34, %v1448_v5  ;;  %v1570_v41 = vmul.f32 %v3948_v21, %v1567_v42  ;;  %vm5752_vm0 = vcmp.ne.s32.totalorder %v5697_v16, 0 }
 0x151   : > { %v1518_v60 = vadd.f32 %v1501_v39, %v1449_v37  ;;  %v1571_v1 = vmul.f32 %v3948_v21, %v1566_v24  ;;  %v1636_v35 = vsel %vm1621_vm12, %v1605_v9, %v5319_v29  ;;  %v1637_v11 = vsel %vm1621_vm12, %v5320_v36, %v1605_v9 }
 0x152   : > { %v1587_v23 = vadd.f32 %v1570_v41, %v1517_v15  ;;  %v1640_v6 = vmul.f32 %v4059_v62, %v1637_v11  ;;  %v1641_v37 = vmul.f32 %v4059_v62, %v1636_v35  ;;  %v4385_v39 = vsel %vm5752_vm0, %v2512_v55, 0.0 }
 0x153   : > { %v1588_v31 = vadd.f32 %v1571_v1, %v1518_v60  ;;  %vm5753_vm7 = vcmp.ne.s32.totalorder %v5696_v57, 0  ;;  %vm5754_vm13 = vcmp.ne.s32.totalorder %v5699_v0, 0  ;;  %vm5756_vm14 = vcmp.ne.s32.totalorder %v5698_v8, 0 }
 0x154   : > { %v1657_v5 = vadd.f32 %v1640_v6, %v1587_v23  ;;  %v4390_v24 = vsel %vm5753_vm7, %v2516_v49, 0.0  ;;  %v4395_v60 = vsel %vm5754_vm13, %v2508_v45, 0.0  ;;  %v4400_v6 = vsel %vm5756_vm14, %v2504_v22, 0.0 }
 0x155   : > { %v1658_v34 = vadd.f32 %v1641_v37, %v1588_v31  ;;  %5755 = vst [vmem:[#allocation81_spill] sm:$0xff] %v4395_v60  ;;  %vm5758_vm9 = vcmp.ne.s32.totalorder %v5696_v57, 4  ;;  %vm5759_vm0 = vcmp.ne.s32.totalorder %v5697_v16, 4  ;;  %vm5760_vm7 = vcmp.ne.s32.totalorder %v5699_v0, 4 }
 0x156   : > { %5757 = vst [vmem:[#allocation82_spill] sm:$0xff] %v4400_v6  ;;  %v4405_v9 = vsel %vm5758_vm9, %v2516_v49, 0.0  ;;  %v1679_v42 = vadd.f32 %v4091_v32, %v1657_v5  ;;  %v4412_v41 = vsel %vm5759_vm0, %v2512_v55, 0.0  ;;  %v4417_v1 = vsel %vm5760_vm7, %v2508_v45, 0.0 }
 0x157   : > { %v1680_v15 = vadd.f32 %v4091_v32, %v1658_v34  ;;  %5761 = vst [vmem:[#allocation83_spill] sm:$0xff] %v4417_v1  ;;  %vm5762_vm13 = vcmp.ne.s32.totalorder %v5698_v8, 4  ;;  %v1102_v11 = vmul.f32 %v2512_v55, %v3929_v33  ;;  %v1103_v23 = vmul.f32 %v2508_v45, %v3929_v33 }
 0x158   : > { %v4422_v35 = vsel %vm5762_vm13, %v2504_v22, 0.0  ;;  %v1696_v37 = vmax.f32 %v1679_v42, 0.0  ;;  %v1119_v34 = vrot.slane %v4412_v41, 2  ;;  %v5329_v29 = vrot.slane %v4417_v1, 2 }
 0x159   : > { %5763 = vst [vmem:[#allocation84_spill] sm:$0xff] %v4422_v35  ;;  %v1697_v5 = vmax.f32 %v1680_v15, 0.0  ;;  %v1189_v40 = vrot.slane %v2512_v55, 3  ;;  %v5334_v0 = vrot.slane %v2508_v45, 3  ;;  %v5764_v42 = vrot.slane %v4405_v9, 2 }
 0x15a   : > { %v1144_v31 = vsel %vm1132_vm1, %v1119_v34, %v5329_v29  ;;  %v1400_v48 = vrot.slane %v4395_v60, 1  ;;  %vm5767_vm9 = vcmp.ne.s32.totalorder %v5695_v54, 0 }
 0x15b   : > { %v1713_v8 = vpack.c.bf16 %v1697_v5, %v1696_v37  ;;  %v1145_v15 = vsel %vm1132_vm1, %v5764_v42, %v1119_v34  ;;  %v1156_v26 = vmul.f32 %v3931_v30, %v1144_v31  ;;  %v1214_v37 = vsel %vm1202_vm3, %v1189_v40, %v5334_v0 }
 0x15c   : > { %v1155_v36 = vmul.f32 %v3931_v30, %v1145_v15  ;;  %v5765_v5 = vrot.slane %v2516_v49, 3  ;;  %v1226_v34 = vmul.f32 %v3933_v59, %v1214_v37  ;;  %v1259_v42 = vrot.slane %v4385_v39, 4 }
 0x15d   : > { %1801 = vmatmul.bf16.vlgmr.msra.gmra.mxu0 %v1713_v8  ;;  %v5335_v15 = vrot.slane %v4395_v60, 4  ;;  %v1173_v16 = vadd.f32 %v1156_v26, %v1103_v23  ;;  %v5337_v0 = vrot.slane %v4405_v9, 7  ;;  %v5766_v8 = vrot.slane %v4390_v24, 4 }
 0x15e   : > { %v1215_v29 = vsel %vm1202_vm3, %v5765_v5, %v1189_v40  ;;  %v1172_v31 = vadd.f32 %v1155_v36, %v1102_v11  ;;  %v1329_v37 = vrot.slane %v4412_v41, 7  ;;  %v5336_v5 = vrot.slane %v4417_v1, 7 }
 0x15f   : > { %v1225_v57 = vmul.f32 %v3933_v59, %v1215_v29  ;;  %v1284_v40 = vsel %vm1272_vm5, %v1259_v42, %v5335_v15  ;;  %v1285_v29 = vsel %vm1272_vm5, %v5766_v8, %v1259_v42  ;;  %v1243_v26 = vadd.f32 %v1226_v34, %v1173_v16 }
 0x160   : > { %v1295_v11 = vmul.f32 %v3935_v3, %v1285_v29  ;;  %v1296_v23 = vmul.f32 %v3935_v3, %v1284_v40  ;;  %v1354_v15 = vsel %vm1342_vm6, %v1329_v37, %v5336_v5  ;;  %v1355_v42 = vsel %vm1342_vm6, %v5337_v0, %v1329_v37 }
 0x161   : > { %v1242_v36 = vadd.f32 %v1225_v57, %v1172_v31  ;;  %v5342_v8 = vrot.slane %v4385_v39, 1  ;;  %v1365_v34 = vmul.f32 %v3942_v27, %v1355_v42  ;;  %v1366_v31 = vmul.f32 %v3942_v27, %v1354_v15 }
 0x162   : > { %v1313_v16 = vadd.f32 %v1296_v23, %v1243_v26  ;;  %v5340_v40 = vrot.slane %v4400_v6, 1  ;;  %v5341_v5 = vrot.slane %v4412_v41, 4  ;;  %v1470_v37 = vrot.slane %v4417_v1, 4 }
 0x163   : > { %v1312_v57 = vadd.f32 %v1295_v11, %v1242_v36  ;;  %v1424_v29 = vsel %vm1412_vm8, %v5342_v8, %v1400_v48  ;;  %v5343_v26 = vrot.slane %v4422_v35, 4  ;;  %v5349_v23 = vrot.slane %v2512_v55, 5  ;;  %v5777_v35 = vld [vmem:[#allocation73_spill] sm:$0xff] }
 0x164   : > { %v1383_v20 = vadd.f32 %v1366_v31, %v1313_v16  ;;  %v1435_v36 = vmul.f32 %v3944_v58, %v1424_v29  ;;  %v1423_v15 = vsel %vm1412_vm8, %v1400_v48, %v5340_v40  ;;  %v1493_v11 = vsel %vm1272_vm5, %v5341_v5, %v1470_v37 }
 0x165   : > { %v1382_v0 = vadd.f32 %v1365_v34, %v1312_v57  ;;  %v1539_v42 = vrot.slane %v2508_v45, 5  ;;  %v1436_v57 = vmul.f32 %v3944_v58, %v1423_v15  ;;  %v1492_v34 = vsel %vm1272_vm5, %v1470_v37, %v5343_v26 }
 0x166   : > { %v1504_v31 = vmul.f32 %v3946_v14, %v1493_v11  ;;  %v1505_v48 = vmul.f32 %v3946_v14, %v1492_v34  ;;  %v5347_v29 = vrot.slane %v2504_v22, 5  ;;  %v5348_v5 = vrot.slane %v4385_v39, 6 }
 0x167   : > { %v1452_v16 = vadd.f32 %v1435_v36, %v1382_v0  ;;  %v1563_v40 = vsel %vm1551_vm11, %v5349_v23, %v1539_v42  ;;  %v1453_v15 = vadd.f32 %v1436_v57, %v1383_v20  ;;  %v1609_v8 = vrot.slane %v4395_v60, 6 }
 0x168   : > { %v1574_v36 = vmul.f32 %v3948_v21, %v1563_v40  ;;  %v1562_v37 = vsel %vm1551_vm11, %v1539_v42, %v5347_v29  ;;  %v5346_v11 = vrot.slane %v4400_v6, 6 }
 0x169   : > { %v1521_v0 = vadd.f32 %v1504_v31, %v1452_v16  ;;  %v1522_v34 = vadd.f32 %v1505_v48, %v1453_v15  ;;  %v1575_v26 = vmul.f32 %v3948_v21, %v1562_v37  ;;  %v1633_v20 = vsel %vm1621_vm12, %v5348_v5, %v1609_v8  ;;  %v5768_v48 = vld [vmem:[#allocation36_spill] sm:$0xff] }
 0x16a   : > { %v1632_v40 = vsel %vm1621_vm12, %v1609_v8, %v5346_v11  ;;  %v1644_v57 = vmul.f32 %v4059_v62, %v1633_v20  ;;  %v4537_v31 = vsel %vm5767_vm9, %v2484_v50, 0.0  ;;  %vm5769_vm14 = vcmp.ne.s32.totalorder %v5768_v48, 0 }
 0x16b   : > { %v1591_v61 = vadd.f32 %v1574_v36, %v1521_v0  ;;  %v1592_v16 = vadd.f32 %v1575_v26, %v1522_v34  ;;  %v1645_v42 = vmul.f32 %v4059_v62, %v1632_v40  ;;  %v4542_v15 = vsel %vm5769_vm14, %v2480_v2, 0.0 }
 0x16c   : > { %v4547_v8 = vsel %vm709_vm2, %v2484_v50, 0.0  ;;  %v4552_v26 = vsel %vm710_vm15, %v2480_v2, 0.0  ;;  %v1108_v36 = vmul.f32 %v2488_v46, %v3929_v33  ;;  %v1109_v34 = vmul.f32 %v2484_v50, %v3929_v33 }
 0x16d   : > { %v1661_v0 = vadd.f32 %v1644_v57, %v1591_v61  ;;  %v1662_v37 = vadd.f32 %v1645_v42, %v1592_v16  ;;  %v5357_v20 = vrot.slane %v4547_v8, 2  ;;  %v5770_v57 = vrot.slane %v3959_v25, 2 }
 0x16e   : > { %v5771_v11 = vrot.slane %v3954_v56, 2  ;;  %v1195_v5 = vrot.slane %v2488_v46, 3  ;;  %v5360_v16 = vrot.slane %v2484_v50, 3  ;;  %v5363_v48 = vrot.slane %v4537_v31, 4 }
 0x16f   : > { %v1683_v40 = vadd.f32 %v4091_v32, %v1661_v0  ;;  %v1684_v42 = vadd.f32 %v4091_v32, %v1662_v37  ;;  %v5772_v23 = vmov %v5770_v57  ;;  %v5773_v37 = vrot.slane %v2492_v13, 3 }
 0x170   : > { %v1139_v29 = vsel %vm1132_vm1, %v5771_v11, %v5770_v57  ;;  %v1138_v0 = vsel %vm1132_vm1, %v5772_v23, %v5357_v20  ;;  %v1208_v57 = vsel %vm1202_vm3, %v1195_v5, %v5360_v16  ;;  %vm1945_vm15 = vcmask (%p5076_p0), 91136  }
 0x171   : > { %v1161_v61 = vmul.f32 %v3931_v30, %v1139_v29  ;;  %v1700_v54 = vmax.f32 %v1683_v40, 0.0  ;;  %v1162_v11 = vmul.f32 %v3931_v30, %v1138_v0  ;;  %v1209_v45 = vsel %vm1202_vm3, %v5773_v37, %v1195_v5  ;;  %v5774_v0 = vld [vmem:[#allocation74_spill] sm:$0xff] }
 0x172   : > { %v1701_v60 = vmax.f32 %v1684_v42, 0.0  ;;  %v1231_v23 = vmul.f32 %v3933_v59, %v1209_v45  ;;  %v1232_v29 = vmul.f32 %v3933_v59, %v1208_v57  ;;  %v5775_v1 = vrot.slane %v5774_v0, 4 }
 0x173   : > { %v1178_v6 = vadd.f32 %v1161_v61, %v1108_v36  ;;  %v1179_v20 = vadd.f32 %v1162_v11, %v1109_v34  ;;  %v5778_v5 = vrot.slane %v5777_v35, 4  ;;  %v1335_v57 = vrot.slane %v3959_v25, 7 }
 0x174   : > { %v1278_v16 = vsel %vm1272_vm5, %v5775_v1, %v5363_v48  ;;  %v5776_v13 = vmov %v5775_v1  ;;  %v1715_v45 = vpack.c.bf16 %v1701_v60, %v1700_v54  ;;  %v1336_v37 = vrot.slane %v4547_v8, 7 }
 0x175   : > { %v1279_v36 = vsel %vm1272_vm5, %v5778_v5, %v5776_v13  ;;  %v1248_v61 = vadd.f32 %v1231_v23, %v1178_v6  ;;  %v1302_v42 = vmul.f32 %v3935_v3, %v1278_v16  ;;  %v1249_v11 = vadd.f32 %v1232_v29, %v1179_v20 }
 0x176   : > { %v1301_v34 = vmul.f32 %v3935_v3, %v1279_v36  ;;  %v1406_v1 = vrot.slane %v4537_v31, 1  ;;  %1811 = vmatmul.bf16.vlgmr.msra.gmra.mxu1 %v1715_v45  ;;  %v1407_v35 = vrot.slane %v4542_v15, 1  ;;  %v1476_v40 = vrot.slane %v4547_v8, 4 }
 0x177   : > { %v1477_v54 = vrot.slane %v4552_v26, 4  ;;  %v1319_v60 = vadd.f32 %v1302_v42, %v1249_v11  ;;  %v1348_v6 = vsel %vm1342_vm6, %v1335_v57, %v1336_v37  ;;  %v5779_v20 = vrot.slane %v3954_v56, 7 }
 0x178   : > { %v1318_v48 = vadd.f32 %v1301_v34, %v1248_v61  ;;  %v5780_v23 = vrot.slane %v5774_v0, 1  ;;  %v1372_v5 = vmul.f32 %v3942_v27, %v1348_v6  ;;  %v1417_v36 = vsel %vm1412_vm8, %v1406_v1, %v1407_v35 }
 0x179   : > { %v1349_v16 = vsel %vm1342_vm6, %v5779_v20, %v1335_v57  ;;  %v1442_v56 = vmul.f32 %v3944_v58, %v1417_v36  ;;  %v1486_v61 = vsel %vm1272_vm5, %v1476_v40, %v1477_v54  ;;  %v5781_v34 = vrot.slane %v3959_v25, 4 }
 0x17a   : > { %v1418_v29 = vsel %vm1412_vm8, %v5780_v23, %v1406_v1  ;;  %v1371_v13 = vmul.f32 %v3942_v27, %v1349_v16  ;;  %v1545_v11 = vrot.slane %v2484_v50, 5  ;;  %v1389_v6 = vadd.f32 %v1372_v5, %v1319_v60 }
 0x17b   : > { %v1441_v45 = vmul.f32 %v3944_v58, %v1418_v29  ;;  %v1487_v42 = vsel %vm1272_vm5, %v5781_v34, %v1476_v40  ;;  %v1511_v20 = vmul.f32 %v3946_v14, %v1486_v61  ;;  %v5365_v16 = vrot.slane %v2480_v2, 5 }
 0x17c   : > { %v1388_v57 = vadd.f32 %v1371_v13, %v1318_v48  ;;  %v1510_v1 = vmul.f32 %v3946_v14, %v1487_v42  ;;  %v5782_v23 = vrot.slane %v2488_v46, 5  ;;  %v1615_v25 = vrot.slane %v4537_v31, 6 }
 0x17d   : > { %v5364_v36 = vrot.slane %v4542_v15, 6  ;;  %v1459_v34 = vadd.f32 %v1442_v56, %v1389_v6  ;;  %v1114_v60 = vmul.f32 %v2464_v7, %v3929_v33  ;;  %v1556_v13 = vsel %vm1551_vm11, %v1545_v11, %v5365_v16 }
 0x17e   : > { %v1557_v29 = vsel %vm1551_vm11, %v5782_v23, %v1545_v11  ;;  %v1458_v40 = vadd.f32 %v1441_v45, %v1388_v57  ;;  %v5783_v5 = vrot.slane %v5774_v0, 6  ;;  %v5784_v56 = vrot.slane %v4127_v10, 2 }
 0x17f   : > { %v1580_v48 = vmul.f32 %v3948_v21, %v1557_v29  ;;  %v1626_v46 = vsel %vm1621_vm12, %v1615_v25, %v5364_v36  ;;  %v5785_v61 = vrot.slane %v4122_v51, 2  ;;  %v1528_v6 = vadd.f32 %v1511_v20, %v1459_v34 }
 0x180   : > { %v1627_v45 = vsel %vm1621_vm12, %v5783_v5, %v1615_v25  ;;  %v1527_v57 = vadd.f32 %v1510_v1, %v1458_v40  ;;  %v1581_v11 = vmul.f32 %v3948_v21, %v1556_v13  ;;  %v1651_v29 = vmul.f32 %v4059_v62, %v1626_v46 }
 0x181   : > { %v1133_v42 = vsel %vm1132_vm1, %v5785_v61, %v5784_v56  ;;  %v1650_v23 = vmul.f32 %v4059_v62, %v1627_v45  ;;  %v5786_v36 = vrot.slane %v2464_v7, 3  ;;  %v5787_v25 = vrot.slane %v2468_v47, 3 }
 0x182   : > { %v1167_v0 = vmul.f32 %v3931_v30, %v1133_v42  ;;  %v5788_v16 = vrot.slane %v4106_v4, 4  ;;  %v5789_v1 = vrot.slane %v4101_v44, 4  ;;  %v1597_v40 = vadd.f32 %v1580_v48, %v1527_v57 }
 0x183   : > { %v1203_v5 = vsel %vm1202_vm3, %v5787_v25, %v5786_v36  ;;  %v1598_v34 = vadd.f32 %v1581_v11, %v1528_v6  ;;  %v5790_v56 = vrot.slane %v4127_v10, 7  ;;  %v5791_v47 = vrot.slane %v4122_v51, 7 }
 0x184   : > { %v1273_v20 = vsel %vm1272_vm5, %v5789_v1, %v5788_v16  ;;  %v1237_v13 = vmul.f32 %v3933_v59, %v1203_v5  ;;  %v1184_v45 = vadd.f32 %v1167_v0, %v1114_v60  ;;  %v5792_v61 = vrot.slane %v4245_v18, 1 }
 0x185   : > { %v1307_v46 = vmul.f32 %v3935_v3, %v1273_v20  ;;  %v1343_v36 = vsel %vm1342_vm6, %v5791_v47, %v5790_v56  ;;  %v5793_v44 = vrot.slane %v4106_v4, 1  ;;  %v5794_v48 = vrot.slane %v4260_v12, 4 }
 0x186   : > { %v5795_v42 = vrot.slane %v4127_v10, 4  ;;  %v1667_v57 = vadd.f32 %v1650_v23, %v1597_v40  ;;  %v1668_v6 = vadd.f32 %v1651_v29, %v1598_v34  ;;  %v1377_v51 = vmul.f32 %v3942_v27, %v1343_v36 }
 0x187   : > { %v1429_v16 = vsel %vm1412_vm8, %v5793_v44, %v5792_v61  ;;  %v1254_v0 = vadd.f32 %v1237_v13, %v1184_v45  ;;  %v5796_v5 = vrot.slane %v2528_v53, 5  ;;  %v5797_v1 = vrot.slane %v2464_v7, 5 }
 0x188   : > { %v1498_v60 = vsel %vm1272_vm5, %v5795_v42, %v5794_v48  ;;  %v1447_v11 = vmul.f32 %v3944_v58, %v1429_v16  ;;  %v5798_v10 = vrot.slane %v4245_v18, 6  ;;  %v5799_v20 = vrot.slane %v4106_v4, 6 }
 0x189   : > { %v1516_v25 = vmul.f32 %v3946_v14, %v1498_v60  ;;  %v1568_v12 = vsel %vm1551_vm11, %v5797_v1, %v5796_v5  ;;  %v1689_v29 = vadd.f32 %v4091_v32, %v1667_v57  ;;  %v1690_v40 = vadd.f32 %v4091_v32, %v1668_v6 }
 0x18a   : > { %v1638_v23 = vsel %vm1621_vm12, %v5799_v20, %v5798_v10  ;;  %v1586_v34 = vmul.f32 %v3948_v21, %v1568_v12  ;;  %v1324_v13 = vadd.f32 %v1307_v46, %v1254_v0  ;;  %v1100_v7 = vmul.f32 %v2520_v19, %v3929_v33 }
 0x18b   : > { %v1656_v53 = vmul.f32 %v4059_v62, %v1638_v23  ;;  %v1101_v18 = vmul.f32 %v2516_v49, %v3929_v33  ;;  %v5800_v4 = vrot.slane %v4405_v9, 2  ;;  %v5801_v45 = vrot.slane %v4270_v28, 2 }
 0x18c   : > { %v1706_v47 = vmax.f32 %v1689_v29, 0.0  ;;  %v1707_v36 = vmax.f32 %v1690_v40, 0.0  ;;  %v5803_v44 = vrot.slane %v4265_v52, 2  ;;  %v1394_v48 = vadd.f32 %v1377_v51, %v1324_v13 }
 0x18d   : > { %v1146_v56 = vsel %vm1132_vm1, %v5801_v45, %v5800_v4  ;;  %v5802_v61 = vmov %v5801_v45  ;;  %v1187_v60 = vrot.slane %v2520_v19, 3  ;;  %v5804_v57 = vrot.slane %v4390_v24, 4 }
 0x18e   : > { %v1147_v46 = vsel %vm1132_vm1, %v5803_v44, %v5802_v61  ;;  %v1154_v16 = vmul.f32 %v3931_v30, %v1146_v56  ;;  %v5805_v6 = vrot.slane %v4255_v43, 4  ;;  %v1718_v5 = vpack.c.bf16 %v1707_v36, %v1706_v47 }
 0x18f   : > { %v1153_v42 = vmul.f32 %v3931_v30, %v1147_v46  ;;  %v5807_v10 = vrot.slane %v4250_v38, 4  ;;  %v1464_v23 = vadd.f32 %v1447_v11, %v1394_v48  ;;  %v5808_v40 = vrot.slane %v2516_v49, 3 }
 0x190   : > { %v1286_v0 = vsel %vm1272_vm5, %v5805_v6, %v5804_v57  ;;  %v1171_v1 = vadd.f32 %v1154_v16, %v1101_v18  ;;  %v5806_v12 = vmov %v5805_v6  ;;  %v5809_v4 = vrot.slane %v2524_v63, 3  ;;  %1826 = vmatmul.bf16.gmra.mxu2 %v1718_v5 }
 0x191   : > { %v1287_v51 = vsel %vm1272_vm5, %v5807_v10, %v5806_v12  ;;  %v1294_v20 = vmul.f32 %v3935_v3, %v1286_v0  ;;  %v1170_v29 = vadd.f32 %v1153_v42, %v1100_v7  ;;  %v1216_v13 = vsel %vm1202_vm3, %v1187_v60, %v5808_v40 }
 0x192   : > { %v1217_v18 = vsel %vm1202_vm3, %v5809_v4, %v1187_v60  ;;  %v1224_v45 = vmul.f32 %v3933_v59, %v1216_v13  ;;  %v1293_v56 = vmul.f32 %v3935_v3, %v1287_v51  ;;  %v1327_v11 = vrot.slane %v4270_v28, 7 }
 0x193   : > { %v1223_v38 = vmul.f32 %v3933_v59, %v1217_v18  ;;  %v1533_v7 = vadd.f32 %v1516_v25, %v1464_v23  ;;  %v1398_v47 = vrot.slane %v4390_v24, 1  ;;  %v1468_v36 = vrot.slane %v4405_v9, 4 }
 0x194   : > { %v1537_v61 = vrot.slane %v2516_v49, 5  ;;  %v1241_v44 = vadd.f32 %v1224_v45, %v1171_v1  ;;  %v5810_v46 = vrot.slane %v4405_v9, 7  ;;  %v5811_v48 = vrot.slane %v4265_v52, 7 }
 0x195   : > { %v1240_v63 = vadd.f32 %v1223_v38, %v1170_v29  ;;  %v1603_v60 = vadd.f32 %v1586_v34, %v1533_v7  ;;  %v5812_v6 = vrot.slane %v4385_v39, 1  ;;  %v5813_v5 = vrot.slane %v4255_v43, 1 }
 0x196   : > { %v1356_v16 = vsel %vm1342_vm6, %v1327_v11, %v5810_v46  ;;  %v1357_v42 = vsel %vm1342_vm6, %v5811_v48, %v1327_v11  ;;  %v1311_v9 = vadd.f32 %v1294_v20, %v1241_v44  ;;  %v5814_v10 = vrot.slane %v4412_v41, 4 }
 0x197   : > { %v1363_v25 = vmul.f32 %v3942_v27, %v1357_v42  ;;  %v1364_v57 = vmul.f32 %v3942_v27, %v1356_v16  ;;  %v1425_v49 = vsel %vm1412_vm8, %v1398_v47, %v5812_v6  ;;  %v1310_v0 = vadd.f32 %v1293_v56, %v1240_v63  ;;  %v5823_v6 = vld [vmem:[#allocation84_spill] sm:$0xff] }
 0x198   : > { %v1426_v52 = vsel %vm1412_vm8, %v5813_v5, %v1398_v47  ;;  %v1434_v1 = vmul.f32 %v3944_v58, %v1425_v49  ;;  %v1673_v12 = vadd.f32 %v1656_v53, %v1603_v60  ;;  %v1494_v51 = vsel %vm1272_vm5, %v1468_v36, %v5814_v10 }
 0x199   : > { %v1433_v34 = vmul.f32 %v3944_v58, %v1426_v52  ;;  %v5815_v23 = vrot.slane %v4270_v28, 4  ;;  %v1380_v29 = vadd.f32 %v1363_v25, %v1310_v0  ;;  %v1381_v40 = vadd.f32 %v1364_v57, %v1311_v9  ;;  %v5821_v25 = vld [vmem:[#allocation75_spill] sm:$0xff] }
 0x19a   : > { %v1503_v4 = vmul.f32 %v3946_v14, %v1494_v51  ;;  %v1695_v53 = vadd.f32 %v4091_v32, %v1673_v12  ;;  %v5816_v18 = vrot.slane %v2512_v55, 5  ;;  %v5817_v38 = vrot.slane %v2520_v19, 5  ;;  %v5826_v9 = vld [vmem:[#allocation83_spill] sm:$0xff] }
 0x19b   : > { %v1495_v20 = vsel %vm1272_vm5, %v5815_v23, %v1468_v36  ;;  %v1607_v45 = vrot.slane %v4390_v24, 6  ;;  %v1450_v56 = vadd.f32 %v1433_v34, %v1380_v29  ;;  %v1451_v11 = vadd.f32 %v1434_v1, %v1381_v40  ;;  %v5828_v51 = vld [vmem:[#allocation71_spill] sm:$0xff] }
 0x19c   : > { %v1502_v13 = vmul.f32 %v3946_v14, %v1495_v20  ;;  %v1564_v41 = vsel %vm1551_vm11, %v1537_v61, %v5816_v18  ;;  %v1565_v28 = vsel %vm1551_vm11, %v5817_v38, %v1537_v61  ;;  %v1712_v36 = vmax.f32 %v1695_v53, 0.0  ;;  %v5830_v20 = vld [vmem:[#allocation82_spill] sm:$0xff] }
 0x19d   : > { %v1572_v7 = vmul.f32 %v3948_v21, %v1565_v28  ;;  %v1573_v47 = vmul.f32 %v3948_v21, %v1564_v41  ;;  %v5818_v63 = vrot.slane %v4385_v39, 6  ;;  %v5819_v44 = vrot.slane %v4255_v43, 6  ;;  %v5820_v39 = vld [vmem:[#allocation69_spill] sm:$0xff] }
 0x19e   : > { %v1104_v24 = vmul.f32 %v2504_v22, %v3929_v33  ;;  %v1519_v61 = vadd.f32 %v1502_v13, %v1450_v56  ;;  %v1520_v46 = vadd.f32 %v1503_v4, %v1451_v11  ;;  %v1721_v42 = vpack.c.bf16 %v1712_v36, %v1712_v36  ;;  %v5833_v4 = vld [vmem:[#allocation81_spill] sm:$0xff] }
 0x19f   : > { %v1634_v55 = vsel %vm1621_vm12, %v1607_v45, %v5818_v63  ;;  %v1635_v19 = vsel %vm1621_vm12, %v5819_v44, %v1607_v45  ;;  %v1105_v60 = vmul.f32 %v5820_v39, %v3929_v33  ;;  %v5822_v57 = vrot.slane %v5821_v25, 2 }
 0x1a0   : > { %v1642_v16 = vmul.f32 %v4059_v62, %v1635_v19  ;;  %v1643_v48 = vmul.f32 %v4059_v62, %v1634_v55  ;;  %v5824_v43 = vrot.slane %v5823_v6, 2  ;;  %v5827_v5 = vrot.slane %v5826_v9, 2  ;;  %1841 = vmatmul.bf16.gmra.mxu3 %v1721_v42 }
 0x1a1   : > { %v1589_v1 = vadd.f32 %v1572_v7, %v1519_v61  ;;  %v1590_v62 = vadd.f32 %v1573_v47, %v1520_v46  ;;  %v1191_v10 = vrot.slane %v2504_v22, 3  ;;  %v5829_v23 = vrot.slane %v5828_v51, 4  ;;  %v5836_v47 = vld [vmem:[#allocation70_spill] sm:$0xff] }
 0x1a2   : > { %v1142_v49 = vsel %vm1132_vm1, %v5824_v43, %v5822_v57  ;;  %v5825_v0 = vmov %v5824_v43  ;;  %v5831_v29 = vrot.slane %v5830_v20, 4  ;;  %v5834_v53 = vrot.slane %v5833_v4, 4  ;;  %v5843_v4 = vld [vmem:[#allocation76_spill] sm:$0xff] }
 0x1a3   : > { %v1143_v52 = vsel %vm1132_vm1, %v5827_v5, %v5825_v0  ;;  %v1158_v34 = vmul.f32 %v3931_v30, %v1142_v49  ;;  %v1331_v41 = vrot.slane %v5823_v6, 7  ;;  %v1659_v38 = vadd.f32 %v1642_v16, %v1589_v1 }
 0x1a4   : > { %v1157_v12 = vmul.f32 %v3931_v30, %v1143_v52  ;;  %v1282_v40 = vsel %vm1272_vm5, %v5831_v29, %v5829_v23  ;;  %v5832_v13 = vmov %v5831_v29  ;;  %v1660_v28 = vadd.f32 %v1643_v48, %v1590_v62  ;;  %v5840_v62 = vld [vmem:[#allocation72_spill] sm:$0xff] }
 0x1a5   : > { %v1283_v18 = vsel %vm1272_vm5, %v5834_v53, %v5832_v13  ;;  %v1175_v56 = vadd.f32 %v1158_v34, %v1105_v60  ;;  %v5835_v11 = vrot.slane %v5820_v39, 3  ;;  %v5837_v36 = vrot.slane %v5836_v47, 3  ;;  %v5846_v47 = vld [vmem:[#allocation68_spill] sm:$0xff] }
 0x1a6   : > { %v1174_v45 = vadd.f32 %v1157_v12, %v1104_v24  ;;  %v1297_v55 = vmul.f32 %v3935_v3, %v1283_v18  ;;  %v1298_v44 = vmul.f32 %v3935_v3, %v1282_v40  ;;  %v1681_v19 = vadd.f32 %v4091_v32, %v1659_v38 }
 0x1a7   : > { %v1212_v7 = vsel %vm1202_vm3, %v1191_v10, %v5835_v11  ;;  %v1213_v63 = vsel %vm1202_vm3, %v5837_v36, %v1191_v10  ;;  %v1682_v61 = vadd.f32 %v4091_v32, %v1660_v28  ;;  %v5838_v16 = vrot.slane %v5821_v25, 7 }
 0x1a8   : > { %v1227_v24 = vmul.f32 %v3933_v59, %v1213_v63  ;;  %v1228_v46 = vmul.f32 %v3933_v59, %v1212_v7  ;;  %v5839_v42 = vrot.slane %v5826_v9, 7  ;;  %v1402_v57 = vrot.slane %v5828_v51, 1 }
 0x1a9   : > { %v1352_v48 = vsel %vm1342_vm6, %v1331_v41, %v5838_v16  ;;  %v1472_v43 = vrot.slane %v5821_v25, 4  ;;  %v1698_v49 = vmax.f32 %v1681_v19, 0.0  ;;  %v1699_v32 = vmax.f32 %v1682_v61, 0.0 }
 0x1aa   : > { %v1353_v60 = vsel %vm1342_vm6, %v5839_v42, %v1331_v41  ;;  %v1244_v0 = vadd.f32 %v1227_v24, %v1174_v45  ;;  %v1245_v5 = vadd.f32 %v1228_v46, %v1175_v56  ;;  %v1368_v1 = vmul.f32 %v3942_v27, %v1352_v48 }
 0x1ab   : > { %v1367_v52 = vmul.f32 %v3942_v27, %v1353_v60  ;;  %v5841_v12 = vrot.slane %v5840_v62, 1  ;;  %v5842_v34 = vrot.slane %v5830_v20, 1  ;;  %v1714_v23 = vpack.c.bf16 %v1699_v32, %v1698_v49 }
 0x1ac   : > { %v1314_v25 = vadd.f32 %v1297_v55, %v1244_v0  ;;  %v1315_v29 = vadd.f32 %v1298_v44, %v1245_v5  ;;  %v5844_v53 = vrot.slane %v5843_v4, 4  ;;  %v5845_v41 = vrot.slane %v5823_v6, 4 }
 0x1ad   : > { %v1421_v9 = vsel %vm1412_vm8, %v1402_v57, %v5841_v12  ;;  %v1422_v10 = vsel %vm1412_vm8, %v5842_v34, %v1402_v57  ;;  %v1541_v28 = vrot.slane %v5820_v39, 5  ;;  %1806 = vmatmul.bf16.gmra.mxu0 %v1714_v23  ;;  %v5847_v36 = vrot.slane %v5846_v47, 5  ;;  %v5852_v57 = vld [vmem:[#allocation79_spill] sm:$0xff] }
 0x1ae   : > { %v1437_v40 = vmul.f32 %v3944_v58, %v1422_v10  ;;  %v1438_v13 = vmul.f32 %v3944_v58, %v1421_v9  ;;  %v1490_v18 = vsel %vm1272_vm5, %v1472_v43, %v5844_v53  ;;  %v1491_v38 = vsel %vm1272_vm5, %v5845_v41, %v1472_v43  ;;  %v5857_v10 = vld [vmem:[#allocation77_spill] sm:$0xff] }
 0x1af   : > { %v1384_v45 = vadd.f32 %v1367_v52, %v1314_v25  ;;  %v1385_v56 = vadd.f32 %v1368_v1, %v1315_v29  ;;  %v1506_v11 = vmul.f32 %v3946_v14, %v1491_v38  ;;  %v1507_v7 = vmul.f32 %v3946_v14, %v1490_v18  ;;  %v4932_v52 = vld [vmem:[%s3910_s22 + $0x8] ss:$0 sm:$0xff] }
 0x1b0   : > { %v1560_v63 = vsel %vm1551_vm11, %v1541_v28, %v5847_v36  ;;  %v5848_v6 = vrot.slane %v2504_v22, 5  ;;  %v1611_v39 = vrot.slane %v5828_v51, 6  ;;  %v1110_v44 = vmul.f32 %v2480_v2, %v3929_v33  ;;  %v5851_v51 = vld [vmem:[#allocation67_spill] sm:$0xff] }
 0x1b1   : > { %v1454_v19 = vadd.f32 %v1437_v40, %v1384_v45  ;;  %v1455_v61 = vadd.f32 %v1438_v13, %v1385_v56  ;;  %v1577_v46 = vmul.f32 %v3948_v21, %v1560_v63  ;;  %v5849_v16 = vrot.slane %v5840_v62, 6 }
 0x1b2   : > { %v1561_v55 = vsel %vm1551_vm11, %v5848_v6, %v1541_v28  ;;  %v5850_v22 = vrot.slane %v5830_v20, 6  ;;  %v1111_v60 = vmul.f32 %v5851_v51, %v3929_v33  ;;  %v5853_v43 = vrot.slane %v5852_v57, 2 }
 0x1b3   : > { %v1576_v24 = vmul.f32 %v3948_v21, %v1561_v55  ;;  %v1630_v48 = vsel %vm1621_vm12, %v1611_v39, %v5849_v16  ;;  %v5854_v49 = vrot.slane %v4552_v26, 2  ;;  %v1523_v0 = vadd.f32 %v1506_v11, %v1454_v19  ;;  %v2358_v19 = vld [vmem:[%s3885_s19] ss:$0 sm:$0xff]  ;;  %s2535_s19 = smov (%p5076_p0), 64  }
 0x1b4   : > { %v1631_v42 = vsel %vm1621_vm12, %v5850_v22, %v1611_v39  ;;  %v1524_v5 = vadd.f32 %v1507_v7, %v1455_v61  ;;  %v1647_v20 = vmul.f32 %v4932_v52, %v1630_v48  ;;  %v5856_v12 = vrot.slane %v4547_v8, 2 }
 0x1b5   : > { %v1136_v32 = vsel %vm1132_vm1, %v5854_v49, %v5853_v43  ;;  %v1646_v1 = vmul.f32 %v4932_v52, %v1631_v42  ;;  %v5855_v62 = vmov %v5854_v49  ;;  %v1197_v34 = vrot.slane %v2480_v2, 3 }
 0x1b6   : > { %v1137_v33 = vsel %vm1132_vm1, %v5856_v12, %v5855_v62  ;;  %v1164_v9 = vmul.f32 %v3931_v30, %v1136_v32  ;;  %v5858_v23 = vrot.slane %v5857_v10, 4  ;;  %v5859_v25 = vrot.slane %v4542_v15, 4  ;;  %v5867_v62 = vld [vmem:[#allocation80_spill] sm:$0xff] }
 0x1b7   : > { %v1593_v40 = vadd.f32 %v1576_v24, %v1523_v0  ;;  %v1594_v13 = vadd.f32 %v1577_v46, %v1524_v5  ;;  %v1163_v4 = vmul.f32 %v3931_v30, %v1137_v33  ;;  %v5861_v18 = vrot.slane %v4537_v31, 4 }
 0x1b8   : > { %v1276_v29 = vsel %vm1272_vm5, %v5859_v25, %v5858_v23  ;;  %v5860_v53 = vmov %v5859_v25  ;;  %v1181_v38 = vadd.f32 %v1164_v9, %v1111_v60  ;;  %v5862_v28 = vrot.slane %v5851_v51, 3 }
 0x1b9   : > { %v1277_v41 = vsel %vm1272_vm5, %v5861_v18, %v5860_v53  ;;  %v5863_v56 = vrot.slane %v2484_v50, 3  ;;  %v1663_v7 = vadd.f32 %v1646_v1, %v1593_v40  ;;  %v1664_v47 = vadd.f32 %v1647_v20, %v1594_v13  ;;  %v5869_v40 = vld [vmem:[#allocation66_spill] sm:$0xff] }
 0x1ba   : > { %v1206_v45 = vsel %vm1202_vm3, %v1197_v34, %v5862_v28  ;;  %v1303_v30 = vmul.f32 %v3935_v3, %v1277_v41  ;;  %v1180_v36 = vadd.f32 %v1163_v4, %v1110_v44  ;;  %v1304_v6 = vmul.f32 %v3935_v3, %v1276_v29  ;;  %v5865_v3 = vld [vmem:[#allocation78_spill] sm:$0xff]  ;;  %v5010_v29 = vld [vmem:[%s1740_s28] ss:$0 sm:$0xff] }
 0x1bb   : > { %v1207_v11 = vsel %vm1202_vm3, %v5863_v56, %v1197_v34  ;;  %v1234_v63 = vmul.f32 %v3933_v59, %v1206_v45  ;;  %v1337_v55 = vrot.slane %v4552_v26, 7  ;;  %v1408_v39 = vrot.slane %v5857_v10, 1 }
 0x1bc   : > { %v1233_v31 = vmul.f32 %v3933_v59, %v1207_v11  ;;  %v1685_v50 = vadd.f32 %v2358_v19, %v1663_v7  ;;  %v1686_v61 = vadd.f32 %v2358_v19, %v1664_v47  ;;  %v1478_v46 = vrot.slane %v5852_v57, 4 }
 0x1bd   : > { %v1251_v16 = vadd.f32 %v1234_v63, %v1181_v38  ;;  %v5864_v48 = vrot.slane %v5852_v57, 7  ;;  %v1347_v59 = vsel %vm1342_vm6, %v1336_v37, %v1337_v55  ;;  %v5866_v22 = vrot.slane %v5865_v3, 1 }
 0x1be   : > { %v1250_v24 = vadd.f32 %v1233_v31, %v1180_v36  ;;  %v1702_v60 = vmax.f32 %v1685_v50, 0.0  ;;  %v1703_v43 = vmax.f32 %v1686_v61, 0.0  ;;  %v1373_v32 = vmul.f32 %v3942_v27, %v1347_v59 }
 0x1bf   : > { %v1346_v44 = vsel %vm1342_vm6, %v1337_v55, %v5864_v48  ;;  %v1415_v42 = vsel %vm1412_vm8, %v1408_v39, %v5866_v22  ;;  %v1321_v0 = vadd.f32 %v1304_v6, %v1251_v16  ;;  %v1416_v8 = vsel %vm1412_vm8, %v1407_v35, %v1408_v39 }
 0x1c0   : > { %v1320_v49 = vadd.f32 %v1303_v30, %v1250_v24  ;;  %v1374_v57 = vmul.f32 %v3942_v27, %v1346_v44  ;;  %v1444_v37 = vmul.f32 %v3944_v58, %v1415_v42  ;;  %v1716_v5 = vpack.c.bf16 %v1703_v43, %v1702_v60  ;;  %v1822_v30 = vpop.f32.mrf.mxu2 }
 0x1c1   : > { %v1443_v20 = vmul.f32 %v3944_v58, %v1416_v8  ;;  %v5868_v12 = vrot.slane %v5867_v62, 4  ;;  %v1485_v27 = vsel %vm1272_vm5, %v1477_v54, %v1478_v46  ;;  %v1547_v35 = vrot.slane %v5851_v51, 5 }
 0x1c2   : > { %v1390_v1 = vadd.f32 %v1373_v32, %v1320_v49  ;;  %v1391_v9 = vadd.f32 %v1374_v57, %v1321_v0  ;;  %1816 = vmatmul.bf16.gmra.mxu1 %v1716_v5  ;;  %v1512_v25 = vmul.f32 %v3946_v14, %v1485_v27  ;;  %v1617_v58 = vrot.slane %v5857_v10, 6 }
 0x1c3   : > { %v1484_v33 = vsel %vm1272_vm5, %v1478_v46, %v5868_v12  ;;  %v5870_v13 = vrot.slane %v5869_v40, 5  ;;  %v5871_v51 = vrot.slane %v2480_v2, 5  ;;  %v5872_v18 = vrot.slane %v5865_v3, 6 }
 0x1c4   : > { %v1513_v34 = vmul.f32 %v3946_v14, %v1484_v33  ;;  %v1460_v23 = vadd.f32 %v1443_v20, %v1390_v1  ;;  %v1461_v26 = vadd.f32 %v1444_v37, %v1391_v9  ;;  %v5873_v28 = vrot.slane %v4542_v15, 6 }
 0x1c5   : > { %v1554_v54 = vsel %vm1551_vm11, %v1547_v35, %v5870_v13  ;;  %v1555_v4 = vsel %vm1551_vm11, %v5871_v51, %v1547_v35  ;;  %v1624_v41 = vsel %vm1621_vm12, %v1617_v58, %v5872_v18  ;;  %v5033_v18 = vadd.f32 %v5010_v29, %v1822_v30 }
 0x1c6   : > { %v1529_v14 = vadd.f32 %v1512_v25, %v1460_v23  ;;  %v1582_v10 = vmul.f32 %v3948_v21, %v1555_v4  ;;  %v1583_v53 = vmul.f32 %v3948_v21, %v1554_v54  ;;  %v1530_v38 = vadd.f32 %v1513_v34, %v1461_v26 }
 0x1c7   : > { %v1625_v45 = vsel %vm1621_vm12, %v5873_v28, %v1617_v58  ;;  %v1653_v2 = vmul.f32 %v4932_v52, %v1624_v41  ;;  %v5874_v21 = vmov %v5033_v18  ;;  %vm5877_vm5 = vcmp.ge.s32.totalorder %v2638_v17, 5 }
 0x1c8   : > { %v1599_v56 = vadd.f32 %v1582_v10, %v1529_v14  ;;  %v1652_v11 = vmul.f32 %v4932_v52, %v1625_v45  ;;  %v1600_v7 = vadd.f32 %v1583_v53, %v1530_v38  ;;  %v1854_v31 = vmax.f32 %v5874_v21, 0.0   ;;  %v1824_v50 = vpop.f32.mrf.mxu2  ;;  %v1913_v21 = vld [vmem:[%s5178_s7 + $0x20] sm:$0xff] (%p5076_p0) }
 0x1c9   : > { %v5037_v13 = vadd.f32 %v5010_v29, %v1824_v50  ;;  %vm1907_vm1 = vcmask (%p5076_p0), 1040384   ;;  %vm1921_vm12 = vcmask (%p5076_p0), 523264  }
 0x1ca   : > { %v1669_v47 = vadd.f32 %v1652_v11, %v1599_v56  ;;  %v1670_v36 = vadd.f32 %v1653_v2, %v1600_v7  ;;  %v1837_v61 = vpop.f32.mrf.mxu3 }
 0x1cb   : > { %v5875_v52 = vmov %v5037_v13  ;;  %v5040_v11 = vadd.f32 %v5010_v29, %v1837_v61 }
 0x1cc   : > { %v1691_v63 = vadd.f32 %v2358_v19, %v1669_v47  ;;  %v1692_v6 = vadd.f32 %v2358_v19, %v1670_v36  ;;  %v1855_v16 = vmax.f32 %v5875_v52, 0.0  }
 0x1cd   : > { %v5876_v24 = vmov %v5040_v11 }
 0x1ce   : > { %v1708_v15 = vmax.f32 %v1691_v63, 0.0  ;;  %v1709_v55 = vmax.f32 %v1692_v6, 0.0  ;;  %v1860_v48 = vmax.f32 %v5876_v24, 0.0   ;;  %v1909_v24 = vld [vmem:[%s5178_s7] sm:$0xff] (%p5076_p0) }
 0x1d0   : > { %v1719_v39 = vpack.c.bf16 %v1709_v55, %v1708_v15 }
 0x1d2   : > { %1831 = vmatmul.bf16.gmra.mxu2 %v1719_v39  ;;  %v1839_v60 = vpop.f32.mrf.mxu3 }
 0x1d3   : > { %v5051_v47 = vadd.f32 %v5010_v29, %v1839_v60  ;;  %v1916_v60 = vld [vmem:[%s5178_s7 + $0x38] sm:$0xff] (%p5076_p0) }
 0x1d4   :  { %1933 = vmatpush.msra.mxu0 (%p5076_p0), %v1916_v60 }
 0x1d5   : > { %v5879_v43 = vmov %v5051_v47 }
 0x1d6   : > { %v1861_v0 = vmax.f32 %v5879_v43, 0.0  }
 0x1d8   : > { %v5884_v47 = vmov %v1861_v0 }
 0x1da   : > { %v1802_v46 = vpop.f32.mrf.mxu0 }
 0x1db   : > { %v1803_v44 = vadd.f32 %v5010_v29, %v1802_v46 }
 0x1dd   : > { %v1846_v19 = vmax.f32 %v1803_v44, 0.0 }
 0x1df   : > { %v5047_v53 = vsel %vm5877_vm5, %v1846_v19, 0.0  }
 0x1e0   : > { %v5878_v59 = vmov %v5047_v53 }
 0x1e2   : > { %v1804_v3 = vpop.f32.mrf.mxu0 }
 0x1e3   : > { %v1805_v22 = vadd.f32 %v5010_v29, %v1804_v3 }
 0x1e5   : > { %v1847_v42 = vmax.f32 %v1805_v22, 0.0  }
 0x1e7   : > { %v5898_v63 = vmov %v1847_v42 }
 0x1e8   :  { %v1912_v63 = vld [vmem:[%s5178_s7 + $0x18] sm:$0xff] (%p5076_p0) }
 0x1f3   : > { %v1812_v49 = vpop.f32.mrf.mxu1 }
 0x1f4   : > { %v1813_v32 = vadd.f32 %v5010_v29, %v1812_v49 }
 0x1f6   : > { %v1850_v57 = vmax.f32 %v1813_v32, 0.0  }
 0x1f8   : > { %v5895_v55 = vmov %v1850_v57 }
 0x1fb   : > { %v1814_v8 = vpop.f32.mrf.mxu1 }
 0x1fc   : > { %v1815_v37 = vadd.f32 %v5010_v29, %v1814_v8  ;;  %v1915_v8 = vld [vmem:[%s5178_s7 + $0x30] sm:$0xff] (%p5076_p0) }
 0x1fd   :  { %1934 = vmatpush.msra.mxu0 (%p5076_p0), %v1915_v8 }
 0x1fe   : > { %v1851_v5 = vmax.f32 %v1815_v37, 0.0  }
 0x213   : > { %v1827_v1 = vpop.f32.mrf.mxu2 }
 0x214   : > { %v5057_v20 = vadd.f32 %v5010_v29, %v1827_v1 }
 0x216   : > { %v1856_v62 = vmax.f32 %v5057_v20, 0.0  }
 0x218   : > { %v5889_v46 = vmov %v1856_v62 }
 0x21b   : > { %v1829_v12 = vpop.f32.mrf.mxu2 }
 0x21c   : > { %v5061_v33 = vadd.f32 %v5010_v29, %v1829_v12 }
 0x21e   : > { %v1857_v9 = vmax.f32 %v5061_v33, 0.0  }
 0x220   : > { %v5888_v50 = vmov %v1857_v9 }
 0x221   :  { %v1911_v50 = vld [vmem:[%s5178_s7 + $0x10] sm:$0xff] (%p5076_p0) }
 0x223   : > { %v1842_v27 = vpop.f32.mrf.mxu3 }
 0x224   : > { %v1843_v34 = vadd.f32 %v5010_v29, %v1842_v27 }
 0x226   : > { %v1862_v23 = vmax.f32 %v1843_v34, 0.0 }
 0x228   : > { %v5068_v7 = vsel %vm663_vm4, %v1862_v23, 0.0  }
 0x229   : > { %v5881_v26 = vmov %v5068_v7 }
 0x22a   : > { %v1807_v35 = vpop.f32.mrf.mxu0  ;;  %v5883_v7 = vmov %v5881_v26 }
 0x22b   : > { %v1808_v25 = vadd.f32 %v5010_v29, %v1807_v35  ;;  %v1844_v13 = vpop.f32.mrf.mxu3  ;;  %v1914_v7 = vld [vmem:[%s5178_s7 + $0x28] sm:$0xff] (%p5076_p0) }
 0x22c   : > { %v5890_v13 = vmov %v1855_v16  ;;  %1935 = vmatpush.msra.mxu0 (%p5076_p0), %v1914_v7 }
 0x22d   : > { %v1848_v40 = vmax.f32 %v1808_v25, 0.0  }
 0x22e   :  { %1936 = vmatpush.msra.mxu0 (%p5076_p0), %v1913_v21 }
 0x22f   : > { %v5897_v19 = vmov %v1848_v40 }
 0x230   :  { %1937 = vmatpush.msra.mxu0 (%p5076_p0), %v1912_v63 }
 0x232   : > { %v1809_v54 = vpop.f32.mrf.mxu0  ;;  %1938 = vmatpush.msra.mxu0 (%p5076_p0), %v1911_v50 }
 0x233   : > { %v1810_v51 = vadd.f32 %v5010_v29, %v1809_v54 }
 0x235   : > { %v1849_v4 = vmax.f32 %v1810_v51, 0.0  }
 0x237   : > { %v5896_v49 = vmov %v1849_v4 }
 0x23f   : > { %v1817_v14 = vpop.f32.mrf.mxu1 }
 0x240   : > { %v1818_v10 = vadd.f32 %v5010_v29, %v1817_v14 }
 0x242   : > { %v1852_v38 = vmax.f32 %v1818_v10, 0.0  }
 0x244   : > { %v5893_v22 = vmov %v1852_v38 }
 0x247   : > { %v1819_v53 = vpop.f32.mrf.mxu1 }
 0x248   : > { %v1820_v18 = vadd.f32 %v5010_v29, %v1819_v53  ;;  %v5899_v53 = vmov %v5878_v59 }
 0x24a   : > { %v1853_v28 = vmax.f32 %v1820_v18, 0.0   ;;  %v5891_v18 = vmov %v1854_v31 }
 0x24c   : > { %v5892_v32 = vmov %v1853_v28 }
 0x255   : > { %v1832_v41 = vpop.f32.mrf.mxu2 }
 0x256   : > { %v1833_v45 = vadd.f32 %v5010_v29, %v1832_v41 }
 0x258   : > { %v1858_v56 = vmax.f32 %v1833_v45, 0.0   ;;  %v5894_v45 = vmov %v1851_v5 }
 0x25d   : > { %v1834_v2 = vpop.f32.mrf.mxu2 }
 0x25e   : > { %v1835_v11 = vadd.f32 %v5010_v29, %v1834_v2  ;;  %v5887_v2 = vmov %v1858_v56  ;;  %972 = sbr.rel (!%p5076_p0) target bundleno = 263 (0x107), region = 67  ;;  %v1880_v29 = vadd.f32 (%p5076_p0), %v5878_v59, %v1847_v42 }
 0x260   : > { %v1859_v30 = vmax.f32 %v1835_v11, 0.0   ;;  %v5885_v11 = vmov %v1860_v48  ;;  %v1881_v36 = vadd.f32 (%p5076_p0), %v1880_v29, %v1848_v40 }
 0x262   : > { %v5886_v41 = vmov %v1859_v30  ;;  %v1882_v6 = vadd.f32 (%p5076_p0), %v1881_v36, %v1849_v4 }
 0x264   :  { %v1883_v15 = vadd.f32 %v1882_v6, %v1850_v57 }
 0x266   :  { %v1884_v39 = vadd.f32 %v1883_v15, %v1851_v5 }
 0x268   :  { %v1885_v61 = vadd.f32 %v1884_v39, %v1852_v38 }
 0x26a   :  { %v1886_v44 = vadd.f32 %v1885_v61, %v1853_v28 }
 0x26c   :  { %v1887_v3 = vadd.f32 %v1886_v44, %v1854_v31 }
 0x26e   :  { %v1888_v17 = vadd.f32 %v1887_v3, %v1855_v16  ;;  %v1910_v16 = vld [vmem:[%s5178_s7 + $0x8] sm:$0xff]  ;;  %s2536_s7 = smov [#allocation2]  }
 0x26f   :  { %1939 = vmatpush.msra.mxu0 %v1910_v16 }
 0x270   :  { %v1889_v47 = vadd.f32 %v1888_v17, %v1856_v62 }
 0x271   :  { %1940 = vmatpush.msra.mxu0 %v1909_v24 }
 0x272   :  { %v1890_v31 = vadd.f32 %v1889_v47, %v1857_v9 }
 0x274   :  { %v1891_v55 = vadd.f32 %v1890_v31, %v1858_v56 }
 0x276   :  { %v1892_v52 = vadd.f32 %v1891_v55, %v1859_v30 }
 0x278   :  { %v1893_v46 = vadd.f32 %v1892_v52, %v1860_v48 }
 0x27a   :  { %v1894_v19 = vadd.f32 %v1893_v46, %v1861_v0  ;;  %v2359_v0 = vld [vmem:[%s5179_s8] ss:$0 sm:$0xff]  ;;  %s1976_s8 = sshll.u32 %s2536_s7, 4  ;;  %s1977_s8 = int_to_ptr.vmem [resolvable:$true] %s1976_s8 }
 0x27c   :  { %v1895_v59 = vadd.f32 %v1894_v19, %v5881_v26 }
 0x27e   :  { %v1896_v22 = vrot.slane %v1895_v59, 4 }
 0x280   :  { %v1897_v42 = vadd.f32 %v1896_v22, %v1895_v59 }
 0x282   :  { %v1898_v49 = vrot.slane %v1897_v42, 2 }
 0x284   :  { %v1899_v32 = vadd.f32 %v1898_v49, %v1897_v42 }
 0x286   :  { %v1900_v57 = vrot.slane %v1899_v32, 1 }
 0x288   :  { %v1901_v37 = vadd.f32 %v1900_v57, %v1899_v32 }
 0x28a   :  { %v1902_v5 = vmul.f32 0.008, %v1901_v37 }
 0x28c   :  { %1904 = vrot.lane.b32.xlu0 %v1902_v5, %s2535_s19 }
 0x2fe   :  { %v1905_v48 = vpop.permute.xlu0 %1904 }
 0x2ff   :  { %v1908_v43 = vsel %vm1907_vm1, %v1902_v5, %v1905_v48 }
 0x300   :  { %2144 = vmatmul.msk.f32.vlgmr.msra.gmra.mxu0 %vm1921_vm12, %v1908_v43 }
 0x37d   :  { %v1942_v1 = vpop.f32.mrf.mxu0 }
 0x37e   :  { %v1943_v20 = vadd.f32 %v2359_v0, %v1942_v1 }
 0x380   :  { %v1946_v62 = vsel %vm1945_vm15, %v1943_v20, -inf }
 0x381   :  { %1947 = vmax.xlane.f32.xlu0 %v1946_v62 }
 0x3f4   :  { %v1948_v12 = vpop.xlane.xlu0 %1947 }
 0x3f5   :  { %v1949_v33 = vsub.f32 %v1943_v20, %v1948_v12 }
 0x3f7   :  { %v1950_v9 = vmul.f32 1.442695, %v1949_v33 }
 0x3f9   :  { %2360 = vpow2.f32 %v1950_v9 }
 0x3ff   :  { %v2361_v27 = vpop.eup %2360 }
 0x400   :  { %v1952_v34 = vsel %vm1945_vm15, %v2361_v27, 0.0 }
 0x401   :  { %1953 = vadd.xlane.f32.xlu1 %v1952_v34 }
 0x474   :  { %v1954_v35 = vpop.xlane.xlu1 %1953 }
 0x475   :  { %2362 = vrcp.f32 %v1954_v35  ;;  %v1966_v26 = vand.u32 2147483648, %v1954_v35  ;;  %v1964_v13 = vand.u32 2147483647, %v1954_v35  ;;  %vm1960_vm11 = vweird.f32 %v1954_v35 }
 0x477   :  { %v1967_v51 = vor.u32 1.1754944e-38, %v1966_v26  ;;  %vm1965_vm4 = vcmp.eq.f32.partialorder %v1964_v13, 8.507059e+37 }
 0x47b   :  { %v2363_v23 = vpop.eup %2362 }
 0x47c   :  { %v1956_v25 = vmul.f32 %v2363_v23, %v1954_v35  ;;  %vm1961_vm6 = vweird.f32 %v2363_v23 }
 0x47d   :  { %vm1962_vm3 = vmor %vm1960_vm11, %vm1961_vm6 }
 0x47e   :  { %v1957_v58 = vsub.f32 1.0, %v1956_v25 }
 0x480   :  { %v1958_v40 = vmul.f32 %v2363_v23, %v1957_v58 }
 0x482   :  { %v1959_v54 = vadd.f32 %v2363_v23, %v1958_v40 }
 0x484   :  { %v1963_v4 = vsel %vm1962_vm3, %v2363_v23, %v1959_v54 }
 0x485   :  { %v1968_v14 = vsel %vm1965_vm4, %v1967_v51, %v1963_v4 }
 0x486   :  { %v1969_v10 = vmul.f32 %v2361_v27, %v1968_v14 }
 0x488   :  { %1970 = vst.msk [vmem:[#allocation2] sm:$0x3] %vm1945_vm15, %v1969_v10 }
 0x489   :  { %1981 = dma.vmem_to_hbm [thread:$0]  %s1977_s8, 32, %s1979_s1, [#allocation3]  }
 0x48a   :  { %2460 = dma.done.wait [#allocation3], 32  }
 0x48b   :  { %2461 = vsyncadd [#allocation3], 4294967264 }
 0x48c   :  { %1986 = vsyncpa [#allocation3], 1 }

</bundles_post_ra>
